<compile_context>
chip_gen: v7x
topology: tpu7x:2x2x1
jax: 0.10.0
libtpu: 0.0.40
codegen_flags: <defaults>
</compile_context>

<pallas_src>
import jax
import jax.numpy as jnp
from jax.experimental import pallas as pl
from jax.experimental.pallas import tpu as pltpu

FEATURE_DIM = 1408   # EfficientNet-b2 final feature channels (fixed by the module)
LANES = 128
SUBLANES = 8


def _head_kernel(x_ref, w_ref, b_ref, o_ref, acc_ref):
    """Pool-fused classifier:  logits = x @ W_e + b  (avg-pool + 1/HW folded into W_e).

      x_ref  : (tb, tk)  dense slice of the (B, C*HW) feature view
      w_ref  : (tk, Np)  expanded, 1/HW-scaled, zero-padded classifier weight
      b_ref  : (1,  Np)  zero-padded bias (f32)
      o_ref  : (tb, Np)  padded logits (f32)
      acc_ref: (tb, Np)  f32 accumulator scratch (K-axis reduction)
    """
    k = pl.program_id(1)

    @pl.when(k == 0)
    def _():
        acc_ref[...] = jnp.zeros_like(acc_ref)

    x = x_ref[...]
    w = w_ref[...]
    if x.dtype != w.dtype:              # feed the MXU matched (bf16) operands
        x = x.astype(w.dtype)
    acc_ref[...] += jnp.dot(x, w, preferred_element_type=jnp.float32)

    @pl.when(k == pl.num_programs(1) - 1)
    def _():
        # Dropout(p=0.3) in eval mode is the identity.
        o_ref[...] = (acc_ref[...] + b_ref[...]).astype(o_ref.dtype)


def _round_up(x, m):
    return ((x + m - 1) // m) * m


def _choose_tiles(B, K, x_itemsize, w_itemsize, Np, budget_bytes):
    """Pick (tb, nk): batch tile (multiple of 8, or B itself when B <= 8) and
    number of K tiles (tk = K / nk, a multiple of 128) so that the
    double-buffered x/weight blocks + acc/out/bias fit the VMEM budget."""
    k_blocks = K // LANES
    k_divisors = [d for d in range(1, k_blocks + 1) if k_blocks % d == 0]

    def fits(nk, tb):
        tk = K // nk
        w_bytes = 2 * tk * Np * w_itemsize          # 2x: default double-buffering
        x_bytes = 2 * tb * tk * x_itemsize
        o_bytes = 2 * tb * Np * 4 + tb * Np * 4     # out (2x) + f32 acc scratch
        misc = 2 * Np * 4 + (256 << 10)             # bias + internal-scratch slack
        return w_bytes + x_bytes + o_bytes + misc <= budget_bytes

    # Batch tile: ~2 MB of activation per grid step, a multiple of 8, and at
    # least two batch steps when B allows (v7x two-TC "parallel" sharding).
    if B <= SUBLANES:
        tb = B
    else:
        b_pad8 = _round_up(B, SUBLANES)
        target = 2 << 20
        tb = max(SUBLANES, ((target // (K * x_itemsize)) // SUBLANES) * SUBLANES)
        tb = min(tb, b_pad8)
        if tb >= b_pad8 and b_pad8 >= 2 * SUBLANES:          # force >= 2 batch steps
            tb = max(SUBLANES, ((b_pad8 // 2) // SUBLANES) * SUBLANES)

    while True:
        nk = next((d for d in k_divisors if fits(d, tb)), None)
        if nk is not None:
            return tb, nk
        if tb <= SUBLANES:
            return tb, k_divisors[-1]                        # tk = 128; minimal blocks
        tb = max(SUBLANES, ((tb // 2) // SUBLANES) * SUBLANES)


def product_classifier_head(feat_nchw, weight, bias, *,
                            compute_dtype=jnp.bfloat16,
                            vmem_budget_bytes=None):
    """feat_nchw: (B, C, H, W) backbone feature map (NCHW, like PyTorch).
       weight:    (num_classes, C)  -- nn.Linear convention.
       bias:      (num_classes,)
       returns:   (B, num_classes) f32 logits of avgpool -> dropout(eval) -> linear.
    """
    B, C, H, W = feat_nchw.shape
    N, C_w = weight.shape
    assert C == C_w
    HW = H * W
    K = C * HW                      # C = 1408 is a multiple of 128, so K is too
    assert K % LANES == 0

    # Free view of contiguous NCHW: row b is [c0: hw0..hw_{HW-1}, c1: ..., ...].
    x = feat_nchw.reshape(B, K)

    # Expanded, pool-fused classifier weight: W_e[c*HW + hw, n] = W[n, c] / HW,
    # zero-padded to a full 128-lane output tile, cast to the MXU compute dtype.
    Np = max(LANES, _round_up(N, LANES))
    w_t = jnp.zeros((C, Np), jnp.float32).at[:, :N].set(
        weight.T.astype(jnp.float32) / float(HW))
    w_e = jnp.repeat(w_t, HW, axis=0).astype(compute_dtype)          # (K, Np)
    b2d = jnp.zeros((1, Np), jnp.float32).at[:, :N].set(
        bias.astype(jnp.float32).reshape(1, N))

    # Generation-aware VMEM budget (v5e/v6e: 128 MiB physical -> ~64 MiB budget,
    # v7x: 64 MiB -> ~32 MiB budget).
    if vmem_budget_bytes is None:
        try:
            vmem_cap = int(pltpu.get_tpu_info().vmem_capacity_bytes)
        except Exception:
            vmem_cap = 64 * 1024 * 1024
        vmem_budget_bytes = min(vmem_cap // 2, 64 * 1024 * 1024)

    x_itemsize = jnp.dtype(x.dtype).itemsize
    w_itemsize = jnp.dtype(compute_dtype).itemsize
    tb, nk = _choose_tiles(B, K, x_itemsize, w_itemsize, Np, vmem_budget_bytes)
    tk = K // nk

    # Pad the batch with zero rows to a multiple of tb (sliced off below).
    Bp = _round_up(B, tb)
    if Bp != B:
        x = jnp.pad(x, ((0, Bp - B), (0, 0)))

    grid = (Bp // tb, nk)

    out = pl.pallas_call(
        _head_kernel,
        out_shape=jax.ShapeDtypeStruct((Bp, Np), jnp.float32),
        grid_spec=pltpu.PrefetchScalarGridSpec(
            num_scalar_prefetch=0,
            grid=grid,
            in_specs=[
                pl.BlockSpec((tb, tk), lambda i, k: (i, k)),
                pl.BlockSpec((tk, Np), lambda i, k: (k, 0)),
                pl.BlockSpec((1, Np), lambda i, k: (0, 0)),
            ],
            out_specs=pl.BlockSpec((tb, Np), lambda i, k: (i, 0)),
            scratch_shapes=[pltpu.VMEM((tb, Np), jnp.float32)],
        ),
        compiler_params=pltpu.CompilerParams(
            dimension_semantics=("parallel", "arbitrary"),
            vmem_limit_bytes=int(vmem_budget_bytes) + (8 << 20),
        ),
    )(x, w_e, b2d)

    return out[:B, :N]


def _reference(feat_nchw, weight, bias):
    pooled = jnp.mean(feat_nchw.astype(jnp.float32), axis=(2, 3))   # (B, C)
    return pooled @ weight.T.astype(jnp.float32) + bias.astype(jnp.float32)


if __name__ == "__main__":
    key = jax.random.PRNGKey(0)
    k_feat, k_w, k_b = jax.random.split(key, 3)

    B, C, H, W = 2, FEATURE_DIM, 4, 4   # small spatial feature map from the backbone
    num_classes = 8

    # Synthetic (deterministic) backbone output + classifier params.  The
    # backbone is assumed to emit bf16 features (halves HBM traffic).
    feat = jax.random.normal(k_feat, (B, C, H, W), dtype=jnp.float32).astype(jnp.bfloat16)
    weight = jax.random.normal(k_w, (num_classes, C), dtype=jnp.float32) * 0.02
    bias = jax.random.normal(k_b, (num_classes,), dtype=jnp.float32) * 0.01

    logits = product_classifier_head(feat, weight, bias)
    logits = jax.block_until_ready(logits)

    ref = _reference(feat, weight, bias)
    assert logits.shape == (B, num_classes)
    assert jnp.allclose(logits, ref, atol=1e-2, rtol=1e-2), "mismatch vs reference"

    print("KERNEL_OK")
</pallas_src>

<mosaic_0001>
module attributes {stable_mosaic.version = 11 : i64} {
  func.func @_head_kernel(%arg0: i32, %arg1: i32, %arg2: memref<2x22528xbf16, #tpu.memory_space<vmem>>, %arg3: memref<22528x128xbf16, #tpu.memory_space<vmem>>, %arg4: memref<1x128xf32, #tpu.memory_space<vmem>>, %arg5: memref<2x128xf32, #tpu.memory_space<vmem>>, %arg6: memref<2x128xf32, #tpu.memory_space<vmem>>) attributes {dimension_semantics = [#tpu.dimension_semantics<parallel>, #tpu.dimension_semantics<arbitrary>], iteration_bounds = array<i64: 1, 1>, scalar_prefetch = 0 : i64, scratch_operands = 1 : i64, tpu.core_type = #tpu.core_type<tc>, window_params = [{transform_indices = @transform_0, window_bounds = array<i64: 2, 22528>}, {transform_indices = @transform_1, window_bounds = array<i64: 22528, 128>}, {pipeline_mode = #tpu.pipeline_mode<synchronous>, transform_indices = @transform_2, window_bounds = array<i64: 1, 128>}, {transform_indices = @transform_3, window_bounds = array<i64: 2, 128>}]} {
    %c0_i32 = arith.constant 0 : i32
    %0 = arith.cmpi eq, %arg1, %c0_i32 : i32
    %1 = arith.extui %0 : i1 to i32
    %c0_i32_0 = arith.constant 0 : i32
    %2 = arith.cmpi ne, %1, %c0_i32_0 : i32
    scf.if %2 {
      %cst_10 = arith.constant 0.000000e+00 : f32
      %12 = vector.broadcast %cst_10 : f32 to vector<2x128xf32>
      %c0_11 = arith.constant 0 : index
      %c0_12 = arith.constant 0 : index
      %13 = vector.load %arg6[%c0_11, %c0_12] : memref<2x128xf32, #tpu.memory_space<vmem>>, vector<2x128xf32>
      tpu.vector_store %arg6[%c0_11, %c0_12], %12 {strides = array<i32>} : memref<2x128xf32, #tpu.memory_space<vmem>>, vector<2x128xf32>,
    } else {
    }
    %c0 = arith.constant 0 : index
    %c0_1 = arith.constant 0 : index
    %3 = vector.load %arg2[%c0, %c0_1] : memref<2x22528xbf16, #tpu.memory_space<vmem>>, vector<2x22528xbf16>
    %c0_2 = arith.constant 0 : index
    %c0_3 = arith.constant 0 : index
    %4 = vector.load %arg3[%c0_2, %c0_3] : memref<22528x128xbf16, #tpu.memory_space<vmem>>, vector<22528x128xbf16>
    %c0_4 = arith.constant 0 : index
    %c0_5 = arith.constant 0 : index
    %5 = vector.load %arg6[%c0_4, %c0_5] : memref<2x128xf32, #tpu.memory_space<vmem>>, vector<2x128xf32>
    %cst = arith.constant dense<0.000000e+00> : vector<2x128xf32>
    %6 = tpu.matmul %3, %4, %cst {dimension_numbers = #tpu.dot_dimension_numbers<[1], [0], [0], [1], [0, 0, 1, 1], [], []>} : vector<2x22528xbf16>, vector<22528x128xbf16>, vector<2x128xf32> -> vector<2x128xf32>
    %7 = arith.addf %5, %6 : vector<2x128xf32>
    %c0_6 = arith.constant 0 : index
    %c0_7 = arith.constant 0 : index
    %8 = vector.load %arg6[%c0_6, %c0_7] : memref<2x128xf32, #tpu.memory_space<vmem>>, vector<2x128xf32>
    tpu.vector_store %arg6[%c0_6, %c0_7], %7 {strides = array<i32>} : memref<2x128xf32, #tpu.memory_space<vmem>>, vector<2x128xf32>,
    %c0_i32_8 = arith.constant 0 : i32
    %9 = arith.cmpi eq, %arg1, %c0_i32_8 : i32
    %10 = arith.extui %9 : i1 to i32
    %c0_i32_9 = arith.constant 0 : i32
    %11 = arith.cmpi ne, %10, %c0_i32_9 : i32
    scf.if %11 {
      %c0_10 = arith.constant 0 : index
      %c0_11 = arith.constant 0 : index
      %12 = vector.load %arg6[%c0_10, %c0_11] : memref<2x128xf32, #tpu.memory_space<vmem>>, vector<2x128xf32>
      %c0_12 = arith.constant 0 : index
      %c0_13 = arith.constant 0 : index
      %13 = vector.load %arg4[%c0_12, %c0_13] : memref<1x128xf32, #tpu.memory_space<vmem>>, vector<1x128xf32>
      %14 = vector.broadcast %13 : vector<1x128xf32> to vector<2x128xf32>
      %15 = arith.addf %12, %14 : vector<2x128xf32>
      %c0_14 = arith.constant 0 : index
      %c0_15 = arith.constant 0 : index
      %16 = vector.load %arg5[%c0_14, %c0_15] : memref<2x128xf32, #tpu.memory_space<vmem>>, vector<2x128xf32>
      tpu.vector_store %arg5[%c0_14, %c0_15], %15 {strides = array<i32>} : memref<2x128xf32, #tpu.memory_space<vmem>>, vector<2x128xf32>,
    } else {
    }
    return
  }
  func.func @transform_0(%arg0: i32, %arg1: i32) -> (i32, i32) {
    %c0_i32 = arith.constant 0 : i32
    return %arg0, %arg1 : i32, i32
  }
  func.func @transform_1(%arg0: i32, %arg1: i32) -> (i32, i32) {
    %c0_i32 = arith.constant 0 : i32
    %c0_i32_0 = arith.constant 0 : i32
    return %arg1, %c0_i32 : i32, i32
  }
  func.func @transform_2(%arg0: i32, %arg1: i32) -> (i32, i32) {
    %c0_i32 = arith.constant 0 : i32
    %c0_i32_0 = arith.constant 0 : i32
    %c0_i32_1 = arith.constant 0 : i32
    return %c0_i32, %c0_i32_0 : i32, i32
  }
  func.func @transform_3(%arg0: i32, %arg1: i32) -> (i32, i32) {
    %c0_i32 = arith.constant 0 : i32
    %c0_i32_0 = arith.constant 0 : i32
    return %arg0, %c0_i32 : i32, i32
  }
}

</mosaic_0001>

<bundles_post_ra>
// kernel: tpu_custom_call.1
= control target key start
LH: loop header
LB: loop body
LE: loop exit
PB: predicated region body
PF: predicated region fallthrough
CT: control target
= control target key end

     0   :  { %8 = vsyncpa [#allocation4], 0  ;;  %s21477_s0 = inlined_call_operand.hbm [shape: bf16[2,22528], index: 0, kind: input, shape index: {}]   ;;  %s21478_s1 = inlined_call_operand.hbm [shape: bf16[22528,128], index: 1, kind: input, shape index: {}]   ;;  %s21479_s2 = inlined_call_operand.hbm [shape: f32[1,128], index: 2, kind: input, shape index: {}]   ;;  %s21480_s3 = inlined_call_operand.hbm [shape: f32[2,128], index: 3, kind: output, shape index: {}]  }
   0x1   :  { %9 = vsyncpa [#allocation7], 0 }
   0x2   :  { %10 = vsyncpa [#allocation5], 0  ;;  %s21049_s12 = smov [#allocation6]   ;;  %s20955_s16 = scalar_lea.hbm %s21478_s1, 180224 }
   0x3   :  { %s26_s13 = sshll.u32 %s21049_s12, 4  ;;  %p20956_p0 = scmp.ne.s32.totalorder %s21478_s1, %s20955_s16  ;;  %s27_s13 = int_to_ptr.vmem [resolvable:$true] %s26_s13 }
   0x4   :  { %p20959_p1 = scmp.lt.u32.totalorder %s20955_s16, %s21478_s1 }
   0x6   :  { %p20961_p2 = pnand %p20959_p1, %p20956_p0 }
   0x8   :  { %20964 = shalt.err (!%p20961_p2)
}
   0x9   :  { %s20965_s21 = scalar_lea.vmem %s27_s13, 180224  ;;  %p20970_p4 = scmp.lt.s32.totalorder %s27_s13, %s27_s13 }
   0xa   :  { %p20966_p3 = scmp.ne.s32.totalorder %s27_s13, %s20965_s21  ;;  %p20971_p5 = scmp.lt.s32.totalorder %s20965_s21, %s20965_s21 }
   0xc   :  { %p20972_p6 = por %p20971_p5, %p20970_p4 }
   0xe   :  { %p20973_p7 = pnand %p20972_p6, %p20966_p3 }
  0x10   :  { %20976 = shalt.err (!%p20973_p7)
}
  0x11   :  { %s21050_s22 = smov 64   ;;  %s21051_s23 = smov 4  }
  0x12   :  { %32 = dma.hbm_to_vmem [thread:$0]  %s21478_s1, 180224, %s27_s13, [#allocation7], %s21050_s22, %s21050_s22, %s21051_s23  }
  0x13   :  { %s21052_s26 = smov [#allocation3]   ;;  %s21053_s28 = smov [#allocation8]  }
  0x14   :  { %s17_s27 = sshll.u32 %s21052_s26, 4  ;;  %s39_s29 = sshll.u32 %s21053_s28, 4  ;;  %s18_s27 = int_to_ptr.vmem [resolvable:$true] %s17_s27  ;;  %s40_s29 = int_to_ptr.vmem [resolvable:$true] %s39_s29 }
  0x15   :  { %s20977_s5 = scalar_lea.hbm %s21477_s0, 2816 }
  0x16   :  { %p20978_p8 = scmp.ne.s32.totalorder %s21477_s0, %s20977_s5  ;;  %p20981_p9 = scmp.lt.u32.totalorder %s20977_s5, %s21477_s0 }
  0x18   :  { %p20983_p10 = pnand %p20981_p9, %p20978_p8 }
  0x1a   :  { %20986 = shalt.err (!%p20983_p10)
}
  0x1b   :  { %s20987_s1 = scalar_lea.vmem %s18_s27, 2816  ;;  %p20992_p12 = scmp.lt.s32.totalorder %s18_s27, %s18_s27 }
  0x1c   :  { %p20988_p11 = scmp.ne.s32.totalorder %s18_s27, %s20987_s1  ;;  %p20993_p13 = scmp.lt.s32.totalorder %s20987_s1, %s20987_s1 }
  0x1e   :  { %p20994_p0 = por %p20993_p13, %p20992_p12 }
  0x20   :  { %p20995_p1 = pnand %p20994_p0, %p20988_p11 }
  0x22   :  { %20998 = shalt.err (!%p20995_p1)
}
  0x23   :  { %20 = dma.hbm_to_vmem [thread:$0]  %s21477_s0, 2816, %s18_s27, [#allocation4]  }
  0x24   :  { %s20999_s14 = scalar_lea.hbm %s21479_s2, 16 }
  0x25   :  { %p21000_p2 = scmp.ne.s32.totalorder %s21479_s2, %s20999_s14  ;;  %p21003_p3 = scmp.lt.u32.totalorder %s20999_s14, %s21479_s2 }
  0x27   :  { %p21005_p4 = pnand %p21003_p3, %p21000_p2 }
  0x29   :  { %21008 = shalt.err (!%p21005_p4)
}
  0x2a   :  { %s21009_s19 = scalar_lea.vmem %s40_s29, 16  ;;  %s21013_s20 = scalar_lea.vmem %s40_s29, 32 }
  0x2b   :  { %p21010_p5 = scmp.ne.s32.totalorder %s40_s29, %s21009_s19  ;;  %p21014_p6 = scmp.lt.s32.totalorder %s40_s29, %s40_s29 }
  0x2c   :  { %p21015_p7 = scmp.lt.s32.totalorder %s21013_s20, %s21009_s19 }
  0x2e   :  { %p21016_p8 = por %p21015_p7, %p21014_p6 }
  0x30   :  { %p21017_p9 = pnand %p21016_p8, %p21010_p5 }
  0x32   :  { %21020 = shalt.err (!%p21017_p9)
}
  0x33   :  { %42 = dma.hbm_to_vmem [thread:$0]  %s21479_s2, 16, %s40_s29, [#allocation7]  }
  0x34   :  { %21043 = dma.done.wait [#allocation4], 2816  }
  0x35   :  { %21044 = vsyncadd [#allocation4], 4294964480 }
  0x36   :  { %21045 = dma.done.wait [#allocation7], 180240  }
  0x37   :  { %21046 = vsyncadd [#allocation7], 4294787056  ;;  %v19525_v0 = vld [vmem:[#allocation6 + $0x40] sm:$0xff]   ;;  %v19529_v4 = vld [vmem:[#allocation6 + $0x48] sm:$0xff]   ;;  %v21054_v22 = vmov 1966171168   ;;  %v2923_v24 = vlaneseq }
  0x38   :  { %v19526_v1 = vld [vmem:[#allocation6 + $0xc0] sm:$0xff]   ;;  %17581 = vmatprep.subr.bf16.mxu0 %v19525_v0  ;;  %v19530_v5 = vld [vmem:[#allocation6 + $0xc8] sm:$0xff]   ;;  %v19533_v8 = vld [vmem:[#allocation6 + $0x50] sm:$0xff]   ;;  %v2921_v23 = vunpack.c.l.s4 %v21054_v22  ;;  %s21056_s2 = smov [#allocation9]  }
  0x39   :  { %v19527_v2 = vld [vmem:[#allocation6] sm:$0xff]   ;;  %17603 = vmatprep.subr.bf16.mxu1 %v19526_v1  ;;  %v19531_v6 = vld [vmem:[#allocation6 + $0x8] sm:$0xff]   ;;  %v19534_v9 = vld [vmem:[#allocation6 + $0xd0] sm:$0xff]   ;;  %v2924_v30 = vshrl.u32 %v2923_v24, 7  ;;  %s16162_s22 = sshll.u32 %s21056_s2, 4  ;;  %s16163_s22 = int_to_ptr.vmem [resolvable:$true] %s16162_s22 }
  0x3a   :  { %v19528_v3 = vld [vmem:[#allocation6 + $0x80] sm:$0xff]   ;;  %17582 = vmatpush3.bf16.msra.mxu0 %v19527_v2  ;;  %v19532_v7 = vld [vmem:[#allocation6 + $0x88] sm:$0xff]   ;;  %v19535_v10 = vld [vmem:[#allocation6 + $0x10] sm:$0xff]   ;;  %v2922_v29 = vunpack.c.0.s8 %v2921_v23  ;;  %s21021_s23 = scalar_lea.vmem %s16163_s22, 32  ;;  %p21026_p11 = scmp.lt.s32.totalorder %s16163_s22, %s16163_s22 }
  0x3b   :  { %17604 = vmatpush3.bf16.msra.mxu1 %v19528_v3  ;;  %17583 = vmatprep.subr.bf16.mxu0 %v19529_v4  ;;  %v19536_v11 = vld [vmem:[#allocation6 + $0x90] sm:$0xff]   ;;  %v19537_v12 = vld [vmem:[#allocation6 + $0x58] sm:$0xff]   ;;  %v19541_v16 = vld [vmem:[#allocation6 + $0x60] sm:$0xff]   ;;  %p21022_p10 = scmp.ne.s32.totalorder %s16163_s22, %s21021_s23  ;;  %p21027_p12 = scmp.lt.s32.totalorder %s21021_s23, %s21021_s23 }
  0x3c   :  { %17605 = vmatprep.subr.bf16.mxu1 %v19530_v5  ;;  %v19538_v13 = vld [vmem:[#allocation6 + $0xd8] sm:$0xff]   ;;  %v19542_v17 = vld [vmem:[#allocation6 + $0xe0] sm:$0xff]   ;;  %v19545_v20 = vld [vmem:[#allocation6 + $0x68] sm:$0xff]   ;;  %v21113_v35 = vsub.s32 %v2922_v29, %v2924_v30 }
  0x3d   :  { %v19539_v14 = vld [vmem:[#allocation6 + $0x18] sm:$0xff]   ;;  %v19543_v18 = vld [vmem:[#allocation6 + $0x20] sm:$0xff]   ;;  %v19546_v21 = vld [vmem:[#allocation6 + $0xe8] sm:$0xff]   ;;  %p21028_p13 = por %p21027_p12, %p21026_p11 }
  0x3e   :  { %17584 = vmatpush3.bf16.msra.mxu0 %v19531_v6  ;;  %v19540_v15 = vld [vmem:[#allocation6 + $0x98] sm:$0xff]   ;;  %v19544_v19 = vld [vmem:[#allocation6 + $0xa0] sm:$0xff]   ;;  %v19547_v25 = vld [vmem:[#allocation6 + $0x28] sm:$0xff]  }
  0x3f   :  { %17606 = vmatpush3.bf16.msra.mxu1 %v19532_v7  ;;  %17585 = vmatprep.subr.bf16.mxu0 %v19533_v8  ;;  %v19548_v26 = vld [vmem:[#allocation6 + $0xa8] sm:$0xff]   ;;  %v19549_v27 = vld [vmem:[#allocation6 + $0x70] sm:$0xff]   ;;  %v19553_v33 = vld [vmem:[#allocation6 + $0x78] sm:$0xff]   ;;  %p21029_p0 = pnand %p21028_p13, %p21022_p10 }
  0x40   :  { %17607 = vmatprep.subr.bf16.mxu1 %v19534_v9  ;;  %v19550_v28 = vld [vmem:[#allocation6 + $0xf0] sm:$0xff]   ;;  %v19554_v34 = vld [vmem:[#allocation6 + $0xf8] sm:$0xff]   ;;  %v19558_v41 = vld [vmem:[#allocation6 + $0x140] sm:$0xff]  }
  0x41   :  { %v19551_v31 = vld [vmem:[#allocation6 + $0x30] sm:$0xff]   ;;  %v19555_v36 = vld [vmem:[#allocation6 + $0x38] sm:$0xff]   ;;  %v19559_v42 = vld [vmem:[#allocation6 + $0x1c0] sm:$0xff]  }
  0x42   :  { %17586 = vmatpush3.bf16.msra.mxu0 %v19535_v10  ;;  %v19552_v32 = vld [vmem:[#allocation6 + $0xb0] sm:$0xff]   ;;  %v19556_v37 = vld [vmem:[#allocation6 + $0xb8] sm:$0xff]   ;;  %v19560_v46 = vld [vmem:[#allocation6 + $0x100] sm:$0xff]  }
  0x43   :  { %17608 = vmatpush3.bf16.msra.mxu1 %v19536_v11  ;;  %17587 = vmatprep.subr.bf16.mxu0 %v19537_v12  ;;  %v58_v38 = vld [vmem:[#allocation3] sm:$0xff]  ;;  %v19561_v48 = vld [vmem:[#allocation6 + $0x180] sm:$0xff]   ;;  %v19562_v51 = vld [vmem:[#allocation6 + $0x148] sm:$0xff]  }
  0x44   :  { %17609 = vmatprep.subr.bf16.mxu1 %v19538_v13  ;;  %v2919_v39 = vcombine.high %v58_v38, %v58_v38  ;;  %v2926_v40 = vrot.slane %v58_v38, %v21113_v35  ;;  %v19563_v53 = vld [vmem:[#allocation6 + $0x1c8] sm:$0xff]   ;;  %v19566_v58 = vld [vmem:[#allocation6 + $0x150] sm:$0xff]   ;;  %v19570_v62 = vld [vmem:[#allocation6 + $0x158] sm:$0xff]  }
  0x45   :  { %v19564_v55 = vld [vmem:[#allocation6 + $0x108] sm:$0xff]   ;;  %v19567_v59 = vld [vmem:[#allocation6 + $0x1d0] sm:$0xff]   ;;  %v19571_v63 = vld [vmem:[#allocation6 + $0x1d8] sm:$0xff]  }
  0x46   :  { %17588 = vmatpush3.bf16.msra.mxu0 %v19539_v14  ;;  %v2934_v43 = vcombine.high %v2926_v40, %v2926_v40  ;;  %v2942_v44 = vrot.slane %v2926_v40, %v21113_v35  ;;  %v21118_v45 = vrot.slane %v2919_v39, %v21113_v35  ;;  %v19565_v56 = vld [vmem:[#allocation6 + $0x188] sm:$0xff]   ;;  %v19568_v60 = vld [vmem:[#allocation6 + $0x110] sm:$0xff]   ;;  %v19572_v0 = vld [vmem:[#allocation6 + $0x118] sm:$0xff]  }
  0x47   :  { %17610 = vmatpush3.bf16.msra.mxu1 %v19540_v15  ;;  %17589 = vmatprep.subr.bf16.mxu0 %v19541_v16  ;;  %v19569_v61 = vld [vmem:[#allocation6 + $0x190] sm:$0xff]   ;;  %v19573_v1 = vld [vmem:[#allocation6 + $0x198] sm:$0xff]   ;;  %v19574_v2 = vld [vmem:[#allocation6 + $0x160] sm:$0xff]  }
  0x48   :  { %17611 = vmatprep.subr.bf16.mxu1 %v19542_v17  ;;  %v2956_v47 = vrot.slane %v2934_v43, %v21113_v35  ;;  %v2935_v49 = vcombine.high %v21118_v45, %v21118_v45  ;;  %v2964_v50 = vcombine.high %v2942_v44, %v2942_v44  ;;  %v19575_v3 = vld [vmem:[#allocation6 + $0x1e0] sm:$0xff]   ;;  %v19578_v6 = vld [vmem:[#allocation6 + $0x168] sm:$0xff]   ;;  %v19582_v10 = vld [vmem:[#allocation6 + $0x170] sm:$0xff]  }
  0x49   :  { %v19576_v4 = vld [vmem:[#allocation6 + $0x120] sm:$0xff]   ;;  %v19579_v7 = vld [vmem:[#allocation6 + $0x1e8] sm:$0xff]   ;;  %v19583_v11 = vld [vmem:[#allocation6 + $0x1f0] sm:$0xff]  }
  0x4a   :  { %17590 = vmatpush3.bf16.msra.mxu0 %v19543_v18  ;;  %12653 = vmatprep.mubr.bf16.mxu0 %v2956_v47  ;;  %v2966_v52 = vcombine.high %v2956_v47, %v2956_v47  ;;  %v2963_v54 = vrot.slane %v2935_v49, %v21113_v35  ;;  %v19577_v5 = vld [vmem:[#allocation6 + $0x1a0] sm:$0xff]   ;;  %v19580_v8 = vld [vmem:[#allocation6 + $0x128] sm:$0xff]   ;;  %v19584_v12 = vld [vmem:[#allocation6 + $0x130] sm:$0xff]   ;;  %v2949_v18 = vrot.slane %v21118_v45, %v21113_v35 }
  0x4b   :  { %17612 = vmatpush3.bf16.msra.mxu1 %v19544_v19  ;;  %17591 = vmatprep.subr.bf16.mxu0 %v19545_v20  ;;  %v19581_v9 = vld [vmem:[#allocation6 + $0x1a8] sm:$0xff]   ;;  %v19585_v13 = vld [vmem:[#allocation6 + $0x1b0] sm:$0xff]   ;;  %v19586_v14 = vld [vmem:[#allocation6 + $0x178] sm:$0xff]  }
  0x4c   :  { %17613 = vmatprep.subr.bf16.mxu1 %v19546_v21  ;;  %12693 = vmatprep.mubr.bf16.mxu1 %v2966_v52  ;;  %v2967_v57 = vcombine.high %v2963_v54, %v2963_v54  ;;  %v19587_v15 = vld [vmem:[#allocation6 + $0x1f8] sm:$0xff]   ;;  %v19590_v19 = vld [vmem:[#allocation6 + $0x240] sm:$0xff]   ;;  %v2965_v23 = vcombine.high %v2949_v18, %v2949_v18  ;;  %v19594_v24 = vld [vmem:[#allocation6 + $0x248] sm:$0xff]  }
  0x4d   :  { %v19588_v16 = vld [vmem:[#allocation6 + $0x138] sm:$0xff]   ;;  %v19591_v20 = vld [vmem:[#allocation6 + $0x2c0] sm:$0xff]   ;;  %v19599_v29 = vld [vmem:[#allocation6 + $0x2d0] sm:$0xff]  }
  0x4e   :  { %17592 = vmatpush3.bf16.msra.mxu0 %v19547_v25  ;;  %v19589_v17 = vld [vmem:[#allocation6 + $0x1b8] sm:$0xff]   ;;  %v19592_v21 = vld [vmem:[#allocation6 + $0x200] sm:$0xff]   ;;  %v19595_v25 = vld [vmem:[#allocation6 + $0x2c8] sm:$0xff]  }
  0x4f   :  { %17614 = vmatpush3.bf16.msra.mxu1 %v19548_v26  ;;  %17593 = vmatprep.subr.bf16.mxu0 %v19549_v27  ;;  %v19593_v22 = vld [vmem:[#allocation6 + $0x280] sm:$0xff]   ;;  %v19596_v26 = vld [vmem:[#allocation6 + $0x208] sm:$0xff]   ;;  %v19600_v30 = vld [vmem:[#allocation6 + $0x210] sm:$0xff]  }
  0x50   :  { %17615 = vmatprep.subr.bf16.mxu1 %v19550_v28  ;;  %v19597_v27 = vld [vmem:[#allocation6 + $0x288] sm:$0xff]   ;;  %v19598_v28 = vld [vmem:[#allocation6 + $0x250] sm:$0xff]   ;;  %v19607_v38 = vld [vmem:[#allocation6 + $0x2e0] sm:$0xff]  }
  0x51   :  { %v19608_v39 = vld [vmem:[#allocation6 + $0x220] sm:$0xff]   ;;  %v19612_v43 = vld [vmem:[#allocation6 + $0x228] sm:$0xff]   ;;  %v19614_v45 = vld [vmem:[#allocation6 + $0x270] sm:$0xff]  }
  0x52   :  { %17594 = vmatpush3.bf16.msra.mxu0 %v19551_v31  ;;  %v19601_v31 = vld [vmem:[#allocation6 + $0x290] sm:$0xff]   ;;  %v19609_v40 = vld [vmem:[#allocation6 + $0x2a0] sm:$0xff]   ;;  %v19618_v49 = vld [vmem:[#allocation6 + $0x278] sm:$0xff]  }
  0x53   :  { %17616 = vmatpush3.bf16.msra.mxu1 %v19552_v32  ;;  %17595 = vmatprep.subr.bf16.mxu0 %v19553_v33  ;;  %v19602_v32 = vld [vmem:[#allocation6 + $0x258] sm:$0xff]   ;;  %v19616_v47 = vld [vmem:[#allocation6 + $0x230] sm:$0xff]  }
  0x54   :  { %17617 = vmatprep.subr.bf16.mxu1 %v19554_v34  ;;  %v19603_v33 = vld [vmem:[#allocation6 + $0x2d8] sm:$0xff]  }
  0x55   :  { %v19604_v34 = vld [vmem:[#allocation6 + $0x218] sm:$0xff]  }
  0x56   :  { %17596 = vmatpush3.bf16.msra.mxu0 %v19555_v36  ;;  %v19605_v36 = vld [vmem:[#allocation6 + $0x298] sm:$0xff]  }
  0x57   :  { %17618 = vmatpush3.bf16.msra.mxu1 %v19556_v37  ;;  %17625 = vmatprep.subr.bf16.mxu0 %v19558_v41  ;;  %v19606_v37 = vld [vmem:[#allocation6 + $0x260] sm:$0xff]   ;;  %v19610_v41 = vld [vmem:[#allocation6 + $0x268] sm:$0xff]   ;;  %v59_v52 = vld [vmem:[#allocation3 + $0x8] sm:$0xff] }
  0x58   :  { %17647 = vmatprep.subr.bf16.mxu1 %v19559_v42  ;;  %v19611_v42 = vld [vmem:[#allocation6 + $0x2e8] sm:$0xff]  }
  0x59   :  { %12654 = vmatmul.mubr.bf16.vlgmr.msra.gmra.mrb[0].mxu0 %v2942_v44  ;;  %v19613_v44 = vld [vmem:[#allocation6 + $0x2a8] sm:$0xff]  }
  0x5a   :  { %17626 = vmatpush3.bf16.msra.mxu0 %v19560_v46  ;;  %12694 = vmatmul.mubr.bf16.vlgmr.msra.gmra.mrb[0].mxu1 %v2964_v50  ;;  %v19615_v46 = vld [vmem:[#allocation6 + $0x2f0] sm:$0xff]   ;;  %v19619_v50 = vld [vmem:[#allocation6 + $0x2f8] sm:$0xff]  }
  0x5b   :  { %17627 = vmatprep.subr.bf16.mxu0 %v19562_v51  ;;  %17648 = vmatpush3.bf16.msra.mxu1 %v19561_v48  ;;  %v19617_v48 = vld [vmem:[#allocation6 + $0x2b0] sm:$0xff]   ;;  %v19620_v51 = vld [vmem:[#allocation6 + $0x238] sm:$0xff]  }
  0x5c   :  { %12733 = vmatprep.mubr.bf16.mxu0 %v2963_v54  ;;  %17649 = vmatprep.subr.bf16.mxu1 %v19563_v53  ;;  %v19621_v53 = vld [vmem:[#allocation6 + $0x2b8] sm:$0xff]   ;;  %v2975_v54 = vrot.slane %v59_v52, %v21113_v35 }
  0x5d   :  { %12773 = vmatprep.mubr.bf16.mxu1 %v2967_v57 }
  0x5e   :  { %17628 = vmatpush3.bf16.msra.mxu0 %v19564_v55  ;;  %v2968_v55 = vcombine.high %v59_v52, %v59_v52  ;;  %v2983_v57 = vcombine.high %v2975_v54, %v2975_v54  ;;  %v19671_v52 = vld [vmem:[#allocation6 + $0x460] sm:$0xff]  }
  0x5f   :  { %17629 = vmatprep.subr.bf16.mxu0 %v19566_v58  ;;  %17650 = vmatpush3.bf16.msra.mxu1 %v19565_v56  ;;  %v19622_v56 = vld [vmem:[#allocation6 + $0x340] sm:$0xff]   ;;  %v2991_v58 = vrot.slane %v2975_v54, %v21113_v35 }
  0x60   :  { %17651 = vmatprep.subr.bf16.mxu1 %v19567_v59  ;;  %v19623_v59 = vld [vmem:[#allocation6 + $0x3c0] sm:$0xff]  }
  0x61   :  { %v19673_v54 = vld [vmem:[#allocation6 + $0x420] sm:$0xff]  }
  0x62   :  { %17630 = vmatpush3.bf16.msra.mxu0 %v19568_v60  ;;  %v21129_v60 = vrot.slane %v2968_v55, %v21113_v35  ;;  %v19674_v55 = vld [vmem:[#allocation6 + $0x4a0] sm:$0xff]  }
  0x63   :  { %17631 = vmatprep.subr.bf16.mxu0 %v19570_v62  ;;  %17652 = vmatpush3.bf16.msra.mxu1 %v19569_v61  ;;  %v19624_v61 = vld [vmem:[#allocation6 + $0x300] sm:$0xff]   ;;  %v3005_v62 = vrot.slane %v2983_v57, %v21113_v35  ;;  %v19676_v57 = vld [vmem:[#allocation6 + $0x4e8] sm:$0xff]  }
  0x64   :  { %17653 = vmatprep.subr.bf16.mxu1 %v19571_v63  ;;  %v19625_v63 = vld [vmem:[#allocation6 + $0x380] sm:$0xff]  }
  0x66   :  { %17632 = vmatpush3.bf16.msra.mxu0 %v19572_v0  ;;  %v2984_v0 = vcombine.high %v21129_v60, %v21129_v60 }
  0x67   :  { %17633 = vmatprep.subr.bf16.mxu0 %v19574_v2  ;;  %17654 = vmatpush3.bf16.msra.mxu1 %v19573_v1  ;;  %v3013_v1 = vcombine.high %v2991_v58, %v2991_v58  ;;  %v19626_v2 = vld [vmem:[#allocation6 + $0x348] sm:$0xff]  }
  0x68   :  { %17655 = vmatprep.subr.bf16.mxu1 %v19575_v3  ;;  %v3015_v3 = vcombine.high %v3005_v62, %v3005_v62 }
  0x6a   :  { %17634 = vmatpush3.bf16.msra.mxu0 %v19576_v4  ;;  %v19627_v4 = vld [vmem:[#allocation6 + $0x3c8] sm:$0xff]  }
  0x6b   :  { %17635 = vmatprep.subr.bf16.mxu0 %v19578_v6  ;;  %17656 = vmatpush3.bf16.msra.mxu1 %v19577_v5  ;;  %v3012_v5 = vrot.slane %v2984_v0, %v21113_v35  ;;  %v19628_v6 = vld [vmem:[#allocation6 + $0x308] sm:$0xff]   ;;  %v19683_v0 = vld [vmem:[#allocation6 + $0x478] sm:$0xff]  }
  0x6c   :  { %17657 = vmatprep.subr.bf16.mxu1 %v19579_v7  ;;  %v19629_v7 = vld [vmem:[#allocation6 + $0x388] sm:$0xff]  }
  0x6e   :  { %17636 = vmatpush3.bf16.msra.mxu0 %v19580_v8  ;;  %v3016_v8 = vcombine.high %v3012_v5, %v3012_v5 }
  0x6f   :  { %17637 = vmatprep.subr.bf16.mxu0 %v19582_v10  ;;  %17658 = vmatpush3.bf16.msra.mxu1 %v19581_v9  ;;  %v19630_v9 = vld [vmem:[#allocation6 + $0x350] sm:$0xff]  }
  0x70   :  { %17659 = vmatprep.subr.bf16.mxu1 %v19583_v11  ;;  %v19631_v10 = vld [vmem:[#allocation6 + $0x3d0] sm:$0xff]  }
  0x71   :  { %v19632_v11 = vld [vmem:[#allocation6 + $0x310] sm:$0xff]  }
  0x72   :  { %17638 = vmatpush3.bf16.msra.mxu0 %v19584_v12  ;;  %v19633_v12 = vld [vmem:[#allocation6 + $0x390] sm:$0xff]  }
  0x73   :  { %17639 = vmatprep.subr.bf16.mxu0 %v19586_v14  ;;  %17660 = vmatpush3.bf16.msra.mxu1 %v19585_v13  ;;  %v19634_v13 = vld [vmem:[#allocation6 + $0x358] sm:$0xff]  }
  0x74   :  { %17661 = vmatprep.subr.bf16.mxu1 %v19587_v15  ;;  %v19635_v14 = vld [vmem:[#allocation6 + $0x3d8] sm:$0xff]  }
  0x75   :  { %v19636_v15 = vld [vmem:[#allocation6 + $0x318] sm:$0xff]  }
  0x76   :  { %17640 = vmatpush3.bf16.msra.mxu0 %v19588_v16  ;;  %v19637_v16 = vld [vmem:[#allocation6 + $0x398] sm:$0xff]  }
  0x77   :  { %17669 = vmatprep.subr.bf16.mxu0 %v19590_v19  ;;  %17662 = vmatpush3.bf16.msra.mxu1 %v19589_v17  ;;  %v19638_v17 = vld [vmem:[#allocation6 + $0x360] sm:$0xff]  }
  0x78   :  { %17691 = vmatprep.subr.bf16.mxu1 %v19591_v20  ;;  %v19640_v19 = vld [vmem:[#allocation6 + $0x320] sm:$0xff]  }
  0x79   :  { %12734 = vmatmul.mubr.bf16.vlgmr.msra.gmra.mrb[4].mxu0 %v2949_v18  ;;  %v19639_v18 = vld [vmem:[#allocation6 + $0x3e0] sm:$0xff]  }
  0x7a   :  { %17670 = vmatpush3.bf16.msra.mxu0 %v19592_v21  ;;  %12774 = vmatmul.mubr.bf16.vlgmr.msra.gmra.mrb[4].mxu1 %v2965_v23  ;;  %v19641_v20 = vld [vmem:[#allocation6 + $0x3a0] sm:$0xff]   ;;  %v19642_v21 = vld [vmem:[#allocation6 + $0x368] sm:$0xff]  }
  0x7b   :  { %17671 = vmatprep.subr.bf16.mxu0 %v19594_v24  ;;  %17692 = vmatpush3.bf16.msra.mxu1 %v19593_v22  ;;  %v19643_v22 = vld [vmem:[#allocation6 + $0x3e8] sm:$0xff]  }
  0x7c   :  { %17693 = vmatprep.subr.bf16.mxu1 %v19595_v25  ;;  %12813 = vmatprep.mubr.bf16.mxu0 %v3005_v62  ;;  %v19644_v23 = vld [vmem:[#allocation6 + $0x328] sm:$0xff]   ;;  %v19646_v25 = vld [vmem:[#allocation6 + $0x370] sm:$0xff]  }
  0x7d   :  { %12853 = vmatprep.mubr.bf16.mxu1 %v3015_v3  ;;  %v19645_v24 = vld [vmem:[#allocation6 + $0x3a8] sm:$0xff]   ;;  %v19681_v62 = vld [vmem:[#allocation6 + $0x430] sm:$0xff]   ;;  %v60_v3 = vld [vmem:[#allocation3 + $0x10] sm:$0xff] }
  0x7e   :  { %17672 = vmatpush3.bf16.msra.mxu0 %v19596_v26  ;;  %v19647_v26 = vld [vmem:[#allocation6 + $0x3f0] sm:$0xff]  }
  0x7f   :  { %17673 = vmatprep.subr.bf16.mxu0 %v19598_v28  ;;  %17694 = vmatpush3.bf16.msra.mxu1 %v19597_v27  ;;  %v19648_v27 = vld [vmem:[#allocation6 + $0x330] sm:$0xff]  }
  0x80   :  { %17695 = vmatprep.subr.bf16.mxu1 %v19599_v29  ;;  %v19649_v28 = vld [vmem:[#allocation6 + $0x3b0] sm:$0xff]   ;;  %v19650_v29 = vld [vmem:[#allocation6 + $0x378] sm:$0xff]  }
  0x82   :  { %17674 = vmatpush3.bf16.msra.mxu0 %v19600_v30  ;;  %v19651_v30 = vld [vmem:[#allocation6 + $0x3f8] sm:$0xff]  }
  0x83   :  { %17675 = vmatprep.subr.bf16.mxu0 %v19602_v32  ;;  %17696 = vmatpush3.bf16.msra.mxu1 %v19601_v31  ;;  %v19652_v31 = vld [vmem:[#allocation6 + $0x338] sm:$0xff]  }
  0x84   :  { %17697 = vmatprep.subr.bf16.mxu1 %v19603_v33  ;;  %v19653_v32 = vld [vmem:[#allocation6 + $0x3b8] sm:$0xff]   ;;  %v2998_v33 = vrot.slane %v21129_v60, %v21113_v35  ;;  %v19679_v60 = vld [vmem:[#allocation6 + $0x470] sm:$0xff]  }
  0x86   :  { %17676 = vmatpush3.bf16.msra.mxu0 %v19604_v34  ;;  %v19655_v34 = vld [vmem:[#allocation6 + $0x440] sm:$0xff]  }
  0x87   :  { %17677 = vmatprep.subr.bf16.mxu0 %v19606_v37  ;;  %17698 = vmatpush3.bf16.msra.mxu1 %v19605_v36  ;;  %v19656_v36 = vld [vmem:[#allocation6 + $0x4c0] sm:$0xff]  }
  0x88   :  { %17699 = vmatprep.subr.bf16.mxu1 %v19607_v38  ;;  %v19657_v37 = vld [vmem:[#allocation6 + $0x400] sm:$0xff]  }
  0x89   :  { %v19658_v38 = vld [vmem:[#allocation6 + $0x480] sm:$0xff]  }
  0x8a   :  { %17678 = vmatpush3.bf16.msra.mxu0 %v19608_v39  ;;  %v3014_v39 = vcombine.high %v2998_v33, %v2998_v33 }
  0x8b   :  { %17679 = vmatprep.subr.bf16.mxu0 %v19610_v41  ;;  %17700 = vmatpush3.bf16.msra.mxu1 %v19609_v40  ;;  %v19659_v40 = vld [vmem:[#allocation6 + $0x448] sm:$0xff]  }
  0x8c   :  { %17701 = vmatprep.subr.bf16.mxu1 %v19611_v42  ;;  %v19660_v41 = vld [vmem:[#allocation6 + $0x4c8] sm:$0xff]  }
  0x8d   :  { %v19661_v42 = vld [vmem:[#allocation6 + $0x408] sm:$0xff]  }
  0x8e   :  { %17680 = vmatpush3.bf16.msra.mxu0 %v19612_v43  ;;  %v19662_v43 = vld [vmem:[#allocation6 + $0x488] sm:$0xff]  }
  0x8f   :  { %17681 = vmatprep.subr.bf16.mxu0 %v19614_v45  ;;  %17702 = vmatpush3.bf16.msra.mxu1 %v19613_v44  ;;  %v19663_v44 = vld [vmem:[#allocation6 + $0x450] sm:$0xff]  }
  0x90   :  { %17703 = vmatprep.subr.bf16.mxu1 %v19615_v46  ;;  %v19664_v45 = vld [vmem:[#allocation6 + $0x4d0] sm:$0xff]  }
  0x91   :  { %v19665_v46 = vld [vmem:[#allocation6 + $0x410] sm:$0xff]  }
  0x92   :  { %17682 = vmatpush3.bf16.msra.mxu0 %v19616_v47  ;;  %v19666_v47 = vld [vmem:[#allocation6 + $0x490] sm:$0xff]  }
  0x93   :  { %17683 = vmatprep.subr.bf16.mxu0 %v19618_v49  ;;  %17704 = vmatpush3.bf16.msra.mxu1 %v19617_v48  ;;  %v19667_v48 = vld [vmem:[#allocation6 + $0x458] sm:$0xff]  }
  0x94   :  { %17705 = vmatprep.subr.bf16.mxu1 %v19619_v50  ;;  %v19668_v49 = vld [vmem:[#allocation6 + $0x4d8] sm:$0xff]  }
  0x95   :  { %v19669_v50 = vld [vmem:[#allocation6 + $0x418] sm:$0xff]  }
  0x96   :  { %17684 = vmatpush3.bf16.msra.mxu0 %v19620_v51  ;;  %v19670_v51 = vld [vmem:[#allocation6 + $0x498] sm:$0xff]  }
  0x97   :  { %17713 = vmatprep.subr.bf16.mxu0 %v19622_v56  ;;  %17706 = vmatpush3.bf16.msra.mxu1 %v19621_v53  ;;  %v19672_v53 = vld [vmem:[#allocation6 + $0x4e0] sm:$0xff]   ;;  %v19675_v56 = vld [vmem:[#allocation6 + $0x468] sm:$0xff]  }
  0x98   :  { %17735 = vmatprep.subr.bf16.mxu1 %v19623_v59  ;;  %v19678_v59 = vld [vmem:[#allocation6 + $0x4a8] sm:$0xff]  }
  0x99   :  { %12814 = vmatmul.mubr.bf16.vlgmr.msra.gmra.mrb[8].mxu0 %v2991_v58  ;;  %v19677_v58 = vld [vmem:[#allocation6 + $0x428] sm:$0xff]  }
  0x9a   :  { %17714 = vmatpush3.bf16.msra.mxu0 %v19624_v61  ;;  %12854 = vmatmul.mubr.bf16.vlgmr.msra.gmra.mrb[8].mxu1 %v3013_v1  ;;  %v19680_v61 = vld [vmem:[#allocation6 + $0x4f0] sm:$0xff]   ;;  %v19684_v1 = vld [vmem:[#allocation6 + $0x4f8] sm:$0xff]  }
  0x9b   :  { %17715 = vmatprep.subr.bf16.mxu0 %v19626_v2  ;;  %17736 = vmatpush3.bf16.msra.mxu1 %v19625_v63  ;;  %v19682_v63 = vld [vmem:[#allocation6 + $0x4b0] sm:$0xff]   ;;  %v19685_v2 = vld [vmem:[#allocation6 + $0x438] sm:$0xff]  }
  0x9c   :  { %12893 = vmatprep.mubr.bf16.mxu0 %v3012_v5  ;;  %17737 = vmatprep.subr.bf16.mxu1 %v19627_v4  ;;  %v19686_v4 = vld [vmem:[#allocation6 + $0x4b8] sm:$0xff]   ;;  %v3024_v5 = vrot.slane %v60_v3, %v21113_v35 }
  0x9d   :  { %12933 = vmatprep.mubr.bf16.mxu1 %v3016_v8 }
  0x9e   :  { %17716 = vmatpush3.bf16.msra.mxu0 %v19628_v6  ;;  %v3017_v6 = vcombine.high %v60_v3, %v60_v3  ;;  %v3032_v8 = vcombine.high %v3024_v5, %v3024_v5  ;;  %v19736_v3 = vld [vmem:[#allocation6 + $0x660] sm:$0xff]  }
  0x9f   :  { %17717 = vmatprep.subr.bf16.mxu0 %v19630_v9  ;;  %17738 = vmatpush3.bf16.msra.mxu1 %v19629_v7  ;;  %v19687_v7 = vld [vmem:[#allocation6 + $0x540] sm:$0xff]   ;;  %v3040_v9 = vrot.slane %v3024_v5, %v21113_v35 }
  0xa0   :  { %17739 = vmatprep.subr.bf16.mxu1 %v19631_v10  ;;  %v19688_v10 = vld [vmem:[#allocation6 + $0x5c0] sm:$0xff]  }
  0xa1   :  { %v19738_v5 = vld [vmem:[#allocation6 + $0x620] sm:$0xff]  }
  0xa2   :  { %17718 = vmatpush3.bf16.msra.mxu0 %v19632_v11  ;;  %v21140_v11 = vrot.slane %v3017_v6, %v21113_v35  ;;  %v19739_v6 = vld [vmem:[#allocation6 + $0x6a0] sm:$0xff]  }
  0xa3   :  { %17719 = vmatprep.subr.bf16.mxu0 %v19634_v13  ;;  %17740 = vmatpush3.bf16.msra.mxu1 %v19633_v12  ;;  %v19689_v12 = vld [vmem:[#allocation6 + $0x500] sm:$0xff]   ;;  %v3054_v13 = vrot.slane %v3032_v8, %v21113_v35  ;;  %v19741_v8 = vld [vmem:[#allocation6 + $0x6e8] sm:$0xff]  }
  0xa4   :  { %17741 = vmatprep.subr.bf16.mxu1 %v19635_v14  ;;  %v19690_v14 = vld [vmem:[#allocation6 + $0x580] sm:$0xff]  }
  0xa6   :  { %17720 = vmatpush3.bf16.msra.mxu0 %v19636_v15  ;;  %v3033_v15 = vcombine.high %v21140_v11, %v21140_v11 }
  0xa7   :  { %17721 = vmatprep.subr.bf16.mxu0 %v19638_v17  ;;  %17742 = vmatpush3.bf16.msra.mxu1 %v19637_v16  ;;  %v3062_v16 = vcombine.high %v3040_v9, %v3040_v9  ;;  %v19691_v17 = vld [vmem:[#allocation6 + $0x548] sm:$0xff]  }
  0xa8   :  { %17743 = vmatprep.subr.bf16.mxu1 %v19639_v18  ;;  %v3064_v18 = vcombine.high %v3054_v13, %v3054_v13 }
  0xaa   :  { %17722 = vmatpush3.bf16.msra.mxu0 %v19640_v19  ;;  %v19692_v19 = vld [vmem:[#allocation6 + $0x5c8] sm:$0xff]  }
  0xab   :  { %17723 = vmatprep.subr.bf16.mxu0 %v19642_v21  ;;  %17744 = vmatpush3.bf16.msra.mxu1 %v19641_v20  ;;  %v3061_v20 = vrot.slane %v3033_v15, %v21113_v35  ;;  %v19693_v21 = vld [vmem:[#allocation6 + $0x508] sm:$0xff]   ;;  %v19748_v15 = vld [vmem:[#allocation6 + $0x678] sm:$0xff]  }
  0xac   :  { %17745 = vmatprep.subr.bf16.mxu1 %v19643_v22  ;;  %v19694_v22 = vld [vmem:[#allocation6 + $0x588] sm:$0xff]  }
  0xae   :  { %17724 = vmatpush3.bf16.msra.mxu0 %v19644_v23  ;;  %v3065_v23 = vcombine.high %v3061_v20, %v3061_v20 }
  0xaf   :  { %17725 = vmatprep.subr.bf16.mxu0 %v19646_v25  ;;  %17746 = vmatpush3.bf16.msra.mxu1 %v19645_v24  ;;  %v19695_v24 = vld [vmem:[#allocation6 + $0x550] sm:$0xff]  }
  0xb0   :  { %17747 = vmatprep.subr.bf16.mxu1 %v19647_v26  ;;  %v19696_v25 = vld [vmem:[#allocation6 + $0x5d0] sm:$0xff]  }
  0xb1   :  { %v19697_v26 = vld [vmem:[#allocation6 + $0x510] sm:$0xff]  }
  0xb2   :  { %17726 = vmatpush3.bf16.msra.mxu0 %v19648_v27  ;;  %v19698_v27 = vld [vmem:[#allocation6 + $0x590] sm:$0xff]  }
  0xb3   :  { %17727 = vmatprep.subr.bf16.mxu0 %v19650_v29  ;;  %17748 = vmatpush3.bf16.msra.mxu1 %v19649_v28  ;;  %v19699_v28 = vld [vmem:[#allocation6 + $0x558] sm:$0xff]  }
  0xb4   :  { %17749 = vmatprep.subr.bf16.mxu1 %v19651_v30  ;;  %v19700_v29 = vld [vmem:[#allocation6 + $0x5d8] sm:$0xff]  }
  0xb5   :  { %v19701_v30 = vld [vmem:[#allocation6 + $0x518] sm:$0xff]  }
  0xb6   :  { %17728 = vmatpush3.bf16.msra.mxu0 %v19652_v31  ;;  %v19702_v31 = vld [vmem:[#allocation6 + $0x598] sm:$0xff]  }
  0xb7   :  { %17757 = vmatprep.subr.bf16.mxu0 %v19655_v34  ;;  %17750 = vmatpush3.bf16.msra.mxu1 %v19653_v32  ;;  %v19703_v32 = vld [vmem:[#allocation6 + $0x560] sm:$0xff]  }
  0xb8   :  { %17779 = vmatprep.subr.bf16.mxu1 %v19656_v36  ;;  %v19705_v34 = vld [vmem:[#allocation6 + $0x520] sm:$0xff]  }
  0xb9   :  { %12894 = vmatmul.mubr.bf16.vlgmr.msra.gmra.mrb[12].mxu0 %v2998_v33  ;;  %v19704_v33 = vld [vmem:[#allocation6 + $0x5e0] sm:$0xff]  }
  0xba   :  { %17758 = vmatpush3.bf16.msra.mxu0 %v19657_v37  ;;  %12934 = vmatmul.mubr.bf16.vlgmr.msra.gmra.mrb[12].mxu1 %v3014_v39  ;;  %v19706_v36 = vld [vmem:[#allocation6 + $0x5a0] sm:$0xff]   ;;  %v19707_v37 = vld [vmem:[#allocation6 + $0x568] sm:$0xff]  }
  0xbb   :  { %17759 = vmatprep.subr.bf16.mxu0 %v19659_v40  ;;  %17780 = vmatpush3.bf16.msra.mxu1 %v19658_v38  ;;  %v19708_v38 = vld [vmem:[#allocation6 + $0x5e8] sm:$0xff]  }
  0xbc   :  { %17781 = vmatprep.subr.bf16.mxu1 %v19660_v41  ;;  %12973 = vmatprep.mubr.bf16.mxu0 %v3054_v13  ;;  %v19709_v39 = vld [vmem:[#allocation6 + $0x528] sm:$0xff]   ;;  %v19711_v41 = vld [vmem:[#allocation6 + $0x570] sm:$0xff]  }
  0xbd   :  { %13013 = vmatprep.mubr.bf16.mxu1 %v3064_v18  ;;  %v19710_v40 = vld [vmem:[#allocation6 + $0x5a8] sm:$0xff]   ;;  %v19746_v13 = vld [vmem:[#allocation6 + $0x630] sm:$0xff]  }
  0xbe   :  { %17760 = vmatpush3.bf16.msra.mxu0 %v19661_v42  ;;  %v19712_v42 = vld [vmem:[#allocation6 + $0x5f0] sm:$0xff]   ;;  %v61_v18 = vld [vmem:[#allocation3 + $0x18] sm:$0xff] }
  0xbf   :  { %17761 = vmatprep.subr.bf16.mxu0 %v19663_v44  ;;  %17782 = vmatpush3.bf16.msra.mxu1 %v19662_v43  ;;  %v19713_v43 = vld [vmem:[#allocation6 + $0x530] sm:$0xff]  }
  0xc0   :  { %17783 = vmatprep.subr.bf16.mxu1 %v19664_v45  ;;  %v19714_v44 = vld [vmem:[#allocation6 + $0x5b0] sm:$0xff]   ;;  %v19715_v45 = vld [vmem:[#allocation6 + $0x578] sm:$0xff]  }
  0xc2   :  { %17762 = vmatpush3.bf16.msra.mxu0 %v19665_v46  ;;  %v19716_v46 = vld [vmem:[#allocation6 + $0x5f8] sm:$0xff]  }
  0xc3   :  { %17763 = vmatprep.subr.bf16.mxu0 %v19667_v48  ;;  %17784 = vmatpush3.bf16.msra.mxu1 %v19666_v47  ;;  %v19717_v47 = vld [vmem:[#allocation6 + $0x538] sm:$0xff]  }
  0xc4   :  { %17785 = vmatprep.subr.bf16.mxu1 %v19668_v49  ;;  %v19718_v48 = vld [vmem:[#allocation6 + $0x5b8] sm:$0xff]   ;;  %v3047_v49 = vrot.slane %v21140_v11, %v21113_v35  ;;  %v19744_v11 = vld [vmem:[#allocation6 + $0x670] sm:$0xff]  }
  0xc6   :  { %17764 = vmatpush3.bf16.msra.mxu0 %v19669_v50  ;;  %v19720_v50 = vld [vmem:[#allocation6 + $0x640] sm:$0xff]  }
  0xc7   :  { %17765 = vmatprep.subr.bf16.mxu0 %v19671_v52  ;;  %17786 = vmatpush3.bf16.msra.mxu1 %v19670_v51  ;;  %v19721_v51 = vld [vmem:[#allocation6 + $0x6c0] sm:$0xff]  }
  0xc8   :  { %17787 = vmatprep.subr.bf16.mxu1 %v19672_v53  ;;  %v19722_v52 = vld [vmem:[#allocation6 + $0x600] sm:$0xff]  }
  0xc9   :  { %v19723_v53 = vld [vmem:[#allocation6 + $0x680] sm:$0xff]  }
  0xca   :  { %17766 = vmatpush3.bf16.msra.mxu0 %v19673_v54  ;;  %v3063_v54 = vcombine.high %v3047_v49, %v3047_v49 }
  0xcb   :  { %17767 = vmatprep.subr.bf16.mxu0 %v19675_v56  ;;  %17788 = vmatpush3.bf16.msra.mxu1 %v19674_v55  ;;  %v19724_v55 = vld [vmem:[#allocation6 + $0x648] sm:$0xff]  }
  0xcc   :  { %17789 = vmatprep.subr.bf16.mxu1 %v19676_v57  ;;  %v19725_v56 = vld [vmem:[#allocation6 + $0x6c8] sm:$0xff]  }
  0xcd   :  { %v19726_v57 = vld [vmem:[#allocation6 + $0x608] sm:$0xff]  }
  0xce   :  { %17768 = vmatpush3.bf16.msra.mxu0 %v19677_v58  ;;  %v19727_v58 = vld [vmem:[#allocation6 + $0x688] sm:$0xff]  }
  0xcf   :  { %17769 = vmatprep.subr.bf16.mxu0 %v19679_v60  ;;  %17790 = vmatpush3.bf16.msra.mxu1 %v19678_v59  ;;  %v19728_v59 = vld [vmem:[#allocation6 + $0x650] sm:$0xff]  }
  0xd0   :  { %17791 = vmatprep.subr.bf16.mxu1 %v19680_v61  ;;  %v19729_v60 = vld [vmem:[#allocation6 + $0x6d0] sm:$0xff]  }
  0xd1   :  { %v19730_v61 = vld [vmem:[#allocation6 + $0x610] sm:$0xff]  }
  0xd2   :  { %17770 = vmatpush3.bf16.msra.mxu0 %v19681_v62  ;;  %v19731_v62 = vld [vmem:[#allocation6 + $0x690] sm:$0xff]  }
  0xd3   :  { %17771 = vmatprep.subr.bf16.mxu0 %v19683_v0  ;;  %17792 = vmatpush3.bf16.msra.mxu1 %v19682_v63  ;;  %v19732_v63 = vld [vmem:[#allocation6 + $0x658] sm:$0xff]  }
  0xd4   :  { %17793 = vmatprep.subr.bf16.mxu1 %v19684_v1  ;;  %v19733_v0 = vld [vmem:[#allocation6 + $0x6d8] sm:$0xff]  }
  0xd5   :  { %v19734_v1 = vld [vmem:[#allocation6 + $0x618] sm:$0xff]  }
  0xd6   :  { %17772 = vmatpush3.bf16.msra.mxu0 %v19685_v2  ;;  %v19735_v2 = vld [vmem:[#allocation6 + $0x698] sm:$0xff]  }
  0xd7   :  { %17801 = vmatprep.subr.bf16.mxu0 %v19687_v7  ;;  %17794 = vmatpush3.bf16.msra.mxu1 %v19686_v4  ;;  %v19737_v4 = vld [vmem:[#allocation6 + $0x6e0] sm:$0xff]   ;;  %v19740_v7 = vld [vmem:[#allocation6 + $0x668] sm:$0xff]  }
  0xd8   :  { %17823 = vmatprep.subr.bf16.mxu1 %v19688_v10  ;;  %v19743_v10 = vld [vmem:[#allocation6 + $0x6a8] sm:$0xff]  }
  0xd9   :  { %12974 = vmatmul.mubr.bf16.vlgmr.msra.gmra.mrb[16].mxu0 %v3040_v9  ;;  %v19742_v9 = vld [vmem:[#allocation6 + $0x628] sm:$0xff]  }
  0xda   :  { %17802 = vmatpush3.bf16.msra.mxu0 %v19689_v12  ;;  %13014 = vmatmul.mubr.bf16.vlgmr.msra.gmra.mrb[16].mxu1 %v3062_v16  ;;  %v19745_v12 = vld [vmem:[#allocation6 + $0x6f0] sm:$0xff]   ;;  %v19749_v16 = vld [vmem:[#allocation6 + $0x6f8] sm:$0xff]  }
  0xdb   :  { %17803 = vmatprep.subr.bf16.mxu0 %v19691_v17  ;;  %17824 = vmatpush3.bf16.msra.mxu1 %v19690_v14  ;;  %v19747_v14 = vld [vmem:[#allocation6 + $0x6b0] sm:$0xff]   ;;  %v19750_v17 = vld [vmem:[#allocation6 + $0x638] sm:$0xff]  }
  0xdc   :  { %13053 = vmatprep.mubr.bf16.mxu0 %v3061_v20  ;;  %17825 = vmatprep.subr.bf16.mxu1 %v19692_v19  ;;  %v3073_v19 = vrot.slane %v61_v18, %v21113_v35  ;;  %v19752_v20 = vld [vmem:[#allocation6 + $0x740] sm:$0xff]  }
  0xdd   :  { %13093 = vmatprep.mubr.bf16.mxu1 %v3065_v23 }
  0xde   :  { %17804 = vmatpush3.bf16.msra.mxu0 %v19693_v21  ;;  %v3066_v21 = vcombine.high %v61_v18, %v61_v18  ;;  %v3081_v23 = vcombine.high %v3073_v19, %v3073_v19  ;;  %v19790_v18 = vld [vmem:[#allocation6 + $0x8c8] sm:$0xff]  }
  0xdf   :  { %17805 = vmatprep.subr.bf16.mxu0 %v19695_v24  ;;  %17826 = vmatpush3.bf16.msra.mxu1 %v19694_v22  ;;  %v19751_v22 = vld [vmem:[#allocation6 + $0x6b8] sm:$0xff]   ;;  %v3089_v24 = vrot.slane %v3073_v19, %v21113_v35  ;;  %v19791_v19 = vld [vmem:[#allocation6 + $0x808] sm:$0xff]  }
  0xe0   :  { %17827 = vmatprep.subr.bf16.mxu1 %v19696_v25  ;;  %v19753_v25 = vld [vmem:[#allocation6 + $0x7c0] sm:$0xff]  }
  0xe2   :  { %17806 = vmatpush3.bf16.msra.mxu0 %v19697_v26  ;;  %v21151_v26 = vrot.slane %v3066_v21, %v21113_v35  ;;  %v19792_v21 = vld [vmem:[#allocation6 + $0x888] sm:$0xff]  }
  0xe3   :  { %17807 = vmatprep.subr.bf16.mxu0 %v19699_v28  ;;  %17828 = vmatpush3.bf16.msra.mxu1 %v19698_v27  ;;  %v3103_v27 = vrot.slane %v3081_v23, %v21113_v35  ;;  %v19754_v28 = vld [vmem:[#allocation6 + $0x700] sm:$0xff]   ;;  %v19795_v23 = vld [vmem:[#allocation6 + $0x810] sm:$0xff]  }
  0xe4   :  { %17829 = vmatprep.subr.bf16.mxu1 %v19700_v29  ;;  %v3082_v29 = vcombine.high %v21151_v26, %v21151_v26 }
  0xe6   :  { %17808 = vmatpush3.bf16.msra.mxu0 %v19701_v30  ;;  %v3111_v30 = vcombine.high %v3089_v24, %v3089_v24 }
  0xe7   :  { %17809 = vmatprep.subr.bf16.mxu0 %v19703_v32  ;;  %17830 = vmatpush3.bf16.msra.mxu1 %v19702_v31  ;;  %v19756_v31 = vld [vmem:[#allocation6 + $0x748] sm:$0xff]   ;;  %v3113_v32 = vcombine.high %v3103_v27, %v3103_v27 }
  0xe8   :  { %17831 = vmatprep.subr.bf16.mxu1 %v19704_v33  ;;  %v19755_v33 = vld [vmem:[#allocation6 + $0x780] sm:$0xff]  }
  0xea   :  { %17810 = vmatpush3.bf16.msra.mxu0 %v19705_v34  ;;  %v3110_v34 = vrot.slane %v3082_v29, %v21113_v35  ;;  %v19800_v29 = vld [vmem:[#allocation6 + $0x898] sm:$0xff]  }
  0xeb   :  { %17811 = vmatprep.subr.bf16.mxu0 %v19707_v37  ;;  %17832 = vmatpush3.bf16.msra.mxu1 %v19706_v36  ;;  %v19757_v36 = vld [vmem:[#allocation6 + $0x7c8] sm:$0xff]  }
  0xec   :  { %17833 = vmatprep.subr.bf16.mxu1 %v19708_v38  ;;  %v19758_v37 = vld [vmem:[#allocation6 + $0x708] sm:$0xff]   ;;  %v3114_v38 = vcombine.high %v3110_v34, %v3110_v34 }
  0xee   :  { %17812 = vmatpush3.bf16.msra.mxu0 %v19709_v39  ;;  %v19760_v39 = vld [vmem:[#allocation6 + $0x750] sm:$0xff]  }
  0xef   :  { %17813 = vmatprep.subr.bf16.mxu0 %v19711_v41  ;;  %17834 = vmatpush3.bf16.msra.mxu1 %v19710_v40  ;;  %v19759_v40 = vld [vmem:[#allocation6 + $0x788] sm:$0xff]   ;;  %v19761_v41 = vld [vmem:[#allocation6 + $0x7d0] sm:$0xff]  }
  0xf0   :  { %17835 = vmatprep.subr.bf16.mxu1 %v19712_v42  ;;  %v19762_v42 = vld [vmem:[#allocation6 + $0x710] sm:$0xff]  }
  0xf2   :  { %17814 = vmatpush3.bf16.msra.mxu0 %v19713_v43  ;;  %v19764_v43 = vld [vmem:[#allocation6 + $0x758] sm:$0xff]  }
  0xf3   :  { %17815 = vmatprep.subr.bf16.mxu0 %v19715_v45  ;;  %17836 = vmatpush3.bf16.msra.mxu1 %v19714_v44  ;;  %v19763_v44 = vld [vmem:[#allocation6 + $0x790] sm:$0xff]   ;;  %v19765_v45 = vld [vmem:[#allocation6 + $0x7d8] sm:$0xff]  }
  0xf4   :  { %17837 = vmatprep.subr.bf16.mxu1 %v19716_v46  ;;  %v19766_v46 = vld [vmem:[#allocation6 + $0x718] sm:$0xff]  }
  0xf6   :  { %17816 = vmatpush3.bf16.msra.mxu0 %v19717_v47  ;;  %v19768_v47 = vld [vmem:[#allocation6 + $0x760] sm:$0xff]  }
  0xf7   :  { %17845 = vmatprep.subr.bf16.mxu0 %v19720_v50  ;;  %17838 = vmatpush3.bf16.msra.mxu1 %v19718_v48  ;;  %v19767_v48 = vld [vmem:[#allocation6 + $0x798] sm:$0xff]   ;;  %v19770_v50 = vld [vmem:[#allocation6 + $0x720] sm:$0xff]  }
  0xf8   :  { %17867 = vmatprep.subr.bf16.mxu1 %v19721_v51  ;;  %v19772_v51 = vld [vmem:[#allocation6 + $0x768] sm:$0xff]  }
  0xf9   :  { %13054 = vmatmul.mubr.bf16.vlgmr.msra.gmra.mrb[20].mxu0 %v3047_v49  ;;  %v19769_v49 = vld [vmem:[#allocation6 + $0x7e0] sm:$0xff]  }
  0xfa   :  { %17846 = vmatpush3.bf16.msra.mxu0 %v19722_v52  ;;  %13094 = vmatmul.mubr.bf16.vlgmr.msra.gmra.mrb[20].mxu1 %v3063_v54  ;;  %v19771_v52 = vld [vmem:[#allocation6 + $0x7a0] sm:$0xff]   ;;  %v19774_v54 = vld [vmem:[#allocation6 + $0x728] sm:$0xff]  }
  0xfb   :  { %17847 = vmatprep.subr.bf16.mxu0 %v19724_v55  ;;  %17868 = vmatpush3.bf16.msra.mxu1 %v19723_v53  ;;  %v19773_v53 = vld [vmem:[#allocation6 + $0x7e8] sm:$0xff]  }
  0xfc   :  { %17869 = vmatprep.subr.bf16.mxu1 %v19725_v56  ;;  %13133 = vmatprep.mubr.bf16.mxu0 %v3103_v27  ;;  %v19776_v56 = vld [vmem:[#allocation6 + $0x770] sm:$0xff]   ;;  %v19799_v27 = vld [vmem:[#allocation6 + $0x818] sm:$0xff]  }
  0xfd   :  { %13173 = vmatprep.mubr.bf16.mxu1 %v3113_v32  ;;  %v19805_v32 = vld [vmem:[#allocation6 + $0x868] sm:$0xff]  }
  0xfe   :  { %17848 = vmatpush3.bf16.msra.mxu0 %v19726_v57 }
  0xff   :  { %17849 = vmatprep.subr.bf16.mxu0 %v19728_v59  ;;  %17870 = vmatpush3.bf16.msra.mxu1 %v19727_v58  ;;  %v19775_v58 = vld [vmem:[#allocation6 + $0x7a8] sm:$0xff]  }
 0x100   :  { %17871 = vmatprep.subr.bf16.mxu1 %v19729_v60 }
 0x102   :  { %17850 = vmatpush3.bf16.msra.mxu0 %v19730_v61 }
 0x103   :  { %17851 = vmatprep.subr.bf16.mxu0 %v19732_v63  ;;  %17872 = vmatpush3.bf16.msra.mxu1 %v19731_v62  ;;  %v19777_v62 = vld [vmem:[#allocation6 + $0x7f0] sm:$0xff]  }
 0x104   :  { %17873 = vmatprep.subr.bf16.mxu1 %v19733_v0  ;;  %v19778_v63 = vld [vmem:[#allocation6 + $0x730] sm:$0xff]  }
 0x106   :  { %17852 = vmatpush3.bf16.msra.mxu0 %v19734_v1 }
 0x107   :  { %17853 = vmatprep.subr.bf16.mxu0 %v19736_v3  ;;  %17874 = vmatpush3.bf16.msra.mxu1 %v19735_v2 }
 0x108   :  { %17875 = vmatprep.subr.bf16.mxu1 %v19737_v4  ;;  %v19780_v4 = vld [vmem:[#allocation6 + $0x778] sm:$0xff]  }
 0x10a   :  { %17854 = vmatpush3.bf16.msra.mxu0 %v19738_v5 }
 0x10b   :  { %17855 = vmatprep.subr.bf16.mxu0 %v19740_v7  ;;  %17876 = vmatpush3.bf16.msra.mxu1 %v19739_v6  ;;  %v19779_v6 = vld [vmem:[#allocation6 + $0x7b0] sm:$0xff]  }
 0x10c   :  { %17877 = vmatprep.subr.bf16.mxu1 %v19741_v8  ;;  %v19781_v8 = vld [vmem:[#allocation6 + $0x7f8] sm:$0xff]  }
 0x10e   :  { %17856 = vmatpush3.bf16.msra.mxu0 %v19742_v9  ;;  %v19782_v9 = vld [vmem:[#allocation6 + $0x738] sm:$0xff]  }
 0x10f   :  { %17857 = vmatprep.subr.bf16.mxu0 %v19744_v11  ;;  %17878 = vmatpush3.bf16.msra.mxu1 %v19743_v10  ;;  %v3096_v10 = vrot.slane %v21151_v26, %v21113_v35  ;;  %v19785_v11 = vld [vmem:[#allocation6 + $0x840] sm:$0xff]   ;;  %v19798_v26 = vld [vmem:[#allocation6 + $0x8d8] sm:$0xff]  }
 0x110   :  { %17879 = vmatprep.subr.bf16.mxu1 %v19745_v12  ;;  %v19783_v12 = vld [vmem:[#allocation6 + $0x7b8] sm:$0xff]  }
 0x112   :  { %17858 = vmatpush3.bf16.msra.mxu0 %v19746_v13  ;;  %v19786_v13 = vld [vmem:[#allocation6 + $0x8c0] sm:$0xff]  }
 0x113   :  { %17859 = vmatprep.subr.bf16.mxu0 %v19748_v15  ;;  %17880 = vmatpush3.bf16.msra.mxu1 %v19747_v14  ;;  %v19787_v14 = vld [vmem:[#allocation6 + $0x800] sm:$0xff]   ;;  %v3112_v15 = vcombine.high %v3096_v10, %v3096_v10 }
 0x114   :  { %17881 = vmatprep.subr.bf16.mxu1 %v19749_v16  ;;  %v19789_v16 = vld [vmem:[#allocation6 + $0x848] sm:$0xff]  }
 0x116   :  { %17860 = vmatpush3.bf16.msra.mxu0 %v19750_v17  ;;  %v19788_v17 = vld [vmem:[#allocation6 + $0x880] sm:$0xff]  }
 0x117   :  { %17889 = vmatprep.subr.bf16.mxu0 %v19752_v20  ;;  %17882 = vmatpush3.bf16.msra.mxu1 %v19751_v22  ;;  %v19793_v20 = vld [vmem:[#allocation6 + $0x850] sm:$0xff]  }
 0x118   :  { %17911 = vmatprep.subr.bf16.mxu1 %v19753_v25  ;;  %v19794_v22 = vld [vmem:[#allocation6 + $0x8d0] sm:$0xff]  }
 0x119   :  { %13134 = vmatmul.mubr.bf16.vlgmr.msra.gmra.mrb[24].mxu0 %v3089_v24  ;;  %v19797_v24 = vld [vmem:[#allocation6 + $0x858] sm:$0xff]   ;;  %v19796_v25 = vld [vmem:[#allocation6 + $0x890] sm:$0xff]  }
 0x11a   :  { %17890 = vmatpush3.bf16.msra.mxu0 %v19754_v28  ;;  %13174 = vmatmul.mubr.bf16.vlgmr.msra.gmra.mrb[24].mxu1 %v3111_v30  ;;  %v19801_v28 = vld [vmem:[#allocation6 + $0x860] sm:$0xff]  }
 0x11b   :  { %17891 = vmatprep.subr.bf16.mxu0 %v19756_v31  ;;  %17912 = vmatpush3.bf16.msra.mxu1 %v19755_v33  ;;  %v19802_v30 = vld [vmem:[#allocation6 + $0x8e0] sm:$0xff]  }
 0x11c   :  { %13213 = vmatprep.mubr.bf16.mxu0 %v3110_v34  ;;  %17913 = vmatprep.subr.bf16.mxu1 %v19757_v36  ;;  %v19803_v31 = vld [vmem:[#allocation6 + $0x820] sm:$0xff]   ;;  %v19806_v34 = vld [vmem:[#allocation6 + $0x8e8] sm:$0xff]  }
 0x11d   :  { %13253 = vmatprep.mubr.bf16.mxu1 %v3114_v38  ;;  %v19804_v33 = vld [vmem:[#allocation6 + $0x8a0] sm:$0xff]   ;;  %v19807_v36 = vld [vmem:[#allocation6 + $0x828] sm:$0xff]   ;;  %v19809_v38 = vld [vmem:[#allocation6 + $0x870] sm:$0xff]  }
 0x11e   :  { %17892 = vmatpush3.bf16.msra.mxu0 %v19758_v37 }
 0x11f   :  { %17893 = vmatprep.subr.bf16.mxu0 %v19760_v39  ;;  %17914 = vmatpush3.bf16.msra.mxu1 %v19759_v40  ;;  %v19808_v40 = vld [vmem:[#allocation6 + $0x8a8] sm:$0xff]  }
 0x120   :  { %17915 = vmatprep.subr.bf16.mxu1 %v19761_v41 }
 0x122   :  { %17894 = vmatpush3.bf16.msra.mxu0 %v19762_v42 }
 0x123   :  { %17895 = vmatprep.subr.bf16.mxu0 %v19764_v43  ;;  %17916 = vmatpush3.bf16.msra.mxu1 %v19763_v44  ;;  %v19810_v44 = vld [vmem:[#allocation6 + $0x8f0] sm:$0xff]  }
 0x124   :  { %17917 = vmatprep.subr.bf16.mxu1 %v19765_v45  ;;  %v19811_v45 = vld [vmem:[#allocation6 + $0x830] sm:$0xff]  }
 0x126   :  { %17896 = vmatpush3.bf16.msra.mxu0 %v19766_v46 }
 0x127   :  { %17897 = vmatprep.subr.bf16.mxu0 %v19768_v47  ;;  %17918 = vmatpush3.bf16.msra.mxu1 %v19767_v48  ;;  %v19812_v48 = vld [vmem:[#allocation6 + $0x8b0] sm:$0xff]  }
 0x128   :  { %17919 = vmatprep.subr.bf16.mxu1 %v19769_v49 }
 0x12a   :  { %17898 = vmatpush3.bf16.msra.mxu0 %v19770_v50 }
 0x12b   :  { %17899 = vmatprep.subr.bf16.mxu0 %v19772_v51  ;;  %17920 = vmatpush3.bf16.msra.mxu1 %v19771_v52  ;;  %v19813_v52 = vld [vmem:[#allocation6 + $0x878] sm:$0xff]  }
 0x12c   :  { %v17597_v55 = vpop.f32.mrb[0].mxu0  ;;  %17921 = vmatprep.subr.bf16.mxu1 %v19773_v53 }
 0x12d   :  { %v17598_v57 = vpop.f32.mrb[1].mxu0  ;;  %v17619_v59 = vpop.f32.mrb[0].mxu1 }
 0x12e   :  { %v17599_v60 = vadd.f32 %v17598_v57, %v17597_v55  ;;  %v17600_v61 = vpop.f32.mrb[2].mxu0  ;;  %v17620_v0 = vpop.f32.mrb[1].mxu1  ;;  %17900 = vmatpush3.bf16.msra.mxu0 %v19774_v54  ;;  %v19814_v54 = vld [vmem:[#allocation6 + $0x8f8] sm:$0xff]   ;;  %v62_v57 = vld [vmem:[#allocation3 + $0x20] sm:$0xff] }
 0x12f   :  { %v17601_v1 = vpop.f32.mrb[3].mxu0  ;;  %v17621_v2 = vadd.f32 %v17620_v0, %v17619_v59  ;;  %v17622_v3 = vpop.f32.mrb[2].mxu1  ;;  %17901 = vmatprep.subr.bf16.mxu0 %v19776_v56  ;;  %17922 = vmatpush3.bf16.msra.mxu1 %v19775_v58  ;;  %v19815_v56 = vld [vmem:[#allocation6 + $0x838] sm:$0xff]   ;;  %v3122_v58 = vrot.slane %v62_v57, %v21113_v35  ;;  %v19817_v59 = vld [vmem:[#allocation6 + $0x940] sm:$0xff]  }
 0x130   :  { %v17623_v5 = vpop.f32.mrb[3].mxu1  ;;  %17923 = vmatprep.subr.bf16.mxu1 %v19777_v62  ;;  %v19816_v61 = vld [vmem:[#allocation6 + $0x8b8] sm:$0xff]   ;;  %v19818_v0 = vld [vmem:[#allocation6 + $0x9c0] sm:$0xff]  }
 0x131   :  { %v21157_v7 = vadd.f32 %v17621_v2, %v17599_v60  ;;  %v3115_v60 = vcombine.high %v62_v57, %v62_v57  ;;  %v3130_v62 = vcombine.high %v3122_v58, %v3122_v58  ;;  %v19819_v2 = vld [vmem:[#allocation6 + $0x900] sm:$0xff]   ;;  %v19854_v57 = vld [vmem:[#allocation6 + $0xa48] sm:$0xff]  }
 0x132   :  { %17902 = vmatpush3.bf16.msra.mxu0 %v19778_v63  ;;  %v3138_v63 = vrot.slane %v3122_v58, %v21113_v35  ;;  %v19855_v58 = vld [vmem:[#allocation6 + $0xac8] sm:$0xff]  }
 0x133   :  { %17903 = vmatprep.subr.bf16.mxu0 %v19780_v4  ;;  %17924 = vmatpush3.bf16.msra.mxu1 %v19779_v6  ;;  %v21167_v1 = vrot.slane %v3115_v60, %v21113_v35  ;;  %v3152_v3 = vrot.slane %v3130_v62, %v21113_v35  ;;  %v19820_v4 = vld [vmem:[#allocation6 + $0x980] sm:$0xff]   ;;  %v19857_v60 = vld [vmem:[#allocation6 + $0xa88] sm:$0xff]   ;;  %v19859_v62 = vld [vmem:[#allocation6 + $0xad0] sm:$0xff]  }
 0x134   :  { %17925 = vmatprep.subr.bf16.mxu1 %v19781_v8  ;;  %v3160_v6 = vcombine.high %v3138_v63, %v3138_v63 }
 0x135   :  { %v3131_v5 = vcombine.high %v21167_v1, %v21167_v1  ;;  %v3162_v8 = vcombine.high %v3152_v3, %v3152_v3 }
 0x136   :  { %17904 = vmatpush3.bf16.msra.mxu0 %v19782_v9  ;;  %v19822_v9 = vld [vmem:[#allocation6 + $0x9c8] sm:$0xff]  }
 0x137   :  { %17933 = vmatprep.subr.bf16.mxu0 %v19785_v11  ;;  %17926 = vmatpush3.bf16.msra.mxu1 %v19783_v12  ;;  %v19823_v11 = vld [vmem:[#allocation6 + $0x908] sm:$0xff]  }
 0x138   :  { %17955 = vmatprep.subr.bf16.mxu1 %v19786_v13  ;;  %v19824_v12 = vld [vmem:[#allocation6 + $0x988] sm:$0xff]  }
 0x139   :  { %13214 = vmatmul.mubr.bf16.vlgmr.msra.gmra.mrb[28].mxu0 %v3096_v10  ;;  %v3159_v10 = vrot.slane %v3131_v5, %v21113_v35  ;;  %v19866_v5 = vld [vmem:[#allocation6 + $0xa60] sm:$0xff]  }
 0x13a   :  { %17934 = vmatpush3.bf16.msra.mxu0 %v19787_v14  ;;  %13254 = vmatmul.mubr.bf16.vlgmr.msra.gmra.mrb[28].mxu1 %v3112_v15  ;;  %v19825_v14 = vld [vmem:[#allocation6 + $0x950] sm:$0xff]  }
 0x13b   :  { %17935 = vmatprep.subr.bf16.mxu0 %v19789_v16  ;;  %17956 = vmatpush3.bf16.msra.mxu1 %v19788_v17  ;;  %v3163_v13 = vcombine.high %v3159_v10, %v3159_v10  ;;  %v19826_v15 = vld [vmem:[#allocation6 + $0x9d0] sm:$0xff]  }
 0x13c   :  { %17957 = vmatprep.subr.bf16.mxu1 %v19790_v18  ;;  %13293 = vmatprep.mubr.bf16.mxu0 %v3152_v3  ;;  %v19827_v16 = vld [vmem:[#allocation6 + $0x910] sm:$0xff]   ;;  %v19829_v18 = vld [vmem:[#allocation6 + $0x958] sm:$0xff]  }
 0x13d   :  { %13333 = vmatprep.mubr.bf16.mxu1 %v3162_v8  ;;  %v19828_v17 = vld [vmem:[#allocation6 + $0x990] sm:$0xff]   ;;  %v19864_v3 = vld [vmem:[#allocation6 + $0xa18] sm:$0xff]   ;;  %v19869_v8 = vld [vmem:[#allocation6 + $0xaa0] sm:$0xff]  }
 0x13e   :  { %17936 = vmatpush3.bf16.msra.mxu0 %v19791_v19  ;;  %v19830_v19 = vld [vmem:[#allocation6 + $0x9d8] sm:$0xff]  }
 0x13f   :  { %17937 = vmatprep.subr.bf16.mxu0 %v19793_v20  ;;  %17958 = vmatpush3.bf16.msra.mxu1 %v19792_v21  ;;  %v19831_v20 = vld [vmem:[#allocation6 + $0x918] sm:$0xff]  }
 0x140   :  { %17959 = vmatprep.subr.bf16.mxu1 %v19794_v22  ;;  %v19832_v21 = vld [vmem:[#allocation6 + $0x998] sm:$0xff]   ;;  %v19833_v22 = vld [vmem:[#allocation6 + $0x960] sm:$0xff]  }
 0x142   :  { %17938 = vmatpush3.bf16.msra.mxu0 %v19795_v23  ;;  %v19834_v23 = vld [vmem:[#allocation6 + $0x9e0] sm:$0xff]  }
 0x143   :  { %17939 = vmatprep.subr.bf16.mxu0 %v19797_v24  ;;  %17960 = vmatpush3.bf16.msra.mxu1 %v19796_v25  ;;  %v19835_v24 = vld [vmem:[#allocation6 + $0x920] sm:$0xff]  }
 0x144   :  { %17961 = vmatprep.subr.bf16.mxu1 %v19798_v26  ;;  %v19836_v25 = vld [vmem:[#allocation6 + $0x9a0] sm:$0xff]   ;;  %v19837_v26 = vld [vmem:[#allocation6 + $0x968] sm:$0xff]  }
 0x146   :  { %17940 = vmatpush3.bf16.msra.mxu0 %v19799_v27  ;;  %v19838_v27 = vld [vmem:[#allocation6 + $0x9e8] sm:$0xff]  }
 0x147   :  { %17941 = vmatprep.subr.bf16.mxu0 %v19801_v28  ;;  %17962 = vmatpush3.bf16.msra.mxu1 %v19800_v29  ;;  %v19839_v28 = vld [vmem:[#allocation6 + $0x928] sm:$0xff]  }
 0x148   :  { %17963 = vmatprep.subr.bf16.mxu1 %v19802_v30  ;;  %v19840_v30 = vld [vmem:[#allocation6 + $0x9a8] sm:$0xff]  }
 0x14a   :  { %17942 = vmatpush3.bf16.msra.mxu0 %v19803_v31 }
 0x14b   :  { %17943 = vmatprep.subr.bf16.mxu0 %v19805_v32  ;;  %17964 = vmatpush3.bf16.msra.mxu1 %v19804_v33  ;;  %v19841_v32 = vld [vmem:[#allocation6 + $0x970] sm:$0xff]  }
 0x14c   :  { %v17641_v37 = vpop.f32.mrb[4].mxu0  ;;  %17965 = vmatprep.subr.bf16.mxu1 %v19806_v34 }
 0x14d   :  { %v17642_v39 = vpop.f32.mrb[5].mxu0  ;;  %v17663_v41 = vpop.f32.mrb[4].mxu1 }
 0x14e   :  { %v17643_v42 = vadd.f32 %v17642_v39, %v17641_v37  ;;  %v17644_v43 = vpop.f32.mrb[6].mxu0  ;;  %v17664_v46 = vpop.f32.mrb[5].mxu1  ;;  %17944 = vmatpush3.bf16.msra.mxu0 %v19807_v36  ;;  %v19842_v37 = vld [vmem:[#allocation6 + $0x9f0] sm:$0xff]  }
 0x14f   :  { %v17645_v47 = vpop.f32.mrb[7].mxu0  ;;  %v17665_v50 = vadd.f32 %v17664_v46, %v17663_v41  ;;  %v17666_v51 = vpop.f32.mrb[6].mxu1  ;;  %17945 = vmatprep.subr.bf16.mxu0 %v19809_v38  ;;  %17966 = vmatpush3.bf16.msra.mxu1 %v19808_v40  ;;  %v19843_v38 = vld [vmem:[#allocation6 + $0x930] sm:$0xff]   ;;  %v19845_v46 = vld [vmem:[#allocation6 + $0x978] sm:$0xff]  }
 0x150   :  { %v12736_v49 = vadd.f32 %v17643_v42, %v21157_v7  ;;  %v17667_v53 = vpop.f32.mrb[7].mxu1  ;;  %17967 = vmatprep.subr.bf16.mxu1 %v19810_v44  ;;  %v19821_v7 = vld [vmem:[#allocation6 + $0x948] sm:$0xff]   ;;  %v19844_v44 = vld [vmem:[#allocation6 + $0x9b0] sm:$0xff]   ;;  %v3145_v51 = vrot.slane %v21167_v1, %v21113_v35  ;;  %v19862_v1 = vld [vmem:[#allocation6 + $0xa58] sm:$0xff]  }
 0x151   :  { %v19851_v53 = vld [vmem:[#allocation6 + $0xac0] sm:$0xff]  }
 0x152   :  { %v21162_v55 = vadd.f32 %v17665_v50, %v12736_v49  ;;  %17946 = vmatpush3.bf16.msra.mxu0 %v19811_v45  ;;  %v19847_v49 = vld [vmem:[#allocation6 + $0x938] sm:$0xff]  }
 0x153   :  { %17947 = vmatprep.subr.bf16.mxu0 %v19813_v52  ;;  %17968 = vmatpush3.bf16.msra.mxu1 %v19812_v48  ;;  %v19846_v48 = vld [vmem:[#allocation6 + $0x9f8] sm:$0xff]   ;;  %v19850_v52 = vld [vmem:[#allocation6 + $0xa40] sm:$0xff]  }
 0x154   :  { %17969 = vmatprep.subr.bf16.mxu1 %v19814_v54  ;;  %v19848_v50 = vld [vmem:[#allocation6 + $0x9b8] sm:$0xff]   ;;  %v19852_v54 = vld [vmem:[#allocation6 + $0xa00] sm:$0xff]  }
 0x156   :  { %17948 = vmatpush3.bf16.msra.mxu0 %v19815_v56  ;;  %v3161_v56 = vcombine.high %v3145_v51, %v3145_v51 }
 0x157   :  { %17977 = vmatprep.subr.bf16.mxu0 %v19817_v59  ;;  %17970 = vmatpush3.bf16.msra.mxu1 %v19816_v61  ;;  %v19856_v59 = vld [vmem:[#allocation6 + $0xa08] sm:$0xff]   ;;  %v19858_v61 = vld [vmem:[#allocation6 + $0xa50] sm:$0xff]  }
 0x158   :  { %17999 = vmatprep.subr.bf16.mxu1 %v19818_v0  ;;  %v19861_v0 = vld [vmem:[#allocation6 + $0xa90] sm:$0xff]  }
 0x159   :  { %13294 = vmatmul.mubr.bf16.vlgmr.msra.gmra.mrb[32].mxu0 %v3138_v63  ;;  %v19860_v63 = vld [vmem:[#allocation6 + $0xa10] sm:$0xff]  }
 0x15a   :  { %17978 = vmatpush3.bf16.msra.mxu0 %v19819_v2  ;;  %13334 = vmatmul.mubr.bf16.vlgmr.msra.gmra.mrb[32].mxu1 %v3160_v6  ;;  %v19863_v2 = vld [vmem:[#allocation6 + $0xad8] sm:$0xff]   ;;  %v19867_v6 = vld [vmem:[#allocation6 + $0xae0] sm:$0xff]  }
 0x15b   :  { %17979 = vmatprep.subr.bf16.mxu0 %v19821_v7  ;;  %18000 = vmatpush3.bf16.msra.mxu1 %v19820_v4  ;;  %v19865_v4 = vld [vmem:[#allocation6 + $0xa98] sm:$0xff]   ;;  %v19868_v7 = vld [vmem:[#allocation6 + $0xa20] sm:$0xff]  }
 0x15c   :  { %13373 = vmatprep.mubr.bf16.mxu0 %v3159_v10  ;;  %18001 = vmatprep.subr.bf16.mxu1 %v19822_v9  ;;  %v19870_v9 = vld [vmem:[#allocation6 + $0xa68] sm:$0xff]  }
 0x15d   :  { %13413 = vmatprep.mubr.bf16.mxu1 %v3163_v13  ;;  %v19871_v10 = vld [vmem:[#allocation6 + $0xae8] sm:$0xff]  }
 0x15e   :  { %17980 = vmatpush3.bf16.msra.mxu0 %v19823_v11  ;;  %v19872_v11 = vld [vmem:[#allocation6 + $0xa28] sm:$0xff]  }
 0x15f   :  { %17981 = vmatprep.subr.bf16.mxu0 %v19825_v14  ;;  %18002 = vmatpush3.bf16.msra.mxu1 %v19824_v12  ;;  %v19873_v13 = vld [vmem:[#allocation6 + $0xaa8] sm:$0xff]  }
 0x160   :  { %18003 = vmatprep.subr.bf16.mxu1 %v19826_v15  ;;  %v19874_v15 = vld [vmem:[#allocation6 + $0xa70] sm:$0xff]  }
 0x162   :  { %17982 = vmatpush3.bf16.msra.mxu0 %v19827_v16 }
 0x163   :  { %17983 = vmatprep.subr.bf16.mxu0 %v19829_v18  ;;  %18004 = vmatpush3.bf16.msra.mxu1 %v19828_v17 }
 0x164   :  { %18005 = vmatprep.subr.bf16.mxu1 %v19830_v19  ;;  %v19875_v19 = vld [vmem:[#allocation6 + $0xaf0] sm:$0xff]  }
 0x166   :  { %17984 = vmatpush3.bf16.msra.mxu0 %v19831_v20  ;;  %v19876_v20 = vld [vmem:[#allocation6 + $0xa30] sm:$0xff]  }
 0x167   :  { %17985 = vmatprep.subr.bf16.mxu0 %v19833_v22  ;;  %18006 = vmatpush3.bf16.msra.mxu1 %v19832_v21 }
 0x168   :  { %18007 = vmatprep.subr.bf16.mxu1 %v19834_v23 }
 0x16a   :  { %17986 = vmatpush3.bf16.msra.mxu0 %v19835_v24 }
 0x16b   :  { %17987 = vmatprep.subr.bf16.mxu0 %v19837_v26  ;;  %18008 = vmatpush3.bf16.msra.mxu1 %v19836_v25  ;;  %v19877_v26 = vld [vmem:[#allocation6 + $0xab0] sm:$0xff]  }
 0x16c   :  { %v17685_v29 = vpop.f32.mrb[8].mxu0  ;;  %18009 = vmatprep.subr.bf16.mxu1 %v19838_v27 }
 0x16d   :  { %v17686_v31 = vpop.f32.mrb[9].mxu0  ;;  %v17707_v33 = vpop.f32.mrb[8].mxu1 }
 0x16e   :  { %v17687_v34 = vadd.f32 %v17686_v31, %v17685_v29  ;;  %v17688_v36 = vpop.f32.mrb[10].mxu0  ;;  %v17708_v39 = vpop.f32.mrb[9].mxu1  ;;  %17988 = vmatpush3.bf16.msra.mxu0 %v19839_v28  ;;  %v19878_v28 = vld [vmem:[#allocation6 + $0xa78] sm:$0xff]  }
 0x16f   :  { %v17689_v40 = vpop.f32.mrb[11].mxu0  ;;  %v17709_v42 = vadd.f32 %v17708_v39, %v17707_v33  ;;  %v17710_v43 = vpop.f32.mrb[10].mxu1  ;;  %17989 = vmatprep.subr.bf16.mxu0 %v19841_v32  ;;  %18010 = vmatpush3.bf16.msra.mxu1 %v19840_v30  ;;  %v19879_v30 = vld [vmem:[#allocation6 + $0xaf8] sm:$0xff]  }
 0x170   :  { %v12816_v41 = vadd.f32 %v17687_v34, %v21162_v55  ;;  %v17711_v45 = vpop.f32.mrb[11].mxu1  ;;  %18011 = vmatprep.subr.bf16.mxu1 %v19842_v37  ;;  %v19853_v55 = vld [vmem:[#allocation6 + $0xa80] sm:$0xff]   ;;  %v19880_v31 = vld [vmem:[#allocation6 + $0xa38] sm:$0xff]  }
 0x171   :  { %v63_v32 = vld [vmem:[#allocation3 + $0x28] sm:$0xff]  ;;  %v19882_v34 = vld [vmem:[#allocation6 + $0xb40] sm:$0xff]  }
 0x172   :  { %v21174_v47 = vadd.f32 %v17709_v42, %v12816_v41  ;;  %17990 = vmatpush3.bf16.msra.mxu0 %v19843_v38  ;;  %v3171_v33 = vrot.slane %v63_v32, %v21113_v35  ;;  %v3164_v36 = vcombine.high %v63_v32, %v63_v32  ;;  %v19881_v37 = vld [vmem:[#allocation6 + $0xab8] sm:$0xff]   ;;  %v19883_v40 = vld [vmem:[#allocation6 + $0xbc0] sm:$0xff]   ;;  %v19919_v32 = vld [vmem:[#allocation6 + $0xc48] sm:$0xff]  }
 0x173   :  { %17991 = vmatprep.subr.bf16.mxu0 %v19845_v46  ;;  %18012 = vmatpush3.bf16.msra.mxu1 %v19844_v44  ;;  %v19884_v42 = vld [vmem:[#allocation6 + $0xb00] sm:$0xff]  }
 0x174   :  { %18013 = vmatprep.subr.bf16.mxu1 %v19846_v48  ;;  %v3179_v38 = vcombine.high %v3171_v33, %v3171_v33  ;;  %v3187_v39 = vrot.slane %v3171_v33, %v21113_v35  ;;  %v21184_v41 = vrot.slane %v3164_v36, %v21113_v35  ;;  %v19885_v44 = vld [vmem:[#allocation6 + $0xb80] sm:$0xff]   ;;  %v19920_v33 = vld [vmem:[#allocation6 + $0xcc8] sm:$0xff]  }
 0x175   :  { %v19922_v36 = vld [vmem:[#allocation6 + $0xc88] sm:$0xff]  }
 0x176   :  { %17992 = vmatpush3.bf16.msra.mxu0 %v19847_v49  ;;  %v3201_v43 = vrot.slane %v3179_v38, %v21113_v35  ;;  %v3180_v45 = vcombine.high %v21184_v41, %v21184_v41  ;;  %v3209_v46 = vcombine.high %v3187_v39, %v3187_v39  ;;  %v19887_v49 = vld [vmem:[#allocation6 + $0xbc8] sm:$0xff]   ;;  %v19924_v38 = vld [vmem:[#allocation6 + $0xcd0] sm:$0xff]  }
 0x177   :  { %18021 = vmatprep.subr.bf16.mxu0 %v19850_v52  ;;  %18014 = vmatpush3.bf16.msra.mxu1 %v19848_v50  ;;  %v19889_v52 = vld [vmem:[#allocation6 + $0xb88] sm:$0xff]  }
 0x178   :  { %18043 = vmatprep.subr.bf16.mxu1 %v19851_v53  ;;  %v3211_v48 = vcombine.high %v3201_v43, %v3201_v43  ;;  %v3208_v50 = vrot.slane %v3180_v45, %v21113_v35  ;;  %v19931_v45 = vld [vmem:[#allocation6 + $0xc60] sm:$0xff]  }
 0x179   :  { %13374 = vmatmul.mubr.bf16.vlgmr.msra.gmra.mrb[36].mxu0 %v3145_v51  ;;  %v19888_v51 = vld [vmem:[#allocation6 + $0xb08] sm:$0xff]  }
 0x17a   :  { %18022 = vmatpush3.bf16.msra.mxu0 %v19852_v54  ;;  %13414 = vmatmul.mubr.bf16.vlgmr.msra.gmra.mrb[36].mxu1 %v3161_v56  ;;  %v3212_v53 = vcombine.high %v3208_v50, %v3208_v50  ;;  %v19890_v54 = vld [vmem:[#allocation6 + $0xb50] sm:$0xff]  }
 0x17b   :  { %18023 = vmatprep.subr.bf16.mxu0 %v19854_v57  ;;  %18044 = vmatpush3.bf16.msra.mxu1 %v19853_v55  ;;  %v19891_v55 = vld [vmem:[#allocation6 + $0xbd0] sm:$0xff]  }
 0x17c   :  { %18045 = vmatprep.subr.bf16.mxu1 %v19855_v58  ;;  %13453 = vmatprep.mubr.bf16.mxu0 %v3201_v43  ;;  %v19892_v56 = vld [vmem:[#allocation6 + $0xb10] sm:$0xff]   ;;  %v19894_v58 = vld [vmem:[#allocation6 + $0xb58] sm:$0xff]  }
 0x17d   :  { %13493 = vmatprep.mubr.bf16.mxu1 %v3211_v48  ;;  %v19893_v57 = vld [vmem:[#allocation6 + $0xb90] sm:$0xff]   ;;  %v19929_v43 = vld [vmem:[#allocation6 + $0xc18] sm:$0xff]   ;;  %v19934_v48 = vld [vmem:[#allocation6 + $0xca0] sm:$0xff]  }
 0x17e   :  { %18024 = vmatpush3.bf16.msra.mxu0 %v19856_v59  ;;  %v19895_v59 = vld [vmem:[#allocation6 + $0xbd8] sm:$0xff]  }
 0x17f   :  { %18025 = vmatprep.subr.bf16.mxu0 %v19858_v61  ;;  %18046 = vmatpush3.bf16.msra.mxu1 %v19857_v60  ;;  %v19896_v60 = vld [vmem:[#allocation6 + $0xb18] sm:$0xff]  }
 0x180   :  { %18047 = vmatprep.subr.bf16.mxu1 %v19859_v62  ;;  %v19897_v61 = vld [vmem:[#allocation6 + $0xb98] sm:$0xff]   ;;  %v19898_v62 = vld [vmem:[#allocation6 + $0xb60] sm:$0xff]  }
 0x182   :  { %18026 = vmatpush3.bf16.msra.mxu0 %v19860_v63  ;;  %v19899_v63 = vld [vmem:[#allocation6 + $0xbe0] sm:$0xff]  }
 0x183   :  { %18027 = vmatprep.subr.bf16.mxu0 %v19862_v1  ;;  %18048 = vmatpush3.bf16.msra.mxu1 %v19861_v0  ;;  %v19900_v0 = vld [vmem:[#allocation6 + $0xb20] sm:$0xff]  }
 0x184   :  { %18049 = vmatprep.subr.bf16.mxu1 %v19863_v2  ;;  %v19901_v1 = vld [vmem:[#allocation6 + $0xba0] sm:$0xff]   ;;  %v19902_v2 = vld [vmem:[#allocation6 + $0xb68] sm:$0xff]  }
 0x186   :  { %18028 = vmatpush3.bf16.msra.mxu0 %v19864_v3  ;;  %v19903_v3 = vld [vmem:[#allocation6 + $0xbe8] sm:$0xff]  }
 0x187   :  { %18029 = vmatprep.subr.bf16.mxu0 %v19866_v5  ;;  %18050 = vmatpush3.bf16.msra.mxu1 %v19865_v4  ;;  %v19904_v5 = vld [vmem:[#allocation6 + $0xb28] sm:$0xff]  }
 0x188   :  { %18051 = vmatprep.subr.bf16.mxu1 %v19867_v6 }
 0x18a   :  { %18030 = vmatpush3.bf16.msra.mxu0 %v19868_v7  ;;  %v19905_v7 = vld [vmem:[#allocation6 + $0xba8] sm:$0xff]  }
 0x18b   :  { %18031 = vmatprep.subr.bf16.mxu0 %v19870_v9  ;;  %18052 = vmatpush3.bf16.msra.mxu1 %v19869_v8 }
 0x18c   :  { %v17729_v12 = vpop.f32.mrb[12].mxu0  ;;  %18053 = vmatprep.subr.bf16.mxu1 %v19871_v10 }
 0x18d   :  { %v17730_v14 = vpop.f32.mrb[13].mxu0  ;;  %v17751_v16 = vpop.f32.mrb[12].mxu1 }
 0x18e   :  { %v17731_v17 = vadd.f32 %v17730_v14, %v17729_v12  ;;  %v17732_v18 = vpop.f32.mrb[14].mxu0  ;;  %v17752_v21 = vpop.f32.mrb[13].mxu1  ;;  %18032 = vmatpush3.bf16.msra.mxu0 %v19872_v11  ;;  %v19906_v11 = vld [vmem:[#allocation6 + $0xb70] sm:$0xff]  }
 0x18f   :  { %v17733_v22 = vpop.f32.mrb[15].mxu0  ;;  %v17753_v24 = vadd.f32 %v17752_v21, %v17751_v16  ;;  %v17754_v25 = vpop.f32.mrb[14].mxu1  ;;  %18033 = vmatprep.subr.bf16.mxu0 %v19874_v15  ;;  %18054 = vmatpush3.bf16.msra.mxu1 %v19873_v13  ;;  %v19907_v12 = vld [vmem:[#allocation6 + $0xbf0] sm:$0xff]  }
 0x190   :  { %v12896_v23 = vadd.f32 %v17731_v17, %v21174_v47  ;;  %v17755_v27 = vpop.f32.mrb[15].mxu1  ;;  %18055 = vmatprep.subr.bf16.mxu1 %v19875_v19  ;;  %v19886_v47 = vld [vmem:[#allocation6 + $0xb48] sm:$0xff]   ;;  %v19908_v18 = vld [vmem:[#allocation6 + $0xb30] sm:$0xff]   ;;  %v19910_v22 = vld [vmem:[#allocation6 + $0xb78] sm:$0xff]  }
 0x191   :  { %v19913_v25 = vld [vmem:[#allocation6 + $0xbb8] sm:$0xff]   ;;  %v19915_v27 = vld [vmem:[#allocation6 + $0xc40] sm:$0xff]  }
 0x192   :  { %v21179_v29 = vadd.f32 %v17753_v24, %v12896_v23  ;;  %18034 = vmatpush3.bf16.msra.mxu0 %v19876_v20  ;;  %v19909_v20 = vld [vmem:[#allocation6 + $0xbb0] sm:$0xff]   ;;  %v19911_v23 = vld [vmem:[#allocation6 + $0xbf8] sm:$0xff]  }
 0x193   :  { %18035 = vmatprep.subr.bf16.mxu0 %v19878_v28  ;;  %18056 = vmatpush3.bf16.msra.mxu1 %v19877_v26  ;;  %v19912_v24 = vld [vmem:[#allocation6 + $0xb38] sm:$0xff]   ;;  %v3194_v26 = vrot.slane %v21184_v41, %v21113_v35  ;;  %v19916_v28 = vld [vmem:[#allocation6 + $0xcc0] sm:$0xff]  }
 0x194   :  { %18057 = vmatprep.subr.bf16.mxu1 %v19879_v30  ;;  %v19918_v30 = vld [vmem:[#allocation6 + $0xc80] sm:$0xff]   ;;  %v19927_v41 = vld [vmem:[#allocation6 + $0xc58] sm:$0xff]  }
 0x196   :  { %18036 = vmatpush3.bf16.msra.mxu0 %v19880_v31  ;;  %v3210_v31 = vcombine.high %v3194_v26, %v3194_v26 }
 0x197   :  { %18065 = vmatprep.subr.bf16.mxu0 %v19882_v34  ;;  %18058 = vmatpush3.bf16.msra.mxu1 %v19881_v37  ;;  %v19921_v34 = vld [vmem:[#allocation6 + $0xc08] sm:$0xff]   ;;  %v19923_v37 = vld [vmem:[#allocation6 + $0xc50] sm:$0xff]  }
 0x198   :  { %18087 = vmatprep.subr.bf16.mxu1 %v19883_v40  ;;  %v19926_v40 = vld [vmem:[#allocation6 + $0xc90] sm:$0xff]  }
 0x199   :  { %13454 = vmatmul.mubr.bf16.vlgmr.msra.gmra.mrb[40].mxu0 %v3187_v39  ;;  %v19925_v39 = vld [vmem:[#allocation6 + $0xc10] sm:$0xff]  }
 0x19a   :  { %18066 = vmatpush3.bf16.msra.mxu0 %v19884_v42  ;;  %13494 = vmatmul.mubr.bf16.vlgmr.msra.gmra.mrb[40].mxu1 %v3209_v46  ;;  %v19928_v42 = vld [vmem:[#allocation6 + $0xcd8] sm:$0xff]   ;;  %v19932_v46 = vld [vmem:[#allocation6 + $0xce0] sm:$0xff]  }
 0x19b   :  { %18067 = vmatprep.subr.bf16.mxu0 %v19886_v47  ;;  %18088 = vmatpush3.bf16.msra.mxu1 %v19885_v44  ;;  %v19930_v44 = vld [vmem:[#allocation6 + $0xc98] sm:$0xff]   ;;  %v19933_v47 = vld [vmem:[#allocation6 + $0xc20] sm:$0xff]  }
 0x19c   :  { %13533 = vmatprep.mubr.bf16.mxu0 %v3208_v50  ;;  %18089 = vmatprep.subr.bf16.mxu1 %v19887_v49  ;;  %v19935_v49 = vld [vmem:[#allocation6 + $0xc68] sm:$0xff]  }
 0x19d   :  { %13573 = vmatprep.mubr.bf16.mxu1 %v3212_v53  ;;  %v19936_v50 = vld [vmem:[#allocation6 + $0xce8] sm:$0xff]  }
 0x19e   :  { %18068 = vmatpush3.bf16.msra.mxu0 %v19888_v51 }
 0x19f   :  { %18069 = vmatprep.subr.bf16.mxu0 %v19890_v54  ;;  %18090 = vmatpush3.bf16.msra.mxu1 %v19889_v52  ;;  %v19937_v52 = vld [vmem:[#allocation6 + $0xc28] sm:$0xff]  }
 0x1a0   :  { %18091 = vmatprep.subr.bf16.mxu1 %v19891_v55  ;;  %v19938_v54 = vld [vmem:[#allocation6 + $0xca8] sm:$0xff]  }
 0x1a2   :  { %18070 = vmatpush3.bf16.msra.mxu0 %v19892_v56 }
 0x1a3   :  { %18071 = vmatprep.subr.bf16.mxu0 %v19894_v58  ;;  %18092 = vmatpush3.bf16.msra.mxu1 %v19893_v57  ;;  %v19939_v58 = vld [vmem:[#allocation6 + $0xc70] sm:$0xff]  }
 0x1a4   :  { %18093 = vmatprep.subr.bf16.mxu1 %v19895_v59  ;;  %v19940_v59 = vld [vmem:[#allocation6 + $0xcf0] sm:$0xff]  }
 0x1a6   :  { %18072 = vmatpush3.bf16.msra.mxu0 %v19896_v60 }
 0x1a7   :  { %18073 = vmatprep.subr.bf16.mxu0 %v19898_v62  ;;  %18094 = vmatpush3.bf16.msra.mxu1 %v19897_v61 }
 0x1a8   :  { %18095 = vmatprep.subr.bf16.mxu1 %v19899_v63 }
 0x1aa   :  { %18074 = vmatpush3.bf16.msra.mxu0 %v19900_v0 }
 0x1ab   :  { %18075 = vmatprep.subr.bf16.mxu0 %v19902_v2  ;;  %18096 = vmatpush3.bf16.msra.mxu1 %v19901_v1  ;;  %v19941_v1 = vld [vmem:[#allocation6 + $0xc30] sm:$0xff]  }
 0x1ac   :  { %v17773_v4 = vpop.f32.mrb[16].mxu0  ;;  %18097 = vmatprep.subr.bf16.mxu1 %v19903_v3  ;;  %v19942_v3 = vld [vmem:[#allocation6 + $0xcb0] sm:$0xff]  }
 0x1ad   :  { %v17774_v6 = vpop.f32.mrb[17].mxu0  ;;  %v17795_v8 = vpop.f32.mrb[16].mxu1 }
 0x1ae   :  { %v17775_v9 = vadd.f32 %v17774_v6, %v17773_v4  ;;  %v17776_v10 = vpop.f32.mrb[18].mxu0  ;;  %v17796_v13 = vpop.f32.mrb[17].mxu1  ;;  %18076 = vmatpush3.bf16.msra.mxu0 %v19904_v5  ;;  %v19943_v5 = vld [vmem:[#allocation6 + $0xc78] sm:$0xff]  }
 0x1af   :  { %v17777_v14 = vpop.f32.mrb[19].mxu0  ;;  %v17797_v16 = vadd.f32 %v17796_v13, %v17795_v8  ;;  %v17798_v17 = vpop.f32.mrb[18].mxu1  ;;  %18077 = vmatprep.subr.bf16.mxu0 %v19906_v11  ;;  %18098 = vmatpush3.bf16.msra.mxu1 %v19905_v7  ;;  %v19944_v6 = vld [vmem:[#allocation6 + $0xcf8] sm:$0xff]   ;;  %v64_v8 = vld [vmem:[#allocation3 + $0x30] sm:$0xff] }
 0x1b0   :  { %v12976_v15 = vadd.f32 %v17775_v9, %v21179_v29  ;;  %v17799_v19 = vpop.f32.mrb[19].mxu1  ;;  %18099 = vmatprep.subr.bf16.mxu1 %v19907_v12  ;;  %v19917_v29 = vld [vmem:[#allocation6 + $0xc00] sm:$0xff]   ;;  %v19945_v7 = vld [vmem:[#allocation6 + $0xc38] sm:$0xff]   ;;  %v3220_v9 = vrot.slane %v64_v8, %v21113_v35  ;;  %v3213_v11 = vcombine.high %v64_v8, %v64_v8  ;;  %v19984_v8 = vld [vmem:[#allocation6 + $0xe48] sm:$0xff]  }
 0x1b1   :  { %v19947_v10 = vld [vmem:[#allocation6 + $0xd40] sm:$0xff]   ;;  %v19946_v12 = vld [vmem:[#allocation6 + $0xcb8] sm:$0xff]  }
 0x1b2   :  { %v21191_v21 = vadd.f32 %v17797_v16, %v12976_v15  ;;  %18078 = vmatpush3.bf16.msra.mxu0 %v19908_v18  ;;  %v3228_v13 = vcombine.high %v3220_v9, %v3220_v9  ;;  %v3236_v14 = vrot.slane %v3220_v9, %v21113_v35  ;;  %v19948_v15 = vld [vmem:[#allocation6 + $0xdc0] sm:$0xff]   ;;  %v21201_v16 = vrot.slane %v3213_v11, %v21113_v35  ;;  %v19985_v9 = vld [vmem:[#allocation6 + $0xec8] sm:$0xff]  }
 0x1b3   :  { %18079 = vmatprep.subr.bf16.mxu0 %v19910_v22  ;;  %18100 = vmatpush3.bf16.msra.mxu1 %v19909_v20  ;;  %v19949_v17 = vld [vmem:[#allocation6 + $0xd00] sm:$0xff]   ;;  %v19951_v22 = vld [vmem:[#allocation6 + $0xd48] sm:$0xff]  }
 0x1b4   :  { %18101 = vmatprep.subr.bf16.mxu1 %v19911_v23  ;;  %v3250_v18 = vrot.slane %v3228_v13, %v21113_v35  ;;  %v19950_v19 = vld [vmem:[#allocation6 + $0xd80] sm:$0xff]   ;;  %v3229_v20 = vcombine.high %v21201_v16, %v21201_v16  ;;  %v19987_v11 = vld [vmem:[#allocation6 + $0xe88] sm:$0xff]   ;;  %v19989_v13 = vld [vmem:[#allocation6 + $0xed0] sm:$0xff]  }
 0x1b6   :  { %18080 = vmatpush3.bf16.msra.mxu0 %v19912_v24  ;;  %v3260_v23 = vcombine.high %v3250_v18, %v3250_v18  ;;  %v19952_v24 = vld [vmem:[#allocation6 + $0xdc8] sm:$0xff]  }
 0x1b7   :  { %18109 = vmatprep.subr.bf16.mxu0 %v19915_v27  ;;  %18102 = vmatpush3.bf16.msra.mxu1 %v19913_v25  ;;  %v3257_v25 = vrot.slane %v3229_v20, %v21113_v35  ;;  %v19954_v27 = vld [vmem:[#allocation6 + $0xd88] sm:$0xff]   ;;  %v19996_v20 = vld [vmem:[#allocation6 + $0xe60] sm:$0xff]  }
 0x1b8   :  { %18131 = vmatprep.subr.bf16.mxu1 %v19916_v28 }
 0x1b9   :  { %13534 = vmatmul.mubr.bf16.vlgmr.msra.gmra.mrb[44].mxu0 %v3194_v26  ;;  %v19953_v26 = vld [vmem:[#allocation6 + $0xd08] sm:$0xff]   ;;  %v3261_v28 = vcombine.high %v3257_v25, %v3257_v25 }
 0x1ba   :  { %18110 = vmatpush3.bf16.msra.mxu0 %v19917_v29  ;;  %13574 = vmatmul.mubr.bf16.vlgmr.msra.gmra.mrb[44].mxu1 %v3210_v31  ;;  %v19955_v29 = vld [vmem:[#allocation6 + $0xd50] sm:$0xff]  }
 0x1bb   :  { %18111 = vmatprep.subr.bf16.mxu0 %v19919_v32  ;;  %18132 = vmatpush3.bf16.msra.mxu1 %v19918_v30  ;;  %v19956_v30 = vld [vmem:[#allocation6 + $0xdd0] sm:$0xff]  }
 0x1bc   :  { %18133 = vmatprep.subr.bf16.mxu1 %v19920_v33  ;;  %13613 = vmatprep.mubr.bf16.mxu0 %v3250_v18  ;;  %v19957_v31 = vld [vmem:[#allocation6 + $0xd10] sm:$0xff]   ;;  %v19959_v33 = vld [vmem:[#allocation6 + $0xd58] sm:$0xff]  }
 0x1bd   :  { %13653 = vmatprep.mubr.bf16.mxu1 %v3260_v23  ;;  %v19958_v32 = vld [vmem:[#allocation6 + $0xd90] sm:$0xff]   ;;  %v19994_v18 = vld [vmem:[#allocation6 + $0xe18] sm:$0xff]   ;;  %v19999_v23 = vld [vmem:[#allocation6 + $0xea0] sm:$0xff]  }
 0x1be   :  { %18112 = vmatpush3.bf16.msra.mxu0 %v19921_v34  ;;  %v19960_v34 = vld [vmem:[#allocation6 + $0xdd8] sm:$0xff]  }
 0x1bf   :  { %18113 = vmatprep.subr.bf16.mxu0 %v19923_v37  ;;  %18134 = vmatpush3.bf16.msra.mxu1 %v19922_v36  ;;  %v19961_v36 = vld [vmem:[#allocation6 + $0xd18] sm:$0xff]  }
 0x1c0   :  { %18135 = vmatprep.subr.bf16.mxu1 %v19924_v38  ;;  %v19962_v37 = vld [vmem:[#allocation6 + $0xd98] sm:$0xff]   ;;  %v19963_v38 = vld [vmem:[#allocation6 + $0xd60] sm:$0xff]  }
 0x1c2   :  { %18114 = vmatpush3.bf16.msra.mxu0 %v19925_v39  ;;  %v19964_v39 = vld [vmem:[#allocation6 + $0xde0] sm:$0xff]  }
 0x1c3   :  { %18115 = vmatprep.subr.bf16.mxu0 %v19927_v41  ;;  %18136 = vmatpush3.bf16.msra.mxu1 %v19926_v40  ;;  %v19965_v40 = vld [vmem:[#allocation6 + $0xd20] sm:$0xff]  }
 0x1c4   :  { %18137 = vmatprep.subr.bf16.mxu1 %v19928_v42  ;;  %v19966_v41 = vld [vmem:[#allocation6 + $0xda0] sm:$0xff]   ;;  %v19967_v42 = vld [vmem:[#allocation6 + $0xd68] sm:$0xff]  }
 0x1c6   :  { %18116 = vmatpush3.bf16.msra.mxu0 %v19929_v43  ;;  %v19968_v43 = vld [vmem:[#allocation6 + $0xde8] sm:$0xff]  }
 0x1c7   :  { %18117 = vmatprep.subr.bf16.mxu0 %v19931_v45  ;;  %18138 = vmatpush3.bf16.msra.mxu1 %v19930_v44  ;;  %v19969_v45 = vld [vmem:[#allocation6 + $0xd28] sm:$0xff]  }
 0x1c8   :  { %18139 = vmatprep.subr.bf16.mxu1 %v19932_v46 }
 0x1ca   :  { %18118 = vmatpush3.bf16.msra.mxu0 %v19933_v47  ;;  %v19970_v47 = vld [vmem:[#allocation6 + $0xda8] sm:$0xff]  }
 0x1cb   :  { %18119 = vmatprep.subr.bf16.mxu0 %v19935_v49  ;;  %18140 = vmatpush3.bf16.msra.mxu1 %v19934_v48 }
 0x1cc   :  { %v17817_v51 = vpop.f32.mrb[20].mxu0  ;;  %18141 = vmatprep.subr.bf16.mxu1 %v19936_v50 }
 0x1cd   :  { %v17818_v53 = vpop.f32.mrb[21].mxu0  ;;  %v17839_v55 = vpop.f32.mrb[20].mxu1 }
 0x1ce   :  { %v17819_v56 = vadd.f32 %v17818_v53, %v17817_v51  ;;  %v17820_v57 = vpop.f32.mrb[22].mxu0  ;;  %v17840_v60 = vpop.f32.mrb[21].mxu1  ;;  %18120 = vmatpush3.bf16.msra.mxu0 %v19937_v52  ;;  %v19971_v51 = vld [vmem:[#allocation6 + $0xd70] sm:$0xff]  }
 0x1cf   :  { %v17821_v61 = vpop.f32.mrb[23].mxu0  ;;  %v17841_v63 = vadd.f32 %v17840_v60, %v17839_v55  ;;  %v17842_v0 = vpop.f32.mrb[22].mxu1  ;;  %18121 = vmatprep.subr.bf16.mxu0 %v19939_v58  ;;  %18142 = vmatpush3.bf16.msra.mxu1 %v19938_v54  ;;  %v19972_v52 = vld [vmem:[#allocation6 + $0xdf0] sm:$0xff]  }
 0x1d0   :  { %v13056_v62 = vadd.f32 %v17819_v56, %v21191_v21  ;;  %v17843_v2 = vpop.f32.mrb[23].mxu1  ;;  %18143 = vmatprep.subr.bf16.mxu1 %v19940_v59  ;;  %v3258_v21 = vcombine.high %v3236_v14, %v3236_v14  ;;  %v19973_v58 = vld [vmem:[#allocation6 + $0xd30] sm:$0xff]   ;;  %v19977_v0 = vld [vmem:[#allocation6 + $0xd38] sm:$0xff]  }
 0x1d1   :  { %v19974_v60 = vld [vmem:[#allocation6 + $0xdb0] sm:$0xff]   ;;  %v3243_v2 = vrot.slane %v21201_v16, %v21113_v35  ;;  %v19992_v16 = vld [vmem:[#allocation6 + $0xe58] sm:$0xff]  }
 0x1d2   :  { %v21196_v4 = vadd.f32 %v17841_v63, %v13056_v62  ;;  %18122 = vmatpush3.bf16.msra.mxu0 %v19941_v1  ;;  %v19975_v62 = vld [vmem:[#allocation6 + $0xd78] sm:$0xff]  }
 0x1d3   :  { %18123 = vmatprep.subr.bf16.mxu0 %v19943_v5  ;;  %18144 = vmatpush3.bf16.msra.mxu1 %v19942_v3  ;;  %v19976_v63 = vld [vmem:[#allocation6 + $0xdf8] sm:$0xff]   ;;  %v19980_v3 = vld [vmem:[#allocation6 + $0xe40] sm:$0xff]  }
 0x1d4   :  { %18145 = vmatprep.subr.bf16.mxu1 %v19944_v6  ;;  %v19978_v1 = vld [vmem:[#allocation6 + $0xdb8] sm:$0xff]   ;;  %v19982_v5 = vld [vmem:[#allocation6 + $0xe00] sm:$0xff]  }
 0x1d5   :  { %v19983_v6 = vld [vmem:[#allocation6 + $0xe80] sm:$0xff]  }
 0x1d6   :  { %18124 = vmatpush3.bf16.msra.mxu0 %v19945_v7  ;;  %v3259_v7 = vcombine.high %v3243_v2, %v3243_v2 }
 0x1d7   :  { %18153 = vmatprep.subr.bf16.mxu0 %v19947_v10  ;;  %18146 = vmatpush3.bf16.msra.mxu1 %v19946_v12  ;;  %v19986_v10 = vld [vmem:[#allocation6 + $0xe08] sm:$0xff]   ;;  %v19988_v12 = vld [vmem:[#allocation6 + $0xe50] sm:$0xff]  }
 0x1d8   :  { %18175 = vmatprep.subr.bf16.mxu1 %v19948_v15  ;;  %v19991_v15 = vld [vmem:[#allocation6 + $0xe90] sm:$0xff]  }
 0x1d9   :  { %13614 = vmatmul.mubr.bf16.vlgmr.msra.gmra.mrb[48].mxu0 %v3236_v14  ;;  %v19990_v14 = vld [vmem:[#allocation6 + $0xe10] sm:$0xff]  }
 0x1da   :  { %18154 = vmatpush3.bf16.msra.mxu0 %v19949_v17  ;;  %13654 = vmatmul.mubr.bf16.vlgmr.msra.gmra.mrb[48].mxu1 %v3258_v21  ;;  %v19993_v17 = vld [vmem:[#allocation6 + $0xed8] sm:$0xff]   ;;  %v19997_v21 = vld [vmem:[#allocation6 + $0xee0] sm:$0xff]  }
 0x1db   :  { %18155 = vmatprep.subr.bf16.mxu0 %v19951_v22  ;;  %18176 = vmatpush3.bf16.msra.mxu1 %v19950_v19  ;;  %v19995_v19 = vld [vmem:[#allocation6 + $0xe98] sm:$0xff]   ;;  %v19998_v22 = vld [vmem:[#allocation6 + $0xe20] sm:$0xff]  }
 0x1dc   :  { %13693 = vmatprep.mubr.bf16.mxu0 %v3257_v25  ;;  %18177 = vmatprep.subr.bf16.mxu1 %v19952_v24  ;;  %v20000_v24 = vld [vmem:[#allocation6 + $0xe68] sm:$0xff]  }
 0x1dd   :  { %13733 = vmatprep.mubr.bf16.mxu1 %v3261_v28  ;;  %v20001_v25 = vld [vmem:[#allocation6 + $0xee8] sm:$0xff]  }
 0x1de   :  { %18156 = vmatpush3.bf16.msra.mxu0 %v19953_v26 }
 0x1df   :  { %18157 = vmatprep.subr.bf16.mxu0 %v19955_v29  ;;  %18178 = vmatpush3.bf16.msra.mxu1 %v19954_v27  ;;  %v20002_v27 = vld [vmem:[#allocation6 + $0xe28] sm:$0xff]  }
 0x1e0   :  { %18179 = vmatprep.subr.bf16.mxu1 %v19956_v30  ;;  %v20003_v29 = vld [vmem:[#allocation6 + $0xea8] sm:$0xff]  }
 0x1e2   :  { %18158 = vmatpush3.bf16.msra.mxu0 %v19957_v31 }
 0x1e3   :  { %18159 = vmatprep.subr.bf16.mxu0 %v19959_v33  ;;  %18180 = vmatpush3.bf16.msra.mxu1 %v19958_v32  ;;  %v20004_v33 = vld [vmem:[#allocation6 + $0xe70] sm:$0xff]  }
 0x1e4   :  { %18181 = vmatprep.subr.bf16.mxu1 %v19960_v34  ;;  %v20005_v34 = vld [vmem:[#allocation6 + $0xef0] sm:$0xff]  }
 0x1e6   :  { %18160 = vmatpush3.bf16.msra.mxu0 %v19961_v36 }
 0x1e7   :  { %18161 = vmatprep.subr.bf16.mxu0 %v19963_v38  ;;  %18182 = vmatpush3.bf16.msra.mxu1 %v19962_v37 }
 0x1e8   :  { %18183 = vmatprep.subr.bf16.mxu1 %v19964_v39 }
 0x1ea   :  { %18162 = vmatpush3.bf16.msra.mxu0 %v19965_v40 }
 0x1eb   :  { %18163 = vmatprep.subr.bf16.mxu0 %v19967_v42  ;;  %18184 = vmatpush3.bf16.msra.mxu1 %v19966_v41  ;;  %v20006_v41 = vld [vmem:[#allocation6 + $0xe30] sm:$0xff]  }
 0x1ec   :  { %v17861_v44 = vpop.f32.mrb[24].mxu0  ;;  %18185 = vmatprep.subr.bf16.mxu1 %v19968_v43  ;;  %v20007_v43 = vld [vmem:[#allocation6 + $0xeb0] sm:$0xff]  }
 0x1ed   :  { %v17862_v46 = vpop.f32.mrb[25].mxu0  ;;  %v17883_v48 = vpop.f32.mrb[24].mxu1 }
 0x1ee   :  { %v17863_v49 = vadd.f32 %v17862_v46, %v17861_v44  ;;  %v17864_v50 = vpop.f32.mrb[26].mxu0  ;;  %v17884_v53 = vpop.f32.mrb[25].mxu1  ;;  %18164 = vmatpush3.bf16.msra.mxu0 %v19969_v45  ;;  %v20008_v45 = vld [vmem:[#allocation6 + $0xe78] sm:$0xff]  }
 0x1ef   :  { %v17865_v54 = vpop.f32.mrb[27].mxu0  ;;  %v17885_v56 = vadd.f32 %v17884_v53, %v17883_v48  ;;  %v17886_v57 = vpop.f32.mrb[26].mxu1  ;;  %18165 = vmatprep.subr.bf16.mxu0 %v19971_v51  ;;  %18186 = vmatpush3.bf16.msra.mxu1 %v19970_v47  ;;  %v20009_v46 = vld [vmem:[#allocation6 + $0xef8] sm:$0xff]   ;;  %v65_v48 = vld [vmem:[#allocation3 + $0x38] sm:$0xff]  ;;  %v20012_v50 = vld [vmem:[#allocation6 + $0xf40] sm:$0xff]  }
 0x1f0   :  { %v13136_v55 = vadd.f32 %v17863_v49, %v21196_v4  ;;  %v17887_v59 = vpop.f32.mrb[27].mxu1  ;;  %18187 = vmatprep.subr.bf16.mxu1 %v19972_v52  ;;  %v19981_v4 = vld [vmem:[#allocation6 + $0xec0] sm:$0xff]   ;;  %v20010_v47 = vld [vmem:[#allocation6 + $0xe38] sm:$0xff]   ;;  %v3269_v49 = vrot.slane %v65_v48, %v21113_v35  ;;  %v3262_v51 = vcombine.high %v65_v48, %v65_v48  ;;  %v20049_v48 = vld [vmem:[#allocation6 + $0x1048] sm:$0xff]  }
 0x1f1   :  { %v20011_v52 = vld [vmem:[#allocation6 + $0xeb8] sm:$0xff]   ;;  %v20014_v57 = vld [vmem:[#allocation6 + $0xf00] sm:$0xff]  }
 0x1f2   :  { %v21208_v61 = vadd.f32 %v17885_v56, %v13136_v55  ;;  %18166 = vmatpush3.bf16.msra.mxu0 %v19973_v58  ;;  %v3277_v53 = vcombine.high %v3269_v49, %v3269_v49  ;;  %v3285_v54 = vrot.slane %v3269_v49, %v21113_v35  ;;  %v20013_v55 = vld [vmem:[#allocation6 + $0xfc0] sm:$0xff]   ;;  %v21218_v56 = vrot.slane %v3262_v51, %v21113_v35  ;;  %v20050_v49 = vld [vmem:[#allocation6 + $0x10c8] sm:$0xff]  }
 0x1f3   :  { %18167 = vmatprep.subr.bf16.mxu0 %v19975_v62  ;;  %18188 = vmatpush3.bf16.msra.mxu1 %v19974_v60  ;;  %v20015_v59 = vld [vmem:[#allocation6 + $0xf80] sm:$0xff]   ;;  %v20016_v62 = vld [vmem:[#allocation6 + $0xf48] sm:$0xff]  }
 0x1f4   :  { %18189 = vmatprep.subr.bf16.mxu1 %v19976_v63  ;;  %v3299_v58 = vrot.slane %v3277_v53, %v21113_v35  ;;  %v3278_v60 = vcombine.high %v21218_v56, %v21218_v56  ;;  %v20052_v51 = vld [vmem:[#allocation6 + $0x1088] sm:$0xff]   ;;  %v20054_v53 = vld [vmem:[#allocation6 + $0x10d0] sm:$0xff]  }
 0x1f6   :  { %18168 = vmatpush3.bf16.msra.mxu0 %v19977_v0  ;;  %v3309_v63 = vcombine.high %v3299_v58, %v3299_v58  ;;  %v20017_v0 = vld [vmem:[#allocation6 + $0xfc8] sm:$0xff]  }
 0x1f7   :  { %18197 = vmatprep.subr.bf16.mxu0 %v19980_v3  ;;  %18190 = vmatpush3.bf16.msra.mxu1 %v19978_v1  ;;  %v3306_v1 = vrot.slane %v3278_v60, %v21113_v35  ;;  %v20019_v3 = vld [vmem:[#allocation6 + $0xf88] sm:$0xff]   ;;  %v20061_v60 = vld [vmem:[#allocation6 + $0x1060] sm:$0xff]  }
 0x1f8   :  { %18219 = vmatprep.subr.bf16.mxu1 %v19981_v4 }
 0x1f9   :  { %13694 = vmatmul.mubr.bf16.vlgmr.msra.gmra.mrb[52].mxu0 %v3243_v2  ;;  %v20018_v2 = vld [vmem:[#allocation6 + $0xf08] sm:$0xff]   ;;  %v3310_v4 = vcombine.high %v3306_v1, %v3306_v1 }
 0x1fa   :  { %18198 = vmatpush3.bf16.msra.mxu0 %v19982_v5  ;;  %13734 = vmatmul.mubr.bf16.vlgmr.msra.gmra.mrb[52].mxu1 %v3259_v7  ;;  %v20020_v5 = vld [vmem:[#allocation6 + $0xf50] sm:$0xff]  }
 0x1fb   :  { %18199 = vmatprep.subr.bf16.mxu0 %v19984_v8  ;;  %18220 = vmatpush3.bf16.msra.mxu1 %v19983_v6  ;;  %v20021_v6 = vld [vmem:[#allocation6 + $0xfd0] sm:$0xff]  }
 0x1fc   :  { %18221 = vmatprep.subr.bf16.mxu1 %v19985_v9  ;;  %13773 = vmatprep.mubr.bf16.mxu0 %v3299_v58  ;;  %v20022_v7 = vld [vmem:[#allocation6 + $0xf10] sm:$0xff]   ;;  %v20024_v9 = vld [vmem:[#allocation6 + $0xf58] sm:$0xff]  }
 0x1fd   :  { %13813 = vmatprep.mubr.bf16.mxu1 %v3309_v63  ;;  %v20023_v8 = vld [vmem:[#allocation6 + $0xf90] sm:$0xff]   ;;  %v20059_v58 = vld [vmem:[#allocation6 + $0x1018] sm:$0xff]   ;;  %v20064_v63 = vld [vmem:[#allocation6 + $0x10a0] sm:$0xff]  }
 0x1fe   :  { %18200 = vmatpush3.bf16.msra.mxu0 %v19986_v10  ;;  %v20025_v10 = vld [vmem:[#allocation6 + $0xfd8] sm:$0xff]  }
 0x1ff   :  { %18201 = vmatprep.subr.bf16.mxu0 %v19988_v12  ;;  %18222 = vmatpush3.bf16.msra.mxu1 %v19987_v11  ;;  %v20026_v11 = vld [vmem:[#allocation6 + $0xf18] sm:$0xff]  }
 0x200   :  { %18223 = vmatprep.subr.bf16.mxu1 %v19989_v13  ;;  %v20027_v12 = vld [vmem:[#allocation6 + $0xf98] sm:$0xff]   ;;  %v20028_v13 = vld [vmem:[#allocation6 + $0xf60] sm:$0xff]  }
 0x202   :  { %18202 = vmatpush3.bf16.msra.mxu0 %v19990_v14  ;;  %v20029_v14 = vld [vmem:[#allocation6 + $0xfe0] sm:$0xff]  }
 0x203   :  { %18203 = vmatprep.subr.bf16.mxu0 %v19992_v16  ;;  %18224 = vmatpush3.bf16.msra.mxu1 %v19991_v15  ;;  %v20030_v15 = vld [vmem:[#allocation6 + $0xf20] sm:$0xff]  }
 0x204   :  { %18225 = vmatprep.subr.bf16.mxu1 %v19993_v17  ;;  %v20031_v16 = vld [vmem:[#allocation6 + $0xfa0] sm:$0xff]   ;;  %v20032_v17 = vld [vmem:[#allocation6 + $0xf68] sm:$0xff]  }
 0x206   :  { %18204 = vmatpush3.bf16.msra.mxu0 %v19994_v18  ;;  %v20033_v18 = vld [vmem:[#allocation6 + $0xfe8] sm:$0xff]  }
 0x207   :  { %18205 = vmatprep.subr.bf16.mxu0 %v19996_v20  ;;  %18226 = vmatpush3.bf16.msra.mxu1 %v19995_v19  ;;  %v20034_v20 = vld [vmem:[#allocation6 + $0xf28] sm:$0xff]  }
 0x208   :  { %18227 = vmatprep.subr.bf16.mxu1 %v19997_v21 }
 0x20a   :  { %18206 = vmatpush3.bf16.msra.mxu0 %v19998_v22  ;;  %v20035_v22 = vld [vmem:[#allocation6 + $0xfa8] sm:$0xff]  }
 0x20b   :  { %18207 = vmatprep.subr.bf16.mxu0 %v20000_v24  ;;  %18228 = vmatpush3.bf16.msra.mxu1 %v19999_v23 }
 0x20c   :  { %v17905_v26 = vpop.f32.mrb[28].mxu0  ;;  %18229 = vmatprep.subr.bf16.mxu1 %v20001_v25 }
 0x20d   :  { %v17906_v28 = vpop.f32.mrb[29].mxu0  ;;  %v17927_v30 = vpop.f32.mrb[28].mxu1 }
 0x20e   :  { %v17907_v31 = vadd.f32 %v17906_v28, %v17905_v26  ;;  %v17908_v32 = vpop.f32.mrb[30].mxu0  ;;  %v17928_v36 = vpop.f32.mrb[29].mxu1  ;;  %18208 = vmatpush3.bf16.msra.mxu0 %v20002_v27  ;;  %v20036_v26 = vld [vmem:[#allocation6 + $0xf70] sm:$0xff]  }
 0x20f   :  { %v17909_v37 = vpop.f32.mrb[31].mxu0  ;;  %v17929_v39 = vadd.f32 %v17928_v36, %v17927_v30  ;;  %v17930_v40 = vpop.f32.mrb[30].mxu1  ;;  %18209 = vmatprep.subr.bf16.mxu0 %v20004_v33  ;;  %18230 = vmatpush3.bf16.msra.mxu1 %v20003_v29  ;;  %v20037_v27 = vld [vmem:[#allocation6 + $0xff0] sm:$0xff]  }
 0x210   :  { %v13216_v38 = vadd.f32 %v17907_v31, %v21208_v61  ;;  %v17931_v42 = vpop.f32.mrb[31].mxu1  ;;  %18231 = vmatprep.subr.bf16.mxu1 %v20005_v34  ;;  %v3307_v61 = vcombine.high %v3285_v54, %v3285_v54  ;;  %v20038_v33 = vld [vmem:[#allocation6 + $0xf30] sm:$0xff]   ;;  %v20042_v40 = vld [vmem:[#allocation6 + $0xf38] sm:$0xff]  }
 0x211   :  { %v20039_v36 = vld [vmem:[#allocation6 + $0xfb0] sm:$0xff]   ;;  %v3292_v42 = vrot.slane %v21218_v56, %v21113_v35  ;;  %v20057_v56 = vld [vmem:[#allocation6 + $0x1058] sm:$0xff]  }
 0x212   :  { %v21213_v44 = vadd.f32 %v17929_v39, %v13216_v38  ;;  %18210 = vmatpush3.bf16.msra.mxu0 %v20006_v41  ;;  %v20040_v38 = vld [vmem:[#allocation6 + $0xf78] sm:$0xff]  }
 0x213   :  { %18211 = vmatprep.subr.bf16.mxu0 %v20008_v45  ;;  %18232 = vmatpush3.bf16.msra.mxu1 %v20007_v43  ;;  %v20041_v39 = vld [vmem:[#allocation6 + $0xff8] sm:$0xff]   ;;  %v20045_v43 = vld [vmem:[#allocation6 + $0x1040] sm:$0xff]  }
 0x214   :  { %18233 = vmatprep.subr.bf16.mxu1 %v20009_v46  ;;  %v20043_v41 = vld [vmem:[#allocation6 + $0xfb8] sm:$0xff]   ;;  %v20047_v45 = vld [vmem:[#allocation6 + $0x1000] sm:$0xff]  }
 0x215   :  { %v20048_v46 = vld [vmem:[#allocation6 + $0x1080] sm:$0xff]  }
 0x216   :  { %18212 = vmatpush3.bf16.msra.mxu0 %v20010_v47  ;;  %v3308_v47 = vcombine.high %v3292_v42, %v3292_v42 }
 0x217   :  { %18241 = vmatprep.subr.bf16.mxu0 %v20012_v50  ;;  %18234 = vmatpush3.bf16.msra.mxu1 %v20011_v52  ;;  %v20051_v50 = vld [vmem:[#allocation6 + $0x1008] sm:$0xff]   ;;  %v20053_v52 = vld [vmem:[#allocation6 + $0x1050] sm:$0xff]  }
 0x218   :  { %18263 = vmatprep.subr.bf16.mxu1 %v20013_v55  ;;  %v20056_v55 = vld [vmem:[#allocation6 + $0x1090] sm:$0xff]  }
 0x219   :  { %13774 = vmatmul.mubr.bf16.vlgmr.msra.gmra.mrb[56].mxu0 %v3285_v54  ;;  %v20055_v54 = vld [vmem:[#allocation6 + $0x1010] sm:$0xff]  }
 0x21a   :  { %18242 = vmatpush3.bf16.msra.mxu0 %v20014_v57  ;;  %13814 = vmatmul.mubr.bf16.vlgmr.msra.gmra.mrb[56].mxu1 %v3307_v61  ;;  %v20058_v57 = vld [vmem:[#allocation6 + $0x10d8] sm:$0xff]   ;;  %v20062_v61 = vld [vmem:[#allocation6 + $0x10e0] sm:$0xff]  }
 0x21b   :  { %18243 = vmatprep.subr.bf16.mxu0 %v20016_v62  ;;  %18264 = vmatpush3.bf16.msra.mxu1 %v20015_v59  ;;  %v20060_v59 = vld [vmem:[#allocation6 + $0x1098] sm:$0xff]   ;;  %v20063_v62 = vld [vmem:[#allocation6 + $0x1020] sm:$0xff]  }
 0x21c   :  { %13853 = vmatprep.mubr.bf16.mxu0 %v3306_v1  ;;  %18265 = vmatprep.subr.bf16.mxu1 %v20017_v0  ;;  %v20065_v0 = vld [vmem:[#allocation6 + $0x1068] sm:$0xff]  }
 0x21d   :  { %13893 = vmatprep.mubr.bf16.mxu1 %v3310_v4  ;;  %v20066_v1 = vld [vmem:[#allocation6 + $0x10e8] sm:$0xff]  }
 0x21e   :  { %18244 = vmatpush3.bf16.msra.mxu0 %v20018_v2 }
 0x21f   :  { %18245 = vmatprep.subr.bf16.mxu0 %v20020_v5  ;;  %18266 = vmatpush3.bf16.msra.mxu1 %v20019_v3  ;;  %v20067_v3 = vld [vmem:[#allocation6 + $0x1028] sm:$0xff]  }
 0x220   :  { %18267 = vmatprep.subr.bf16.mxu1 %v20021_v6  ;;  %v20068_v5 = vld [vmem:[#allocation6 + $0x10a8] sm:$0xff]  }
 0x222   :  { %18246 = vmatpush3.bf16.msra.mxu0 %v20022_v7 }
 0x223   :  { %18247 = vmatprep.subr.bf16.mxu0 %v20024_v9  ;;  %18268 = vmatpush3.bf16.msra.mxu1 %v20023_v8  ;;  %v20069_v9 = vld [vmem:[#allocation6 + $0x1070] sm:$0xff]  }
 0x224   :  { %18269 = vmatprep.subr.bf16.mxu1 %v20025_v10  ;;  %v20070_v10 = vld [vmem:[#allocation6 + $0x10f0] sm:$0xff]  }
 0x226   :  { %18248 = vmatpush3.bf16.msra.mxu0 %v20026_v11 }
 0x227   :  { %18249 = vmatprep.subr.bf16.mxu0 %v20028_v13  ;;  %18270 = vmatpush3.bf16.msra.mxu1 %v20027_v12 }
 0x228   :  { %18271 = vmatprep.subr.bf16.mxu1 %v20029_v14 }
 0x22a   :  { %18250 = vmatpush3.bf16.msra.mxu0 %v20030_v15 }
 0x22b   :  { %18251 = vmatprep.subr.bf16.mxu0 %v20032_v17  ;;  %18272 = vmatpush3.bf16.msra.mxu1 %v20031_v16  ;;  %v20071_v16 = vld [vmem:[#allocation6 + $0x1030] sm:$0xff]  }
 0x22c   :  { %v17949_v19 = vpop.f32.mrb[32].mxu0  ;;  %18273 = vmatprep.subr.bf16.mxu1 %v20033_v18  ;;  %v20072_v18 = vld [vmem:[#allocation6 + $0x10b0] sm:$0xff]  }
 0x22d   :  { %v17950_v21 = vpop.f32.mrb[33].mxu0  ;;  %v17971_v23 = vpop.f32.mrb[32].mxu1 }
 0x22e   :  { %v17951_v24 = vadd.f32 %v17950_v21, %v17949_v19  ;;  %v17952_v25 = vpop.f32.mrb[34].mxu0  ;;  %v17972_v28 = vpop.f32.mrb[33].mxu1  ;;  %18252 = vmatpush3.bf16.msra.mxu0 %v20034_v20  ;;  %v20073_v20 = vld [vmem:[#allocation6 + $0x1078] sm:$0xff]  }
 0x22f   :  { %v17953_v29 = vpop.f32.mrb[35].mxu0  ;;  %v17973_v31 = vadd.f32 %v17972_v28, %v17971_v23  ;;  %v17974_v32 = vpop.f32.mrb[34].mxu1  ;;  %18253 = vmatprep.subr.bf16.mxu0 %v20036_v26  ;;  %18274 = vmatpush3.bf16.msra.mxu1 %v20035_v22  ;;  %v20074_v21 = vld [vmem:[#allocation6 + $0x10f8] sm:$0xff]   ;;  %v66_v23 = vld [vmem:[#allocation3 + $0x40] sm:$0xff]  ;;  %v20077_v25 = vld [vmem:[#allocation6 + $0x1140] sm:$0xff]  }
 0x230   :  { %v13296_v30 = vadd.f32 %v17951_v24, %v21213_v44  ;;  %v17975_v34 = vpop.f32.mrb[35].mxu1  ;;  %18275 = vmatprep.subr.bf16.mxu1 %v20037_v27  ;;  %v20046_v44 = vld [vmem:[#allocation6 + $0x10c0] sm:$0xff]   ;;  %v20075_v22 = vld [vmem:[#allocation6 + $0x1038] sm:$0xff]   ;;  %v3318_v24 = vrot.slane %v66_v23, %v21113_v35  ;;  %v3311_v26 = vcombine.high %v66_v23, %v66_v23  ;;  %v20114_v23 = vld [vmem:[#allocation6 + $0x1248] sm:$0xff]  }
 0x231   :  { %v20076_v27 = vld [vmem:[#allocation6 + $0x10b8] sm:$0xff]   ;;  %v20079_v32 = vld [vmem:[#allocation6 + $0x1100] sm:$0xff]  }
 0x232   :  { %v21225_v37 = vadd.f32 %v17973_v31, %v13296_v30  ;;  %18254 = vmatpush3.bf16.msra.mxu0 %v20038_v33  ;;  %v3326_v28 = vcombine.high %v3318_v24, %v3318_v24  ;;  %v3334_v29 = vrot.slane %v3318_v24, %v21113_v35  ;;  %v20078_v30 = vld [vmem:[#allocation6 + $0x11c0] sm:$0xff]   ;;  %v21235_v31 = vrot.slane %v3311_v26, %v21113_v35  ;;  %v20115_v24 = vld [vmem:[#allocation6 + $0x12c8] sm:$0xff]  }
 0x233   :  { %18255 = vmatprep.subr.bf16.mxu0 %v20040_v38  ;;  %18276 = vmatpush3.bf16.msra.mxu1 %v20039_v36  ;;  %v20080_v34 = vld [vmem:[#allocation6 + $0x1180] sm:$0xff]   ;;  %v20081_v38 = vld [vmem:[#allocation6 + $0x1148] sm:$0xff]  }
 0x234   :  { %18277 = vmatprep.subr.bf16.mxu1 %v20041_v39  ;;  %v3348_v33 = vrot.slane %v3326_v28, %v21113_v35  ;;  %v3327_v36 = vcombine.high %v21235_v31, %v21235_v31  ;;  %v20117_v26 = vld [vmem:[#allocation6 + $0x1288] sm:$0xff]   ;;  %v20119_v28 = vld [vmem:[#allocation6 + $0x12d0] sm:$0xff]  }
 0x236   :  { %18256 = vmatpush3.bf16.msra.mxu0 %v20042_v40  ;;  %v3358_v39 = vcombine.high %v3348_v33, %v3348_v33  ;;  %v20082_v40 = vld [vmem:[#allocation6 + $0x11c8] sm:$0xff]  }
 0x237   :  { %18285 = vmatprep.subr.bf16.mxu0 %v20045_v43  ;;  %18278 = vmatpush3.bf16.msra.mxu1 %v20043_v41  ;;  %v3355_v41 = vrot.slane %v3327_v36, %v21113_v35  ;;  %v20084_v43 = vld [vmem:[#allocation6 + $0x1188] sm:$0xff]   ;;  %v20126_v36 = vld [vmem:[#allocation6 + $0x1260] sm:$0xff]  }
 0x238   :  { %18307 = vmatprep.subr.bf16.mxu1 %v20046_v44 }
 0x239   :  { %13854 = vmatmul.mubr.bf16.vlgmr.msra.gmra.mrb[60].mxu0 %v3292_v42  ;;  %v20083_v42 = vld [vmem:[#allocation6 + $0x1108] sm:$0xff]   ;;  %v3359_v44 = vcombine.high %v3355_v41, %v3355_v41 }
 0x23a   :  { %18286 = vmatpush3.bf16.msra.mxu0 %v20047_v45  ;;  %13894 = vmatmul.mubr.bf16.vlgmr.msra.gmra.mrb[60].mxu1 %v3308_v47  ;;  %v20085_v45 = vld [vmem:[#allocation6 + $0x1150] sm:$0xff]  }
 0x23b   :  { %18287 = vmatprep.subr.bf16.mxu0 %v20049_v48  ;;  %18308 = vmatpush3.bf16.msra.mxu1 %v20048_v46  ;;  %v20086_v46 = vld [vmem:[#allocation6 + $0x11d0] sm:$0xff]  }
 0x23c   :  { %18309 = vmatprep.subr.bf16.mxu1 %v20050_v49  ;;  %13933 = vmatprep.mubr.bf16.mxu0 %v3348_v33  ;;  %v20087_v47 = vld [vmem:[#allocation6 + $0x1110] sm:$0xff]   ;;  %v20089_v49 = vld [vmem:[#allocation6 + $0x1158] sm:$0xff]  }
 0x23d   :  { %13973 = vmatprep.mubr.bf16.mxu1 %v3358_v39  ;;  %v20088_v48 = vld [vmem:[#allocation6 + $0x1190] sm:$0xff]   ;;  %v20124_v33 = vld [vmem:[#allocation6 + $0x1218] sm:$0xff]   ;;  %v20129_v39 = vld [vmem:[#allocation6 + $0x12a0] sm:$0xff]  }
 0x23e   :  { %18288 = vmatpush3.bf16.msra.mxu0 %v20051_v50  ;;  %v20090_v50 = vld [vmem:[#allocation6 + $0x11d8] sm:$0xff]  }
 0x23f   :  { %18289 = vmatprep.subr.bf16.mxu0 %v20053_v52  ;;  %18310 = vmatpush3.bf16.msra.mxu1 %v20052_v51  ;;  %v20091_v51 = vld [vmem:[#allocation6 + $0x1118] sm:$0xff]  }
 0x240   :  { %18311 = vmatprep.subr.bf16.mxu1 %v20054_v53  ;;  %v20092_v52 = vld [vmem:[#allocation6 + $0x1198] sm:$0xff]   ;;  %v20093_v53 = vld [vmem:[#allocation6 + $0x1160] sm:$0xff]  }
 0x242   :  { %18290 = vmatpush3.bf16.msra.mxu0 %v20055_v54  ;;  %v20094_v54 = vld [vmem:[#allocation6 + $0x11e0] sm:$0xff]  }
 0x243   :  { %18291 = vmatprep.subr.bf16.mxu0 %v20057_v56  ;;  %18312 = vmatpush3.bf16.msra.mxu1 %v20056_v55  ;;  %v20095_v55 = vld [vmem:[#allocation6 + $0x1120] sm:$0xff]  }
 0x244   :  { %18313 = vmatprep.subr.bf16.mxu1 %v20058_v57  ;;  %v20096_v56 = vld [vmem:[#allocation6 + $0x11a0] sm:$0xff]   ;;  %v20097_v57 = vld [vmem:[#allocation6 + $0x1168] sm:$0xff]  }
 0x246   :  { %18292 = vmatpush3.bf16.msra.mxu0 %v20059_v58  ;;  %v20098_v58 = vld [vmem:[#allocation6 + $0x11e8] sm:$0xff]  }
 0x247   :  { %18293 = vmatprep.subr.bf16.mxu0 %v20061_v60  ;;  %18314 = vmatpush3.bf16.msra.mxu1 %v20060_v59  ;;  %v20099_v60 = vld [vmem:[#allocation6 + $0x1128] sm:$0xff]  }
 0x248   :  { %18315 = vmatprep.subr.bf16.mxu1 %v20062_v61 }
 0x24a   :  { %18294 = vmatpush3.bf16.msra.mxu0 %v20063_v62  ;;  %v20100_v62 = vld [vmem:[#allocation6 + $0x11a8] sm:$0xff]  }
 0x24b   :  { %18295 = vmatprep.subr.bf16.mxu0 %v20065_v0  ;;  %18316 = vmatpush3.bf16.msra.mxu1 %v20064_v63 }
 0x24c   :  { %v17993_v2 = vpop.f32.mrb[36].mxu0  ;;  %18317 = vmatprep.subr.bf16.mxu1 %v20066_v1 }
 0x24d   :  { %v17994_v4 = vpop.f32.mrb[37].mxu0  ;;  %v18015_v6 = vpop.f32.mrb[36].mxu1 }
 0x24e   :  { %v17995_v7 = vadd.f32 %v17994_v4, %v17993_v2  ;;  %v17996_v8 = vpop.f32.mrb[38].mxu0  ;;  %v18016_v11 = vpop.f32.mrb[37].mxu1  ;;  %18296 = vmatpush3.bf16.msra.mxu0 %v20067_v3  ;;  %v20101_v2 = vld [vmem:[#allocation6 + $0x1170] sm:$0xff]  }
 0x24f   :  { %v17997_v12 = vpop.f32.mrb[39].mxu0  ;;  %v18017_v14 = vadd.f32 %v18016_v11, %v18015_v6  ;;  %v18018_v15 = vpop.f32.mrb[38].mxu1  ;;  %18297 = vmatprep.subr.bf16.mxu0 %v20069_v9  ;;  %18318 = vmatpush3.bf16.msra.mxu1 %v20068_v5  ;;  %v20102_v3 = vld [vmem:[#allocation6 + $0x11f0] sm:$0xff]  }
 0x250   :  { %v13376_v13 = vadd.f32 %v17995_v7, %v21225_v37  ;;  %v18019_v17 = vpop.f32.mrb[39].mxu1  ;;  %18319 = vmatprep.subr.bf16.mxu1 %v20070_v10  ;;  %v3356_v37 = vcombine.high %v3334_v29, %v3334_v29  ;;  %v20103_v9 = vld [vmem:[#allocation6 + $0x1130] sm:$0xff]   ;;  %v20107_v15 = vld [vmem:[#allocation6 + $0x1138] sm:$0xff]  }
 0x251   :  { %v20104_v11 = vld [vmem:[#allocation6 + $0x11b0] sm:$0xff]   ;;  %v3341_v17 = vrot.slane %v21235_v31, %v21113_v35  ;;  %v20122_v31 = vld [vmem:[#allocation6 + $0x1258] sm:$0xff]  }
 0x252   :  { %v21230_v19 = vadd.f32 %v18017_v14, %v13376_v13  ;;  %18298 = vmatpush3.bf16.msra.mxu0 %v20071_v16  ;;  %v20105_v13 = vld [vmem:[#allocation6 + $0x1178] sm:$0xff]  }
 0x253   :  { %18299 = vmatprep.subr.bf16.mxu0 %v20073_v20  ;;  %18320 = vmatpush3.bf16.msra.mxu1 %v20072_v18  ;;  %v20106_v14 = vld [vmem:[#allocation6 + $0x11f8] sm:$0xff]   ;;  %v20110_v18 = vld [vmem:[#allocation6 + $0x1240] sm:$0xff]  }
 0x254   :  { %18321 = vmatprep.subr.bf16.mxu1 %v20074_v21  ;;  %v20108_v16 = vld [vmem:[#allocation6 + $0x11b8] sm:$0xff]   ;;  %v20112_v20 = vld [vmem:[#allocation6 + $0x1200] sm:$0xff]  }
 0x255   :  { %v20113_v21 = vld [vmem:[#allocation6 + $0x1280] sm:$0xff]  }
 0x256   :  { %18300 = vmatpush3.bf16.msra.mxu0 %v20075_v22  ;;  %v3357_v22 = vcombine.high %v3341_v17, %v3341_v17 }
 0x257   :  { %18329 = vmatprep.subr.bf16.mxu0 %v20077_v25  ;;  %18322 = vmatpush3.bf16.msra.mxu1 %v20076_v27  ;;  %v20116_v25 = vld [vmem:[#allocation6 + $0x1208] sm:$0xff]   ;;  %v20118_v27 = vld [vmem:[#allocation6 + $0x1250] sm:$0xff]  }
 0x258   :  { %18351 = vmatprep.subr.bf16.mxu1 %v20078_v30  ;;  %v20121_v30 = vld [vmem:[#allocation6 + $0x1290] sm:$0xff]  }
 0x259   :  { %13934 = vmatmul.mubr.bf16.vlgmr.msra.gmra.mrb[64].mxu0 %v3334_v29  ;;  %v20120_v29 = vld [vmem:[#allocation6 + $0x1210] sm:$0xff]  }
 0x25a   :  { %18330 = vmatpush3.bf16.msra.mxu0 %v20079_v32  ;;  %13974 = vmatmul.mubr.bf16.vlgmr.msra.gmra.mrb[64].mxu1 %v3356_v37  ;;  %v20123_v32 = vld [vmem:[#allocation6 + $0x12d8] sm:$0xff]   ;;  %v20127_v37 = vld [vmem:[#allocation6 + $0x12e0] sm:$0xff]  }
 0x25b   :  { %18331 = vmatprep.subr.bf16.mxu0 %v20081_v38  ;;  %18352 = vmatpush3.bf16.msra.mxu1 %v20080_v34  ;;  %v20125_v34 = vld [vmem:[#allocation6 + $0x1298] sm:$0xff]   ;;  %v20128_v38 = vld [vmem:[#allocation6 + $0x1220] sm:$0xff]  }
 0x25c   :  { %14013 = vmatprep.mubr.bf16.mxu0 %v3355_v41  ;;  %18353 = vmatprep.subr.bf16.mxu1 %v20082_v40  ;;  %v20130_v40 = vld [vmem:[#allocation6 + $0x1268] sm:$0xff]  }
 0x25d   :  { %14053 = vmatprep.mubr.bf16.mxu1 %v3359_v44  ;;  %v20131_v41 = vld [vmem:[#allocation6 + $0x12e8] sm:$0xff]  }
 0x25e   :  { %18332 = vmatpush3.bf16.msra.mxu0 %v20083_v42 }
 0x25f   :  { %18333 = vmatprep.subr.bf16.mxu0 %v20085_v45  ;;  %18354 = vmatpush3.bf16.msra.mxu1 %v20084_v43  ;;  %v20132_v43 = vld [vmem:[#allocation6 + $0x1228] sm:$0xff]  }
 0x260   :  { %18355 = vmatprep.subr.bf16.mxu1 %v20086_v46  ;;  %v20133_v45 = vld [vmem:[#allocation6 + $0x12a8] sm:$0xff]  }
 0x262   :  { %18334 = vmatpush3.bf16.msra.mxu0 %v20087_v47 }
 0x263   :  { %18335 = vmatprep.subr.bf16.mxu0 %v20089_v49  ;;  %18356 = vmatpush3.bf16.msra.mxu1 %v20088_v48  ;;  %v20134_v49 = vld [vmem:[#allocation6 + $0x1270] sm:$0xff]  }
 0x264   :  { %18357 = vmatprep.subr.bf16.mxu1 %v20090_v50  ;;  %v20135_v50 = vld [vmem:[#allocation6 + $0x12f0] sm:$0xff]  }
 0x266   :  { %18336 = vmatpush3.bf16.msra.mxu0 %v20091_v51 }
 0x267   :  { %18337 = vmatprep.subr.bf16.mxu0 %v20093_v53  ;;  %18358 = vmatpush3.bf16.msra.mxu1 %v20092_v52 }
 0x268   :  { %18359 = vmatprep.subr.bf16.mxu1 %v20094_v54 }
 0x26a   :  { %18338 = vmatpush3.bf16.msra.mxu0 %v20095_v55 }
 0x26b   :  { %18339 = vmatprep.subr.bf16.mxu0 %v20097_v57  ;;  %18360 = vmatpush3.bf16.msra.mxu1 %v20096_v56  ;;  %v20136_v56 = vld [vmem:[#allocation6 + $0x1230] sm:$0xff]  }
 0x26c   :  { %v18037_v59 = vpop.f32.mrb[40].mxu0  ;;  %18361 = vmatprep.subr.bf16.mxu1 %v20098_v58  ;;  %v20137_v58 = vld [vmem:[#allocation6 + $0x12b0] sm:$0xff]  }
 0x26d   :  { %v18038_v61 = vpop.f32.mrb[41].mxu0  ;;  %v18059_v63 = vpop.f32.mrb[40].mxu1 }
 0x26e   :  { %v18039_v0 = vadd.f32 %v18038_v61, %v18037_v59  ;;  %v18040_v1 = vpop.f32.mrb[42].mxu0  ;;  %v18060_v4 = vpop.f32.mrb[41].mxu1  ;;  %18340 = vmatpush3.bf16.msra.mxu0 %v20099_v60  ;;  %v20138_v60 = vld [vmem:[#allocation6 + $0x1278] sm:$0xff]  }
 0x26f   :  { %v18041_v5 = vpop.f32.mrb[43].mxu0  ;;  %v18061_v7 = vadd.f32 %v18060_v4, %v18059_v63  ;;  %v18062_v8 = vpop.f32.mrb[42].mxu1  ;;  %18341 = vmatprep.subr.bf16.mxu0 %v20101_v2  ;;  %18362 = vmatpush3.bf16.msra.mxu1 %v20100_v62  ;;  %v20139_v61 = vld [vmem:[#allocation6 + $0x12f8] sm:$0xff]   ;;  %v20142_v1 = vld [vmem:[#allocation6 + $0x1340] sm:$0xff]  }
 0x270   :  { %v13456_v6 = vadd.f32 %v18039_v0, %v21230_v19  ;;  %v18063_v10 = vpop.f32.mrb[43].mxu1  ;;  %18363 = vmatprep.subr.bf16.mxu1 %v20102_v3  ;;  %v20111_v19 = vld [vmem:[#allocation6 + $0x12c0] sm:$0xff]   ;;  %v20140_v62 = vld [vmem:[#allocation6 + $0x1238] sm:$0xff]  }
 0x271   :  { %v67_v63 = vld [vmem:[#allocation3 + $0x48] sm:$0xff]  ;;  %v20144_v8 = vld [vmem:[#allocation6 + $0x1300] sm:$0xff]  }
 0x272   :  { %v21242_v12 = vadd.f32 %v18061_v7, %v13456_v6  ;;  %18342 = vmatpush3.bf16.msra.mxu0 %v20103_v9  ;;  %v3367_v0 = vrot.slane %v67_v63, %v21113_v35  ;;  %v3360_v2 = vcombine.high %v67_v63, %v67_v63  ;;  %v20141_v3 = vld [vmem:[#allocation6 + $0x12b8] sm:$0xff]   ;;  %v20143_v6 = vld [vmem:[#allocation6 + $0x13c0] sm:$0xff]   ;;  %v20179_v63 = vld [vmem:[#allocation6 + $0x1448] sm:$0xff]  }
 0x273   :  { %18343 = vmatprep.subr.bf16.mxu0 %v20105_v13  ;;  %18364 = vmatpush3.bf16.msra.mxu1 %v20104_v11  ;;  %v20145_v10 = vld [vmem:[#allocation6 + $0x1380] sm:$0xff]   ;;  %v20146_v13 = vld [vmem:[#allocation6 + $0x1348] sm:$0xff]  }
 0x274   :  { %18365 = vmatprep.subr.bf16.mxu1 %v20106_v14  ;;  %v3375_v4 = vcombine.high %v3367_v0, %v3367_v0  ;;  %v3383_v5 = vrot.slane %v3367_v0, %v21113_v35  ;;  %v21252_v7 = vrot.slane %v3360_v2, %v21113_v35  ;;  %v20180_v0 = vld [vmem:[#allocation6 + $0x14c8] sm:$0xff]  }
 0x275   :  { %v20182_v2 = vld [vmem:[#allocation6 + $0x1488] sm:$0xff]  }
 0x276   :  { %18344 = vmatpush3.bf16.msra.mxu0 %v20107_v15  ;;  %v3397_v9 = vrot.slane %v3375_v4, %v21113_v35  ;;  %v3376_v11 = vcombine.high %v21252_v7, %v21252_v7  ;;  %v20147_v15 = vld [vmem:[#allocation6 + $0x13c8] sm:$0xff]   ;;  %v20184_v4 = vld [vmem:[#allocation6 + $0x14d0] sm:$0xff]  }
 0x277   :  { %18373 = vmatprep.subr.bf16.mxu0 %v20110_v18  ;;  %18366 = vmatpush3.bf16.msra.mxu1 %v20108_v16  ;;  %v20149_v18 = vld [vmem:[#allocation6 + $0x1388] sm:$0xff]  }
 0x278   :  { %18395 = vmatprep.subr.bf16.mxu1 %v20111_v19  ;;  %v3407_v14 = vcombine.high %v3397_v9, %v3397_v9  ;;  %v3404_v16 = vrot.slane %v3376_v11, %v21113_v35  ;;  %v20191_v11 = vld [vmem:[#allocation6 + $0x1460] sm:$0xff]  }
 0x279   :  { %14014 = vmatmul.mubr.bf16.vlgmr.msra.gmra.mrb[68].mxu0 %v3341_v17  ;;  %v20148_v17 = vld [vmem:[#allocation6 + $0x1308] sm:$0xff]  }
 0x27a   :  { %18374 = vmatpush3.bf16.msra.mxu0 %v20112_v20  ;;  %14054 = vmatmul.mubr.bf16.vlgmr.msra.gmra.mrb[68].mxu1 %v3357_v22  ;;  %v3408_v19 = vcombine.high %v3404_v16, %v3404_v16  ;;  %v20150_v20 = vld [vmem:[#allocation6 + $0x1350] sm:$0xff]  }
 0x27b   :  { %18375 = vmatprep.subr.bf16.mxu0 %v20114_v23  ;;  %18396 = vmatpush3.bf16.msra.mxu1 %v20113_v21  ;;  %v20151_v21 = vld [vmem:[#allocation6 + $0x13d0] sm:$0xff]  }
 0x27c   :  { %18397 = vmatprep.subr.bf16.mxu1 %v20115_v24  ;;  %14093 = vmatprep.mubr.bf16.mxu0 %v3397_v9  ;;  %v20152_v22 = vld [vmem:[#allocation6 + $0x1310] sm:$0xff]   ;;  %v20154_v24 = vld [vmem:[#allocation6 + $0x1358] sm:$0xff]  }
 0x27d   :  { %14133 = vmatprep.mubr.bf16.mxu1 %v3407_v14  ;;  %v20153_v23 = vld [vmem:[#allocation6 + $0x1390] sm:$0xff]   ;;  %v20189_v9 = vld [vmem:[#allocation6 + $0x1418] sm:$0xff]   ;;  %v20194_v14 = vld [vmem:[#allocation6 + $0x14a0] sm:$0xff]  }
 0x27e   :  { %18376 = vmatpush3.bf16.msra.mxu0 %v20116_v25  ;;  %v20155_v25 = vld [vmem:[#allocation6 + $0x13d8] sm:$0xff]  }
 0x27f   :  { %18377 = vmatprep.subr.bf16.mxu0 %v20118_v27  ;;  %18398 = vmatpush3.bf16.msra.mxu1 %v20117_v26  ;;  %v20156_v26 = vld [vmem:[#allocation6 + $0x1318] sm:$0xff]  }
 0x280   :  { %18399 = vmatprep.subr.bf16.mxu1 %v20119_v28  ;;  %v20157_v27 = vld [vmem:[#allocation6 + $0x1398] sm:$0xff]   ;;  %v20158_v28 = vld [vmem:[#allocation6 + $0x1360] sm:$0xff]  }
 0x282   :  { %18378 = vmatpush3.bf16.msra.mxu0 %v20120_v29  ;;  %v20159_v29 = vld [vmem:[#allocation6 + $0x13e0] sm:$0xff]  }
 0x283   :  { %18379 = vmatprep.subr.bf16.mxu0 %v20122_v31  ;;  %18400 = vmatpush3.bf16.msra.mxu1 %v20121_v30  ;;  %v20160_v30 = vld [vmem:[#allocation6 + $0x1320] sm:$0xff]  }
 0x284   :  { %18401 = vmatprep.subr.bf16.mxu1 %v20123_v32  ;;  %v20161_v31 = vld [vmem:[#allocation6 + $0x13a0] sm:$0xff]   ;;  %v20162_v32 = vld [vmem:[#allocation6 + $0x1368] sm:$0xff]  }
 0x286   :  { %18380 = vmatpush3.bf16.msra.mxu0 %v20124_v33  ;;  %v20163_v33 = vld [vmem:[#allocation6 + $0x13e8] sm:$0xff]  }
 0x287   :  { %18381 = vmatprep.subr.bf16.mxu0 %v20126_v36  ;;  %18402 = vmatpush3.bf16.msra.mxu1 %v20125_v34  ;;  %v20164_v36 = vld [vmem:[#allocation6 + $0x1328] sm:$0xff]  }
 0x288   :  { %18403 = vmatprep.subr.bf16.mxu1 %v20127_v37 }
 0x28a   :  { %18382 = vmatpush3.bf16.msra.mxu0 %v20128_v38  ;;  %v20165_v38 = vld [vmem:[#allocation6 + $0x13a8] sm:$0xff]  }
 0x28b   :  { %18383 = vmatprep.subr.bf16.mxu0 %v20130_v40  ;;  %18404 = vmatpush3.bf16.msra.mxu1 %v20129_v39 }
 0x28c   :  { %v18081_v42 = vpop.f32.mrb[44].mxu0  ;;  %18405 = vmatprep.subr.bf16.mxu1 %v20131_v41 }
 0x28d   :  { %v18082_v44 = vpop.f32.mrb[45].mxu0  ;;  %v18103_v46 = vpop.f32.mrb[44].mxu1 }
 0x28e   :  { %v18083_v47 = vadd.f32 %v18082_v44, %v18081_v42  ;;  %v18084_v48 = vpop.f32.mrb[46].mxu0  ;;  %v18104_v51 = vpop.f32.mrb[45].mxu1  ;;  %18384 = vmatpush3.bf16.msra.mxu0 %v20132_v43  ;;  %v20166_v42 = vld [vmem:[#allocation6 + $0x1370] sm:$0xff]  }
 0x28f   :  { %v18085_v52 = vpop.f32.mrb[47].mxu0  ;;  %v18105_v54 = vadd.f32 %v18104_v51, %v18103_v46  ;;  %v18106_v55 = vpop.f32.mrb[46].mxu1  ;;  %18385 = vmatprep.subr.bf16.mxu0 %v20134_v49  ;;  %18406 = vmatpush3.bf16.msra.mxu1 %v20133_v45  ;;  %v20167_v43 = vld [vmem:[#allocation6 + $0x13f0] sm:$0xff]  }
 0x290   :  { %v13536_v53 = vadd.f32 %v18083_v47, %v21242_v12  ;;  %v18107_v57 = vpop.f32.mrb[47].mxu1  ;;  %18407 = vmatprep.subr.bf16.mxu1 %v20135_v50  ;;  %v3405_v12 = vcombine.high %v3383_v5, %v3383_v5  ;;  %v20168_v49 = vld [vmem:[#allocation6 + $0x1330] sm:$0xff]   ;;  %v20172_v55 = vld [vmem:[#allocation6 + $0x1338] sm:$0xff]  }
 0x291   :  { %v20169_v51 = vld [vmem:[#allocation6 + $0x13b0] sm:$0xff]   ;;  %v3390_v57 = vrot.slane %v21252_v7, %v21113_v35  ;;  %v20187_v7 = vld [vmem:[#allocation6 + $0x1458] sm:$0xff]  }
 0x292   :  { %v21247_v59 = vadd.f32 %v18105_v54, %v13536_v53  ;;  %18386 = vmatpush3.bf16.msra.mxu0 %v20136_v56  ;;  %v20170_v53 = vld [vmem:[#allocation6 + $0x1378] sm:$0xff]  }
 0x293   :  { %18387 = vmatprep.subr.bf16.mxu0 %v20138_v60  ;;  %18408 = vmatpush3.bf16.msra.mxu1 %v20137_v58  ;;  %v20171_v54 = vld [vmem:[#allocation6 + $0x13f8] sm:$0xff]   ;;  %v20175_v58 = vld [vmem:[#allocation6 + $0x1440] sm:$0xff]  }
 0x294   :  { %18409 = vmatprep.subr.bf16.mxu1 %v20139_v61  ;;  %v20173_v56 = vld [vmem:[#allocation6 + $0x13b8] sm:$0xff]   ;;  %v20177_v60 = vld [vmem:[#allocation6 + $0x1400] sm:$0xff]  }
 0x295   :  { %v20178_v61 = vld [vmem:[#allocation6 + $0x1480] sm:$0xff]  }
 0x296   :  { %18388 = vmatpush3.bf16.msra.mxu0 %v20140_v62  ;;  %v3406_v62 = vcombine.high %v3390_v57, %v3390_v57 }
 0x297   :  { %18417 = vmatprep.subr.bf16.mxu0 %v20142_v1  ;;  %18410 = vmatpush3.bf16.msra.mxu1 %v20141_v3  ;;  %v20181_v1 = vld [vmem:[#allocation6 + $0x1408] sm:$0xff]   ;;  %v20183_v3 = vld [vmem:[#allocation6 + $0x1450] sm:$0xff]  }
 0x298   :  { %18439 = vmatprep.subr.bf16.mxu1 %v20143_v6  ;;  %v20186_v6 = vld [vmem:[#allocation6 + $0x1490] sm:$0xff]  }
 0x299   :  { %14094 = vmatmul.mubr.bf16.vlgmr.msra.gmra.mrb[72].mxu0 %v3383_v5  ;;  %v20185_v5 = vld [vmem:[#allocation6 + $0x1410] sm:$0xff]  }
 0x29a   :  { %18418 = vmatpush3.bf16.msra.mxu0 %v20144_v8  ;;  %14134 = vmatmul.mubr.bf16.vlgmr.msra.gmra.mrb[72].mxu1 %v3405_v12  ;;  %v20188_v8 = vld [vmem:[#allocation6 + $0x14d8] sm:$0xff]   ;;  %v20192_v12 = vld [vmem:[#allocation6 + $0x14e0] sm:$0xff]  }
 0x29b   :  { %18419 = vmatprep.subr.bf16.mxu0 %v20146_v13  ;;  %18440 = vmatpush3.bf16.msra.mxu1 %v20145_v10  ;;  %v20190_v10 = vld [vmem:[#allocation6 + $0x1498] sm:$0xff]   ;;  %v20193_v13 = vld [vmem:[#allocation6 + $0x1420] sm:$0xff]  }
 0x29c   :  { %14173 = vmatprep.mubr.bf16.mxu0 %v3404_v16  ;;  %18441 = vmatprep.subr.bf16.mxu1 %v20147_v15  ;;  %v20195_v15 = vld [vmem:[#allocation6 + $0x1468] sm:$0xff]  }
 0x29d   :  { %14213 = vmatprep.mubr.bf16.mxu1 %v3408_v19  ;;  %v20196_v16 = vld [vmem:[#allocation6 + $0x14e8] sm:$0xff]  }
 0x29e   :  { %18420 = vmatpush3.bf16.msra.mxu0 %v20148_v17 }
 0x29f   :  { %18421 = vmatprep.subr.bf16.mxu0 %v20150_v20  ;;  %18442 = vmatpush3.bf16.msra.mxu1 %v20149_v18  ;;  %v20197_v18 = vld [vmem:[#allocation6 + $0x1428] sm:$0xff]  }
 0x2a0   :  { %18443 = vmatprep.subr.bf16.mxu1 %v20151_v21  ;;  %v20198_v20 = vld [vmem:[#allocation6 + $0x14a8] sm:$0xff]  }
 0x2a2   :  { %18422 = vmatpush3.bf16.msra.mxu0 %v20152_v22 }
 0x2a3   :  { %18423 = vmatprep.subr.bf16.mxu0 %v20154_v24  ;;  %18444 = vmatpush3.bf16.msra.mxu1 %v20153_v23  ;;  %v20199_v24 = vld [vmem:[#allocation6 + $0x1470] sm:$0xff]  }
 0x2a4   :  { %18445 = vmatprep.subr.bf16.mxu1 %v20155_v25  ;;  %v20200_v25 = vld [vmem:[#allocation6 + $0x14f0] sm:$0xff]  }
 0x2a6   :  { %18424 = vmatpush3.bf16.msra.mxu0 %v20156_v26 }
 0x2a7   :  { %18425 = vmatprep.subr.bf16.mxu0 %v20158_v28  ;;  %18446 = vmatpush3.bf16.msra.mxu1 %v20157_v27 }
 0x2a8   :  { %18447 = vmatprep.subr.bf16.mxu1 %v20159_v29 }
 0x2aa   :  { %18426 = vmatpush3.bf16.msra.mxu0 %v20160_v30 }
 0x2ab   :  { %18427 = vmatprep.subr.bf16.mxu0 %v20162_v32  ;;  %18448 = vmatpush3.bf16.msra.mxu1 %v20161_v31  ;;  %v20201_v31 = vld [vmem:[#allocation6 + $0x1430] sm:$0xff]  }
 0x2ac   :  { %v18125_v34 = vpop.f32.mrb[48].mxu0  ;;  %18449 = vmatprep.subr.bf16.mxu1 %v20163_v33  ;;  %v20202_v33 = vld [vmem:[#allocation6 + $0x14b0] sm:$0xff]  }
 0x2ad   :  { %v18126_v37 = vpop.f32.mrb[49].mxu0  ;;  %v18147_v39 = vpop.f32.mrb[48].mxu1 }
 0x2ae   :  { %v18127_v40 = vadd.f32 %v18126_v37, %v18125_v34  ;;  %v18128_v41 = vpop.f32.mrb[50].mxu0  ;;  %v18148_v44 = vpop.f32.mrb[49].mxu1  ;;  %18428 = vmatpush3.bf16.msra.mxu0 %v20164_v36  ;;  %v20203_v36 = vld [vmem:[#allocation6 + $0x1478] sm:$0xff]  }
 0x2af   :  { %v18129_v45 = vpop.f32.mrb[51].mxu0  ;;  %v18149_v47 = vadd.f32 %v18148_v44, %v18147_v39  ;;  %v18150_v48 = vpop.f32.mrb[50].mxu1  ;;  %18429 = vmatprep.subr.bf16.mxu0 %v20166_v42  ;;  %18450 = vmatpush3.bf16.msra.mxu1 %v20165_v38  ;;  %v20204_v37 = vld [vmem:[#allocation6 + $0x14f8] sm:$0xff]   ;;  %v68_v39 = vld [vmem:[#allocation3 + $0x50] sm:$0xff] }
 0x2b0   :  { %v13616_v46 = vadd.f32 %v18127_v40, %v21247_v59  ;;  %v18151_v50 = vpop.f32.mrb[51].mxu1  ;;  %18451 = vmatprep.subr.bf16.mxu1 %v20167_v43  ;;  %v20176_v59 = vld [vmem:[#allocation6 + $0x14c0] sm:$0xff]   ;;  %v20205_v38 = vld [vmem:[#allocation6 + $0x1438] sm:$0xff]   ;;  %v3416_v40 = vrot.slane %v68_v39, %v21113_v35  ;;  %v3409_v42 = vcombine.high %v68_v39, %v68_v39  ;;  %v20244_v39 = vld [vmem:[#allocation6 + $0x1648] sm:$0xff]  }
 0x2b1   :  { %v20207_v41 = vld [vmem:[#allocation6 + $0x1540] sm:$0xff]   ;;  %v20206_v43 = vld [vmem:[#allocation6 + $0x14b8] sm:$0xff]  }
 0x2b2   :  { %v21259_v52 = vadd.f32 %v18149_v47, %v13616_v46  ;;  %18430 = vmatpush3.bf16.msra.mxu0 %v20168_v49  ;;  %v3424_v44 = vcombine.high %v3416_v40, %v3416_v40  ;;  %v3432_v45 = vrot.slane %v3416_v40, %v21113_v35  ;;  %v20208_v46 = vld [vmem:[#allocation6 + $0x15c0] sm:$0xff]   ;;  %v21269_v47 = vrot.slane %v3409_v42, %v21113_v35  ;;  %v20245_v40 = vld [vmem:[#allocation6 + $0x16c8] sm:$0xff]  }
 0x2b3   :  { %18431 = vmatprep.subr.bf16.mxu0 %v20170_v53  ;;  %18452 = vmatpush3.bf16.msra.mxu1 %v20169_v51  ;;  %v20209_v48 = vld [vmem:[#allocation6 + $0x1500] sm:$0xff]   ;;  %v20211_v53 = vld [vmem:[#allocation6 + $0x1548] sm:$0xff]  }
 0x2b4   :  { %18453 = vmatprep.subr.bf16.mxu1 %v20171_v54  ;;  %v3446_v49 = vrot.slane %v3424_v44, %v21113_v35  ;;  %v20210_v50 = vld [vmem:[#allocation6 + $0x1580] sm:$0xff]   ;;  %v3425_v51 = vcombine.high %v21269_v47, %v21269_v47  ;;  %v20247_v42 = vld [vmem:[#allocation6 + $0x1688] sm:$0xff]   ;;  %v20249_v44 = vld [vmem:[#allocation6 + $0x16d0] sm:$0xff]  }
 0x2b6   :  { %18432 = vmatpush3.bf16.msra.mxu0 %v20172_v55  ;;  %v3456_v54 = vcombine.high %v3446_v49, %v3446_v49  ;;  %v20212_v55 = vld [vmem:[#allocation6 + $0x15c8] sm:$0xff]  }
 0x2b7   :  { %18461 = vmatprep.subr.bf16.mxu0 %v20175_v58  ;;  %18454 = vmatpush3.bf16.msra.mxu1 %v20173_v56  ;;  %v3453_v56 = vrot.slane %v3425_v51, %v21113_v35  ;;  %v20214_v58 = vld [vmem:[#allocation6 + $0x1588] sm:$0xff]   ;;  %v20256_v51 = vld [vmem:[#allocation6 + $0x1660] sm:$0xff]  }
 0x2b8   :  { %18483 = vmatprep.subr.bf16.mxu1 %v20176_v59 }
 0x2b9   :  { %14174 = vmatmul.mubr.bf16.vlgmr.msra.gmra.mrb[76].mxu0 %v3390_v57  ;;  %v20213_v57 = vld [vmem:[#allocation6 + $0x1508] sm:$0xff]   ;;  %v3457_v59 = vcombine.high %v3453_v56, %v3453_v56 }
 0x2ba   :  { %18462 = vmatpush3.bf16.msra.mxu0 %v20177_v60  ;;  %14214 = vmatmul.mubr.bf16.vlgmr.msra.gmra.mrb[76].mxu1 %v3406_v62  ;;  %v20215_v60 = vld [vmem:[#allocation6 + $0x1550] sm:$0xff]  }
 0x2bb   :  { %18463 = vmatprep.subr.bf16.mxu0 %v20179_v63  ;;  %18484 = vmatpush3.bf16.msra.mxu1 %v20178_v61  ;;  %v20216_v61 = vld [vmem:[#allocation6 + $0x15d0] sm:$0xff]  }
 0x2bc   :  { %18485 = vmatprep.subr.bf16.mxu1 %v20180_v0  ;;  %14253 = vmatprep.mubr.bf16.mxu0 %v3446_v49  ;;  %v20217_v62 = vld [vmem:[#allocation6 + $0x1510] sm:$0xff]   ;;  %v20219_v0 = vld [vmem:[#allocation6 + $0x1558] sm:$0xff]  }
 0x2bd   :  { %14293 = vmatprep.mubr.bf16.mxu1 %v3456_v54  ;;  %v20218_v63 = vld [vmem:[#allocation6 + $0x1590] sm:$0xff]   ;;  %v20254_v49 = vld [vmem:[#allocation6 + $0x1618] sm:$0xff]   ;;  %v20259_v54 = vld [vmem:[#allocation6 + $0x16a0] sm:$0xff]  }
 0x2be   :  { %18464 = vmatpush3.bf16.msra.mxu0 %v20181_v1  ;;  %v20220_v1 = vld [vmem:[#allocation6 + $0x15d8] sm:$0xff]  }
 0x2bf   :  { %18465 = vmatprep.subr.bf16.mxu0 %v20183_v3  ;;  %18486 = vmatpush3.bf16.msra.mxu1 %v20182_v2  ;;  %v20221_v2 = vld [vmem:[#allocation6 + $0x1518] sm:$0xff]  }
 0x2c0   :  { %18487 = vmatprep.subr.bf16.mxu1 %v20184_v4  ;;  %v20222_v3 = vld [vmem:[#allocation6 + $0x1598] sm:$0xff]   ;;  %v20223_v4 = vld [vmem:[#allocation6 + $0x1560] sm:$0xff]  }
 0x2c2   :  { %18466 = vmatpush3.bf16.msra.mxu0 %v20185_v5  ;;  %v20224_v5 = vld [vmem:[#allocation6 + $0x15e0] sm:$0xff]  }
 0x2c3   :  { %18467 = vmatprep.subr.bf16.mxu0 %v20187_v7  ;;  %18488 = vmatpush3.bf16.msra.mxu1 %v20186_v6  ;;  %v20225_v6 = vld [vmem:[#allocation6 + $0x1520] sm:$0xff]  }
 0x2c4   :  { %18489 = vmatprep.subr.bf16.mxu1 %v20188_v8  ;;  %v20226_v7 = vld [vmem:[#allocation6 + $0x15a0] sm:$0xff]   ;;  %v20227_v8 = vld [vmem:[#allocation6 + $0x1568] sm:$0xff]  }
 0x2c6   :  { %18468 = vmatpush3.bf16.msra.mxu0 %v20189_v9  ;;  %v20228_v9 = vld [vmem:[#allocation6 + $0x15e8] sm:$0xff]  }
 0x2c7   :  { %18469 = vmatprep.subr.bf16.mxu0 %v20191_v11  ;;  %18490 = vmatpush3.bf16.msra.mxu1 %v20190_v10  ;;  %v20229_v11 = vld [vmem:[#allocation6 + $0x1528] sm:$0xff]  }
 0x2c8   :  { %18491 = vmatprep.subr.bf16.mxu1 %v20192_v12 }
 0x2ca   :  { %18470 = vmatpush3.bf16.msra.mxu0 %v20193_v13  ;;  %v20230_v13 = vld [vmem:[#allocation6 + $0x15a8] sm:$0xff]  }
 0x2cb   :  { %18471 = vmatprep.subr.bf16.mxu0 %v20195_v15  ;;  %18492 = vmatpush3.bf16.msra.mxu1 %v20194_v14 }
 0x2cc   :  { %v18169_v17 = vpop.f32.mrb[52].mxu0  ;;  %18493 = vmatprep.subr.bf16.mxu1 %v20196_v16 }
 0x2cd   :  { %v18170_v19 = vpop.f32.mrb[53].mxu0  ;;  %v18191_v21 = vpop.f32.mrb[52].mxu1 }
 0x2ce   :  { %v18171_v22 = vadd.f32 %v18170_v19, %v18169_v17  ;;  %v18172_v23 = vpop.f32.mrb[54].mxu0  ;;  %v18192_v26 = vpop.f32.mrb[53].mxu1  ;;  %18472 = vmatpush3.bf16.msra.mxu0 %v20197_v18  ;;  %v20231_v17 = vld [vmem:[#allocation6 + $0x1570] sm:$0xff]  }
 0x2cf   :  { %v18173_v27 = vpop.f32.mrb[55].mxu0  ;;  %v18193_v29 = vadd.f32 %v18192_v26, %v18191_v21  ;;  %v18194_v30 = vpop.f32.mrb[54].mxu1  ;;  %18473 = vmatprep.subr.bf16.mxu0 %v20199_v24  ;;  %18494 = vmatpush3.bf16.msra.mxu1 %v20198_v20  ;;  %v20232_v18 = vld [vmem:[#allocation6 + $0x15f0] sm:$0xff]  }
 0x2d0   :  { %v13696_v28 = vadd.f32 %v18171_v22, %v21259_v52  ;;  %v18195_v32 = vpop.f32.mrb[55].mxu1  ;;  %18495 = vmatprep.subr.bf16.mxu1 %v20200_v25  ;;  %v3454_v52 = vcombine.high %v3432_v45, %v3432_v45  ;;  %v20233_v24 = vld [vmem:[#allocation6 + $0x1530] sm:$0xff]   ;;  %v20237_v30 = vld [vmem:[#allocation6 + $0x1538] sm:$0xff]  }
 0x2d1   :  { %v20234_v26 = vld [vmem:[#allocation6 + $0x15b0] sm:$0xff]   ;;  %v3439_v32 = vrot.slane %v21269_v47, %v21113_v35  ;;  %v20252_v47 = vld [vmem:[#allocation6 + $0x1658] sm:$0xff]  }
 0x2d2   :  { %v21264_v34 = vadd.f32 %v18193_v29, %v13696_v28  ;;  %18474 = vmatpush3.bf16.msra.mxu0 %v20201_v31  ;;  %v20235_v28 = vld [vmem:[#allocation6 + $0x1578] sm:$0xff]  }
 0x2d3   :  { %18475 = vmatprep.subr.bf16.mxu0 %v20203_v36  ;;  %18496 = vmatpush3.bf16.msra.mxu1 %v20202_v33  ;;  %v20236_v29 = vld [vmem:[#allocation6 + $0x15f8] sm:$0xff]   ;;  %v20240_v33 = vld [vmem:[#allocation6 + $0x1640] sm:$0xff]  }
 0x2d4   :  { %18497 = vmatprep.subr.bf16.mxu1 %v20204_v37  ;;  %v20238_v31 = vld [vmem:[#allocation6 + $0x15b8] sm:$0xff]   ;;  %v20242_v36 = vld [vmem:[#allocation6 + $0x1600] sm:$0xff]  }
 0x2d5   :  { %v20243_v37 = vld [vmem:[#allocation6 + $0x1680] sm:$0xff]  }
 0x2d6   :  { %18476 = vmatpush3.bf16.msra.mxu0 %v20205_v38  ;;  %v3455_v38 = vcombine.high %v3439_v32, %v3439_v32 }
 0x2d7   :  { %18505 = vmatprep.subr.bf16.mxu0 %v20207_v41  ;;  %18498 = vmatpush3.bf16.msra.mxu1 %v20206_v43  ;;  %v20246_v41 = vld [vmem:[#allocation6 + $0x1608] sm:$0xff]   ;;  %v20248_v43 = vld [vmem:[#allocation6 + $0x1650] sm:$0xff]  }
 0x2d8   :  { %18527 = vmatprep.subr.bf16.mxu1 %v20208_v46  ;;  %v20251_v46 = vld [vmem:[#allocation6 + $0x1690] sm:$0xff]  }
 0x2d9   :  { %14254 = vmatmul.mubr.bf16.vlgmr.msra.gmra.mrb[80].mxu0 %v3432_v45  ;;  %v20250_v45 = vld [vmem:[#allocation6 + $0x1610] sm:$0xff]  }
 0x2da   :  { %18506 = vmatpush3.bf16.msra.mxu0 %v20209_v48  ;;  %14294 = vmatmul.mubr.bf16.vlgmr.msra.gmra.mrb[80].mxu1 %v3454_v52  ;;  %v20253_v48 = vld [vmem:[#allocation6 + $0x16d8] sm:$0xff]   ;;  %v20257_v52 = vld [vmem:[#allocation6 + $0x16e0] sm:$0xff]  }
 0x2db   :  { %18507 = vmatprep.subr.bf16.mxu0 %v20211_v53  ;;  %18528 = vmatpush3.bf16.msra.mxu1 %v20210_v50  ;;  %v20255_v50 = vld [vmem:[#allocation6 + $0x1698] sm:$0xff]   ;;  %v20258_v53 = vld [vmem:[#allocation6 + $0x1620] sm:$0xff]  }
 0x2dc   :  { %14333 = vmatprep.mubr.bf16.mxu0 %v3453_v56  ;;  %18529 = vmatprep.subr.bf16.mxu1 %v20212_v55  ;;  %v20260_v55 = vld [vmem:[#allocation6 + $0x1668] sm:$0xff]  }
 0x2dd   :  { %14373 = vmatprep.mubr.bf16.mxu1 %v3457_v59  ;;  %v20261_v56 = vld [vmem:[#allocation6 + $0x16e8] sm:$0xff]  }
 0x2de   :  { %18508 = vmatpush3.bf16.msra.mxu0 %v20213_v57 }
 0x2df   :  { %18509 = vmatprep.subr.bf16.mxu0 %v20215_v60  ;;  %18530 = vmatpush3.bf16.msra.mxu1 %v20214_v58  ;;  %v20262_v58 = vld [vmem:[#allocation6 + $0x1628] sm:$0xff]  }
 0x2e0   :  { %18531 = vmatprep.subr.bf16.mxu1 %v20216_v61  ;;  %v20263_v60 = vld [vmem:[#allocation6 + $0x16a8] sm:$0xff]  }
 0x2e2   :  { %18510 = vmatpush3.bf16.msra.mxu0 %v20217_v62 }
 0x2e3   :  { %18511 = vmatprep.subr.bf16.mxu0 %v20219_v0  ;;  %18532 = vmatpush3.bf16.msra.mxu1 %v20218_v63  ;;  %v20264_v0 = vld [vmem:[#allocation6 + $0x1670] sm:$0xff]  }
 0x2e4   :  { %18533 = vmatprep.subr.bf16.mxu1 %v20220_v1  ;;  %v20265_v1 = vld [vmem:[#allocation6 + $0x16f0] sm:$0xff]  }
 0x2e6   :  { %18512 = vmatpush3.bf16.msra.mxu0 %v20221_v2 }
 0x2e7   :  { %18513 = vmatprep.subr.bf16.mxu0 %v20223_v4  ;;  %18534 = vmatpush3.bf16.msra.mxu1 %v20222_v3 }
 0x2e8   :  { %18535 = vmatprep.subr.bf16.mxu1 %v20224_v5 }
 0x2ea   :  { %18514 = vmatpush3.bf16.msra.mxu0 %v20225_v6 }
 0x2eb   :  { %18515 = vmatprep.subr.bf16.mxu0 %v20227_v8  ;;  %18536 = vmatpush3.bf16.msra.mxu1 %v20226_v7  ;;  %v20266_v7 = vld [vmem:[#allocation6 + $0x1630] sm:$0xff]  }
 0x2ec   :  { %v18213_v10 = vpop.f32.mrb[56].mxu0  ;;  %18537 = vmatprep.subr.bf16.mxu1 %v20228_v9  ;;  %v20267_v9 = vld [vmem:[#allocation6 + $0x16b0] sm:$0xff]  }
 0x2ed   :  { %v18214_v12 = vpop.f32.mrb[57].mxu0  ;;  %v18235_v14 = vpop.f32.mrb[56].mxu1 }
 0x2ee   :  { %v18215_v15 = vadd.f32 %v18214_v12, %v18213_v10  ;;  %v18216_v16 = vpop.f32.mrb[58].mxu0  ;;  %v18236_v19 = vpop.f32.mrb[57].mxu1  ;;  %18516 = vmatpush3.bf16.msra.mxu0 %v20229_v11  ;;  %v20268_v11 = vld [vmem:[#allocation6 + $0x1678] sm:$0xff]  }
 0x2ef   :  { %v18217_v20 = vpop.f32.mrb[59].mxu0  ;;  %v18237_v22 = vadd.f32 %v18236_v19, %v18235_v14  ;;  %v18238_v23 = vpop.f32.mrb[58].mxu1  ;;  %18517 = vmatprep.subr.bf16.mxu0 %v20231_v17  ;;  %18538 = vmatpush3.bf16.msra.mxu1 %v20230_v13  ;;  %v20269_v12 = vld [vmem:[#allocation6 + $0x16f8] sm:$0xff]   ;;  %v69_v14 = vld [vmem:[#allocation3 + $0x58] sm:$0xff]  ;;  %v20272_v16 = vld [vmem:[#allocation6 + $0x1740] sm:$0xff]  }
 0x2f0   :  { %v13776_v21 = vadd.f32 %v18215_v15, %v21264_v34  ;;  %v18239_v25 = vpop.f32.mrb[59].mxu1  ;;  %18539 = vmatprep.subr.bf16.mxu1 %v20232_v18  ;;  %v20241_v34 = vld [vmem:[#allocation6 + $0x16c0] sm:$0xff]   ;;  %v20270_v13 = vld [vmem:[#allocation6 + $0x1638] sm:$0xff]   ;;  %v3465_v15 = vrot.slane %v69_v14, %v21113_v35  ;;  %v3458_v17 = vcombine.high %v69_v14, %v69_v14  ;;  %v20309_v14 = vld [vmem:[#allocation6 + $0x1848] sm:$0xff]  }
 0x2f1   :  { %v20271_v18 = vld [vmem:[#allocation6 + $0x16b8] sm:$0xff]   ;;  %v20274_v23 = vld [vmem:[#allocation6 + $0x1700] sm:$0xff]  }
 0x2f2   :  { %v21276_v27 = vadd.f32 %v18237_v22, %v13776_v21  ;;  %18518 = vmatpush3.bf16.msra.mxu0 %v20233_v24  ;;  %v3473_v19 = vcombine.high %v3465_v15, %v3465_v15  ;;  %v3481_v20 = vrot.slane %v3465_v15, %v21113_v35  ;;  %v20273_v21 = vld [vmem:[#allocation6 + $0x17c0] sm:$0xff]   ;;  %v21286_v22 = vrot.slane %v3458_v17, %v21113_v35  ;;  %v20310_v15 = vld [vmem:[#allocation6 + $0x18c8] sm:$0xff]  }
 0x2f3   :  { %18519 = vmatprep.subr.bf16.mxu0 %v20235_v28  ;;  %18540 = vmatpush3.bf16.msra.mxu1 %v20234_v26  ;;  %v20275_v25 = vld [vmem:[#allocation6 + $0x1780] sm:$0xff]   ;;  %v20276_v28 = vld [vmem:[#allocation6 + $0x1748] sm:$0xff]  }
 0x2f4   :  { %18541 = vmatprep.subr.bf16.mxu1 %v20236_v29  ;;  %v3495_v24 = vrot.slane %v3473_v19, %v21113_v35  ;;  %v3474_v26 = vcombine.high %v21286_v22, %v21286_v22  ;;  %v20312_v17 = vld [vmem:[#allocation6 + $0x1888] sm:$0xff]   ;;  %v20314_v19 = vld [vmem:[#allocation6 + $0x18d0] sm:$0xff]  }
 0x2f6   :  { %18520 = vmatpush3.bf16.msra.mxu0 %v20237_v30  ;;  %v3505_v29 = vcombine.high %v3495_v24, %v3495_v24  ;;  %v20277_v30 = vld [vmem:[#allocation6 + $0x17c8] sm:$0xff]  }
 0x2f7   :  { %18549 = vmatprep.subr.bf16.mxu0 %v20240_v33  ;;  %18542 = vmatpush3.bf16.msra.mxu1 %v20238_v31  ;;  %v3502_v31 = vrot.slane %v3474_v26, %v21113_v35  ;;  %v20279_v33 = vld [vmem:[#allocation6 + $0x1788] sm:$0xff]   ;;  %v20321_v26 = vld [vmem:[#allocation6 + $0x1860] sm:$0xff]  }
 0x2f8   :  { %18571 = vmatprep.subr.bf16.mxu1 %v20241_v34 }
 0x2f9   :  { %14334 = vmatmul.mubr.bf16.vlgmr.msra.gmra.mrb[84].mxu0 %v3439_v32  ;;  %v20278_v32 = vld [vmem:[#allocation6 + $0x1708] sm:$0xff]   ;;  %v3506_v34 = vcombine.high %v3502_v31, %v3502_v31 }
 0x2fa   :  { %18550 = vmatpush3.bf16.msra.mxu0 %v20242_v36  ;;  %14374 = vmatmul.mubr.bf16.vlgmr.msra.gmra.mrb[84].mxu1 %v3455_v38  ;;  %v20280_v36 = vld [vmem:[#allocation6 + $0x1750] sm:$0xff]  }
 0x2fb   :  { %18551 = vmatprep.subr.bf16.mxu0 %v20244_v39  ;;  %18572 = vmatpush3.bf16.msra.mxu1 %v20243_v37  ;;  %v20281_v37 = vld [vmem:[#allocation6 + $0x17d0] sm:$0xff]  }
 0x2fc   :  { %18573 = vmatprep.subr.bf16.mxu1 %v20245_v40  ;;  %14413 = vmatprep.mubr.bf16.mxu0 %v3495_v24  ;;  %v20282_v38 = vld [vmem:[#allocation6 + $0x1710] sm:$0xff]   ;;  %v20284_v40 = vld [vmem:[#allocation6 + $0x1758] sm:$0xff]  }
 0x2fd   :  { %14453 = vmatprep.mubr.bf16.mxu1 %v3505_v29  ;;  %v20283_v39 = vld [vmem:[#allocation6 + $0x1790] sm:$0xff]   ;;  %v20319_v24 = vld [vmem:[#allocation6 + $0x1818] sm:$0xff]   ;;  %v20324_v29 = vld [vmem:[#allocation6 + $0x18a0] sm:$0xff]  }
 0x2fe   :  { %18552 = vmatpush3.bf16.msra.mxu0 %v20246_v41  ;;  %v20285_v41 = vld [vmem:[#allocation6 + $0x17d8] sm:$0xff]  }
 0x2ff   :  { %18553 = vmatprep.subr.bf16.mxu0 %v20248_v43  ;;  %18574 = vmatpush3.bf16.msra.mxu1 %v20247_v42  ;;  %v20286_v42 = vld [vmem:[#allocation6 + $0x1718] sm:$0xff]  }
 0x300   :  { %18575 = vmatprep.subr.bf16.mxu1 %v20249_v44  ;;  %v20287_v43 = vld [vmem:[#allocation6 + $0x1798] sm:$0xff]   ;;  %v20288_v44 = vld [vmem:[#allocation6 + $0x1760] sm:$0xff]  }
 0x302   :  { %18554 = vmatpush3.bf16.msra.mxu0 %v20250_v45  ;;  %v20289_v45 = vld [vmem:[#allocation6 + $0x17e0] sm:$0xff]  }
 0x303   :  { %18555 = vmatprep.subr.bf16.mxu0 %v20252_v47  ;;  %18576 = vmatpush3.bf16.msra.mxu1 %v20251_v46  ;;  %v20290_v46 = vld [vmem:[#allocation6 + $0x1720] sm:$0xff]  }
 0x304   :  { %18577 = vmatprep.subr.bf16.mxu1 %v20253_v48  ;;  %v20291_v47 = vld [vmem:[#allocation6 + $0x17a0] sm:$0xff]   ;;  %v20292_v48 = vld [vmem:[#allocation6 + $0x1768] sm:$0xff]  }
 0x306   :  { %18556 = vmatpush3.bf16.msra.mxu0 %v20254_v49  ;;  %v20293_v49 = vld [vmem:[#allocation6 + $0x17e8] sm:$0xff]  }
 0x307   :  { %18557 = vmatprep.subr.bf16.mxu0 %v20256_v51  ;;  %18578 = vmatpush3.bf16.msra.mxu1 %v20255_v50  ;;  %v20294_v51 = vld [vmem:[#allocation6 + $0x1728] sm:$0xff]  }
 0x308   :  { %18579 = vmatprep.subr.bf16.mxu1 %v20257_v52 }
 0x30a   :  { %18558 = vmatpush3.bf16.msra.mxu0 %v20258_v53  ;;  %v20295_v53 = vld [vmem:[#allocation6 + $0x17a8] sm:$0xff]  }
 0x30b   :  { %18559 = vmatprep.subr.bf16.mxu0 %v20260_v55  ;;  %18580 = vmatpush3.bf16.msra.mxu1 %v20259_v54 }
 0x30c   :  { %v18257_v57 = vpop.f32.mrb[60].mxu0  ;;  %18581 = vmatprep.subr.bf16.mxu1 %v20261_v56 }
 0x30d   :  { %v18258_v59 = vpop.f32.mrb[61].mxu0  ;;  %v18279_v61 = vpop.f32.mrb[60].mxu1 }
 0x30e   :  { %v18259_v62 = vadd.f32 %v18258_v59, %v18257_v57  ;;  %v18260_v63 = vpop.f32.mrb[62].mxu0  ;;  %v18280_v2 = vpop.f32.mrb[61].mxu1  ;;  %18560 = vmatpush3.bf16.msra.mxu0 %v20262_v58  ;;  %v20296_v57 = vld [vmem:[#allocation6 + $0x1770] sm:$0xff]  }
 0x30f   :  { %v18261_v3 = vpop.f32.mrb[63].mxu0  ;;  %v18281_v5 = vadd.f32 %v18280_v2, %v18279_v61  ;;  %v18282_v6 = vpop.f32.mrb[62].mxu1  ;;  %18561 = vmatprep.subr.bf16.mxu0 %v20264_v0  ;;  %18582 = vmatpush3.bf16.msra.mxu1 %v20263_v60  ;;  %v20297_v58 = vld [vmem:[#allocation6 + $0x17f0] sm:$0xff]  }
 0x310   :  { %v13856_v4 = vadd.f32 %v18259_v62, %v21276_v27  ;;  %v18283_v8 = vpop.f32.mrb[63].mxu1  ;;  %18583 = vmatprep.subr.bf16.mxu1 %v20265_v1  ;;  %v3503_v27 = vcombine.high %v3481_v20, %v3481_v20  ;;  %v20298_v0 = vld [vmem:[#allocation6 + $0x1730] sm:$0xff]   ;;  %v20302_v6 = vld [vmem:[#allocation6 + $0x1738] sm:$0xff]  }
 0x311   :  { %v20299_v2 = vld [vmem:[#allocation6 + $0x17b0] sm:$0xff]   ;;  %v3488_v8 = vrot.slane %v21286_v22, %v21113_v35  ;;  %v20317_v22 = vld [vmem:[#allocation6 + $0x1858] sm:$0xff]  }
 0x312   :  { %v21281_v10 = vadd.f32 %v18281_v5, %v13856_v4  ;;  %18562 = vmatpush3.bf16.msra.mxu0 %v20266_v7  ;;  %v20300_v4 = vld [vmem:[#allocation6 + $0x1778] sm:$0xff]  }
 0x313   :  { %18563 = vmatprep.subr.bf16.mxu0 %v20268_v11  ;;  %18584 = vmatpush3.bf16.msra.mxu1 %v20267_v9  ;;  %v20301_v5 = vld [vmem:[#allocation6 + $0x17f8] sm:$0xff]   ;;  %v20305_v9 = vld [vmem:[#allocation6 + $0x1840] sm:$0xff]  }
 0x314   :  { %18585 = vmatprep.subr.bf16.mxu1 %v20269_v12  ;;  %v20303_v7 = vld [vmem:[#allocation6 + $0x17b8] sm:$0xff]   ;;  %v20307_v11 = vld [vmem:[#allocation6 + $0x1800] sm:$0xff]  }
 0x315   :  { %v20308_v12 = vld [vmem:[#allocation6 + $0x1880] sm:$0xff]  }
 0x316   :  { %18564 = vmatpush3.bf16.msra.mxu0 %v20270_v13  ;;  %v3504_v13 = vcombine.high %v3488_v8, %v3488_v8 }
 0x317   :  { %18593 = vmatprep.subr.bf16.mxu0 %v20272_v16  ;;  %18586 = vmatpush3.bf16.msra.mxu1 %v20271_v18  ;;  %v20311_v16 = vld [vmem:[#allocation6 + $0x1808] sm:$0xff]   ;;  %v20313_v18 = vld [vmem:[#allocation6 + $0x1850] sm:$0xff]  }
 0x318   :  { %18615 = vmatprep.subr.bf16.mxu1 %v20273_v21  ;;  %v20316_v21 = vld [vmem:[#allocation6 + $0x1890] sm:$0xff]  }
 0x319   :  { %14414 = vmatmul.mubr.bf16.vlgmr.msra.gmra.mrb[88].mxu0 %v3481_v20  ;;  %v20315_v20 = vld [vmem:[#allocation6 + $0x1810] sm:$0xff]  }
 0x31a   :  { %18594 = vmatpush3.bf16.msra.mxu0 %v20274_v23  ;;  %14454 = vmatmul.mubr.bf16.vlgmr.msra.gmra.mrb[88].mxu1 %v3503_v27  ;;  %v20318_v23 = vld [vmem:[#allocation6 + $0x18d8] sm:$0xff]   ;;  %v20322_v27 = vld [vmem:[#allocation6 + $0x18e0] sm:$0xff]  }
 0x31b   :  { %18595 = vmatprep.subr.bf16.mxu0 %v20276_v28  ;;  %18616 = vmatpush3.bf16.msra.mxu1 %v20275_v25  ;;  %v20320_v25 = vld [vmem:[#allocation6 + $0x1898] sm:$0xff]   ;;  %v20323_v28 = vld [vmem:[#allocation6 + $0x1820] sm:$0xff]  }
 0x31c   :  { %14493 = vmatprep.mubr.bf16.mxu0 %v3502_v31  ;;  %18617 = vmatprep.subr.bf16.mxu1 %v20277_v30  ;;  %v20325_v30 = vld [vmem:[#allocation6 + $0x1868] sm:$0xff]  }
 0x31d   :  { %14533 = vmatprep.mubr.bf16.mxu1 %v3506_v34  ;;  %v20326_v31 = vld [vmem:[#allocation6 + $0x18e8] sm:$0xff]  }
 0x31e   :  { %18596 = vmatpush3.bf16.msra.mxu0 %v20278_v32 }
 0x31f   :  { %18597 = vmatprep.subr.bf16.mxu0 %v20280_v36  ;;  %18618 = vmatpush3.bf16.msra.mxu1 %v20279_v33  ;;  %v20327_v33 = vld [vmem:[#allocation6 + $0x1828] sm:$0xff]  }
 0x320   :  { %18619 = vmatprep.subr.bf16.mxu1 %v20281_v37  ;;  %v20328_v36 = vld [vmem:[#allocation6 + $0x18a8] sm:$0xff]  }
 0x322   :  { %18598 = vmatpush3.bf16.msra.mxu0 %v20282_v38 }
 0x323   :  { %18599 = vmatprep.subr.bf16.mxu0 %v20284_v40  ;;  %18620 = vmatpush3.bf16.msra.mxu1 %v20283_v39  ;;  %v20329_v40 = vld [vmem:[#allocation6 + $0x1870] sm:$0xff]  }
 0x324   :  { %18621 = vmatprep.subr.bf16.mxu1 %v20285_v41  ;;  %v20330_v41 = vld [vmem:[#allocation6 + $0x18f0] sm:$0xff]  }
 0x326   :  { %18600 = vmatpush3.bf16.msra.mxu0 %v20286_v42 }
 0x327   :  { %18601 = vmatprep.subr.bf16.mxu0 %v20288_v44  ;;  %18622 = vmatpush3.bf16.msra.mxu1 %v20287_v43 }
 0x328   :  { %18623 = vmatprep.subr.bf16.mxu1 %v20289_v45 }
 0x32a   :  { %18602 = vmatpush3.bf16.msra.mxu0 %v20290_v46 }
 0x32b   :  { %18603 = vmatprep.subr.bf16.mxu0 %v20292_v48  ;;  %18624 = vmatpush3.bf16.msra.mxu1 %v20291_v47  ;;  %v20331_v47 = vld [vmem:[#allocation6 + $0x1830] sm:$0xff]  }
 0x32c   :  { %v18301_v50 = vpop.f32.mrb[64].mxu0  ;;  %18625 = vmatprep.subr.bf16.mxu1 %v20293_v49  ;;  %v20332_v49 = vld [vmem:[#allocation6 + $0x18b0] sm:$0xff]  }
 0x32d   :  { %v18302_v52 = vpop.f32.mrb[65].mxu0  ;;  %v18323_v54 = vpop.f32.mrb[64].mxu1 }
 0x32e   :  { %v18303_v55 = vadd.f32 %v18302_v52, %v18301_v50  ;;  %v18304_v56 = vpop.f32.mrb[66].mxu0  ;;  %v18324_v59 = vpop.f32.mrb[65].mxu1  ;;  %18604 = vmatpush3.bf16.msra.mxu0 %v20294_v51  ;;  %v20333_v51 = vld [vmem:[#allocation6 + $0x1878] sm:$0xff]  }
 0x32f   :  { %v18305_v60 = vpop.f32.mrb[67].mxu0  ;;  %v18325_v62 = vadd.f32 %v18324_v59, %v18323_v54  ;;  %v18326_v63 = vpop.f32.mrb[66].mxu1  ;;  %18605 = vmatprep.subr.bf16.mxu0 %v20296_v57  ;;  %18626 = vmatpush3.bf16.msra.mxu1 %v20295_v53  ;;  %v20334_v52 = vld [vmem:[#allocation6 + $0x18f8] sm:$0xff]   ;;  %v70_v54 = vld [vmem:[#allocation3 + $0x60] sm:$0xff]  ;;  %v20337_v56 = vld [vmem:[#allocation6 + $0x1940] sm:$0xff]  }
 0x330   :  { %v13936_v61 = vadd.f32 %v18303_v55, %v21281_v10  ;;  %v18327_v1 = vpop.f32.mrb[67].mxu1  ;;  %18627 = vmatprep.subr.bf16.mxu1 %v20297_v58  ;;  %v20306_v10 = vld [vmem:[#allocation6 + $0x18c0] sm:$0xff]   ;;  %v20335_v53 = vld [vmem:[#allocation6 + $0x1838] sm:$0xff]   ;;  %v3514_v55 = vrot.slane %v70_v54, %v21113_v35  ;;  %v3507_v57 = vcombine.high %v70_v54, %v70_v54  ;;  %v20374_v54 = vld [vmem:[#allocation6 + $0x1a48] sm:$0xff]  }
 0x331   :  { %v20336_v58 = vld [vmem:[#allocation6 + $0x18b8] sm:$0xff]   ;;  %v20339_v63 = vld [vmem:[#allocation6 + $0x1900] sm:$0xff]  }
 0x332   :  { %v21293_v3 = vadd.f32 %v18325_v62, %v13936_v61  ;;  %18606 = vmatpush3.bf16.msra.mxu0 %v20298_v0  ;;  %v3522_v59 = vcombine.high %v3514_v55, %v3514_v55  ;;  %v3530_v60 = vrot.slane %v3514_v55, %v21113_v35  ;;  %v20338_v61 = vld [vmem:[#allocation6 + $0x19c0] sm:$0xff]   ;;  %v21303_v62 = vrot.slane %v3507_v57, %v21113_v35  ;;  %v20375_v55 = vld [vmem:[#allocation6 + $0x1ac8] sm:$0xff]  }
 0x333   :  { %18607 = vmatprep.subr.bf16.mxu0 %v20300_v4  ;;  %18628 = vmatpush3.bf16.msra.mxu1 %v20299_v2  ;;  %v20340_v1 = vld [vmem:[#allocation6 + $0x1980] sm:$0xff]   ;;  %v20341_v4 = vld [vmem:[#allocation6 + $0x1948] sm:$0xff]  }
 0x334   :  { %18629 = vmatprep.subr.bf16.mxu1 %v20301_v5  ;;  %v3544_v0 = vrot.slane %v3522_v59, %v21113_v35  ;;  %v3523_v2 = vcombine.high %v21303_v62, %v21303_v62  ;;  %v20377_v57 = vld [vmem:[#allocation6 + $0x1a88] sm:$0xff]   ;;  %v20379_v59 = vld [vmem:[#allocation6 + $0x1ad0] sm:$0xff]  }
 0x336   :  { %18608 = vmatpush3.bf16.msra.mxu0 %v20302_v6  ;;  %v3554_v5 = vcombine.high %v3544_v0, %v3544_v0  ;;  %v20342_v6 = vld [vmem:[#allocation6 + $0x19c8] sm:$0xff]  }
 0x337   :  { %18637 = vmatprep.subr.bf16.mxu0 %v20305_v9  ;;  %18630 = vmatpush3.bf16.msra.mxu1 %v20303_v7  ;;  %v3551_v7 = vrot.slane %v3523_v2, %v21113_v35  ;;  %v20344_v9 = vld [vmem:[#allocation6 + $0x1988] sm:$0xff]   ;;  %v20386_v2 = vld [vmem:[#allocation6 + $0x1a60] sm:$0xff]  }
 0x338   :  { %18659 = vmatprep.subr.bf16.mxu1 %v20306_v10 }
 0x339   :  { %14494 = vmatmul.mubr.bf16.vlgmr.msra.gmra.mrb[92].mxu0 %v3488_v8  ;;  %v20343_v8 = vld [vmem:[#allocation6 + $0x1908] sm:$0xff]   ;;  %v3555_v10 = vcombine.high %v3551_v7, %v3551_v7 }
 0x33a   :  { %18638 = vmatpush3.bf16.msra.mxu0 %v20307_v11  ;;  %14534 = vmatmul.mubr.bf16.vlgmr.msra.gmra.mrb[92].mxu1 %v3504_v13  ;;  %v20345_v11 = vld [vmem:[#allocation6 + $0x1950] sm:$0xff]  }
 0x33b   :  { %18639 = vmatprep.subr.bf16.mxu0 %v20309_v14  ;;  %18660 = vmatpush3.bf16.msra.mxu1 %v20308_v12  ;;  %v20346_v12 = vld [vmem:[#allocation6 + $0x19d0] sm:$0xff]  }
 0x33c   :  { %18661 = vmatprep.subr.bf16.mxu1 %v20310_v15  ;;  %14573 = vmatprep.mubr.bf16.mxu0 %v3544_v0  ;;  %v20347_v13 = vld [vmem:[#allocation6 + $0x1910] sm:$0xff]   ;;  %v20349_v15 = vld [vmem:[#allocation6 + $0x1958] sm:$0xff]  }
 0x33d   :  { %14613 = vmatprep.mubr.bf16.mxu1 %v3554_v5  ;;  %v20348_v14 = vld [vmem:[#allocation6 + $0x1990] sm:$0xff]   ;;  %v20384_v0 = vld [vmem:[#allocation6 + $0x1a18] sm:$0xff]   ;;  %v20389_v5 = vld [vmem:[#allocation6 + $0x1aa0] sm:$0xff]  }
 0x33e   :  { %18640 = vmatpush3.bf16.msra.mxu0 %v20311_v16  ;;  %v20350_v16 = vld [vmem:[#allocation6 + $0x19d8] sm:$0xff]  }
 0x33f   :  { %18641 = vmatprep.subr.bf16.mxu0 %v20313_v18  ;;  %18662 = vmatpush3.bf16.msra.mxu1 %v20312_v17  ;;  %v20351_v17 = vld [vmem:[#allocation6 + $0x1918] sm:$0xff]  }
 0x340   :  { %18663 = vmatprep.subr.bf16.mxu1 %v20314_v19  ;;  %v20352_v18 = vld [vmem:[#allocation6 + $0x1998] sm:$0xff]   ;;  %v20353_v19 = vld [vmem:[#allocation6 + $0x1960] sm:$0xff]  }
 0x342   :  { %18642 = vmatpush3.bf16.msra.mxu0 %v20315_v20  ;;  %v20354_v20 = vld [vmem:[#allocation6 + $0x19e0] sm:$0xff]  }
 0x343   :  { %18643 = vmatprep.subr.bf16.mxu0 %v20317_v22  ;;  %18664 = vmatpush3.bf16.msra.mxu1 %v20316_v21  ;;  %v20355_v21 = vld [vmem:[#allocation6 + $0x1920] sm:$0xff]  }
 0x344   :  { %18665 = vmatprep.subr.bf16.mxu1 %v20318_v23  ;;  %v20356_v22 = vld [vmem:[#allocation6 + $0x19a0] sm:$0xff]   ;;  %v20357_v23 = vld [vmem:[#allocation6 + $0x1968] sm:$0xff]  }
 0x346   :  { %18644 = vmatpush3.bf16.msra.mxu0 %v20319_v24  ;;  %v20358_v24 = vld [vmem:[#allocation6 + $0x19e8] sm:$0xff]  }
 0x347   :  { %18645 = vmatprep.subr.bf16.mxu0 %v20321_v26  ;;  %18666 = vmatpush3.bf16.msra.mxu1 %v20320_v25  ;;  %v20359_v26 = vld [vmem:[#allocation6 + $0x1928] sm:$0xff]  }
 0x348   :  { %18667 = vmatprep.subr.bf16.mxu1 %v20322_v27 }
 0x34a   :  { %18646 = vmatpush3.bf16.msra.mxu0 %v20323_v28  ;;  %v20360_v28 = vld [vmem:[#allocation6 + $0x19a8] sm:$0xff]  }
 0x34b   :  { %18647 = vmatprep.subr.bf16.mxu0 %v20325_v30  ;;  %18668 = vmatpush3.bf16.msra.mxu1 %v20324_v29 }
 0x34c   :  { %v18345_v32 = vpop.f32.mrb[68].mxu0  ;;  %18669 = vmatprep.subr.bf16.mxu1 %v20326_v31 }
 0x34d   :  { %v18346_v34 = vpop.f32.mrb[69].mxu0  ;;  %v18367_v37 = vpop.f32.mrb[68].mxu1 }
 0x34e   :  { %v18347_v38 = vadd.f32 %v18346_v34, %v18345_v32  ;;  %v18348_v39 = vpop.f32.mrb[70].mxu0  ;;  %v18368_v42 = vpop.f32.mrb[69].mxu1  ;;  %18648 = vmatpush3.bf16.msra.mxu0 %v20327_v33  ;;  %v20361_v32 = vld [vmem:[#allocation6 + $0x1970] sm:$0xff]  }
 0x34f   :  { %v18349_v43 = vpop.f32.mrb[71].mxu0  ;;  %v18369_v45 = vadd.f32 %v18368_v42, %v18367_v37  ;;  %v18370_v46 = vpop.f32.mrb[70].mxu1  ;;  %18649 = vmatprep.subr.bf16.mxu0 %v20329_v40  ;;  %18670 = vmatpush3.bf16.msra.mxu1 %v20328_v36  ;;  %v20362_v33 = vld [vmem:[#allocation6 + $0x19f0] sm:$0xff]  }
 0x350   :  { %v14016_v44 = vadd.f32 %v18347_v38, %v21293_v3  ;;  %v18371_v48 = vpop.f32.mrb[71].mxu1  ;;  %18671 = vmatprep.subr.bf16.mxu1 %v20330_v41  ;;  %v3552_v3 = vcombine.high %v3530_v60, %v3530_v60  ;;  %v20363_v40 = vld [vmem:[#allocation6 + $0x1930] sm:$0xff]   ;;  %v20367_v46 = vld [vmem:[#allocation6 + $0x1938] sm:$0xff]  }
 0x351   :  { %v20364_v42 = vld [vmem:[#allocation6 + $0x19b0] sm:$0xff]   ;;  %v3537_v48 = vrot.slane %v21303_v62, %v21113_v35  ;;  %v20382_v62 = vld [vmem:[#allocation6 + $0x1a58] sm:$0xff]  }
 0x352   :  { %v21298_v50 = vadd.f32 %v18369_v45, %v14016_v44  ;;  %18650 = vmatpush3.bf16.msra.mxu0 %v20331_v47  ;;  %v20365_v44 = vld [vmem:[#allocation6 + $0x1978] sm:$0xff]  }
 0x353   :  { %18651 = vmatprep.subr.bf16.mxu0 %v20333_v51  ;;  %18672 = vmatpush3.bf16.msra.mxu1 %v20332_v49  ;;  %v20366_v45 = vld [vmem:[#allocation6 + $0x19f8] sm:$0xff]   ;;  %v20370_v49 = vld [vmem:[#allocation6 + $0x1a40] sm:$0xff]  }
 0x354   :  { %18673 = vmatprep.subr.bf16.mxu1 %v20334_v52  ;;  %v20368_v47 = vld [vmem:[#allocation6 + $0x19b8] sm:$0xff]   ;;  %v20372_v51 = vld [vmem:[#allocation6 + $0x1a00] sm:$0xff]  }
 0x355   :  { %v20373_v52 = vld [vmem:[#allocation6 + $0x1a80] sm:$0xff]  }
 0x356   :  { %18652 = vmatpush3.bf16.msra.mxu0 %v20335_v53  ;;  %v3553_v53 = vcombine.high %v3537_v48, %v3537_v48 }
 0x357   :  { %18681 = vmatprep.subr.bf16.mxu0 %v20337_v56  ;;  %18674 = vmatpush3.bf16.msra.mxu1 %v20336_v58  ;;  %v20376_v56 = vld [vmem:[#allocation6 + $0x1a08] sm:$0xff]   ;;  %v20378_v58 = vld [vmem:[#allocation6 + $0x1a50] sm:$0xff]  }
 0x358   :  { %18703 = vmatprep.subr.bf16.mxu1 %v20338_v61  ;;  %v20381_v61 = vld [vmem:[#allocation6 + $0x1a90] sm:$0xff]  }
 0x359   :  { %14574 = vmatmul.mubr.bf16.vlgmr.msra.gmra.mrb[96].mxu0 %v3530_v60  ;;  %v20380_v60 = vld [vmem:[#allocation6 + $0x1a10] sm:$0xff]  }
 0x35a   :  { %18682 = vmatpush3.bf16.msra.mxu0 %v20339_v63  ;;  %14614 = vmatmul.mubr.bf16.vlgmr.msra.gmra.mrb[96].mxu1 %v3552_v3  ;;  %v20383_v63 = vld [vmem:[#allocation6 + $0x1ad8] sm:$0xff]   ;;  %v20387_v3 = vld [vmem:[#allocation6 + $0x1ae0] sm:$0xff]  }
 0x35b   :  { %18683 = vmatprep.subr.bf16.mxu0 %v20341_v4  ;;  %18704 = vmatpush3.bf16.msra.mxu1 %v20340_v1  ;;  %v20385_v1 = vld [vmem:[#allocation6 + $0x1a98] sm:$0xff]   ;;  %v20388_v4 = vld [vmem:[#allocation6 + $0x1a20] sm:$0xff]  }
 0x35c   :  { %14653 = vmatprep.mubr.bf16.mxu0 %v3551_v7  ;;  %18705 = vmatprep.subr.bf16.mxu1 %v20342_v6  ;;  %v20390_v6 = vld [vmem:[#allocation6 + $0x1a68] sm:$0xff]  }
 0x35d   :  { %14693 = vmatprep.mubr.bf16.mxu1 %v3555_v10  ;;  %v20391_v7 = vld [vmem:[#allocation6 + $0x1ae8] sm:$0xff]  }
 0x35e   :  { %18684 = vmatpush3.bf16.msra.mxu0 %v20343_v8 }
 0x35f   :  { %18685 = vmatprep.subr.bf16.mxu0 %v20345_v11  ;;  %18706 = vmatpush3.bf16.msra.mxu1 %v20344_v9  ;;  %v20392_v9 = vld [vmem:[#allocation6 + $0x1a28] sm:$0xff]  }
 0x360   :  { %18707 = vmatprep.subr.bf16.mxu1 %v20346_v12  ;;  %v20393_v11 = vld [vmem:[#allocation6 + $0x1aa8] sm:$0xff]  }
 0x362   :  { %18686 = vmatpush3.bf16.msra.mxu0 %v20347_v13 }
 0x363   :  { %18687 = vmatprep.subr.bf16.mxu0 %v20349_v15  ;;  %18708 = vmatpush3.bf16.msra.mxu1 %v20348_v14  ;;  %v20394_v15 = vld [vmem:[#allocation6 + $0x1a70] sm:$0xff]  }
 0x364   :  { %18709 = vmatprep.subr.bf16.mxu1 %v20350_v16  ;;  %v20395_v16 = vld [vmem:[#allocation6 + $0x1af0] sm:$0xff]  }
 0x366   :  { %18688 = vmatpush3.bf16.msra.mxu0 %v20351_v17 }
 0x367   :  { %18689 = vmatprep.subr.bf16.mxu0 %v20353_v19  ;;  %18710 = vmatpush3.bf16.msra.mxu1 %v20352_v18 }
 0x368   :  { %18711 = vmatprep.subr.bf16.mxu1 %v20354_v20 }
 0x36a   :  { %18690 = vmatpush3.bf16.msra.mxu0 %v20355_v21 }
 0x36b   :  { %18691 = vmatprep.subr.bf16.mxu0 %v20357_v23  ;;  %18712 = vmatpush3.bf16.msra.mxu1 %v20356_v22  ;;  %v20396_v22 = vld [vmem:[#allocation6 + $0x1a30] sm:$0xff]  }
 0x36c   :  { %v18389_v25 = vpop.f32.mrb[72].mxu0  ;;  %18713 = vmatprep.subr.bf16.mxu1 %v20358_v24  ;;  %v20397_v24 = vld [vmem:[#allocation6 + $0x1ab0] sm:$0xff]  }
 0x36d   :  { %v18390_v27 = vpop.f32.mrb[73].mxu0  ;;  %v18411_v29 = vpop.f32.mrb[72].mxu1 }
 0x36e   :  { %v18391_v30 = vadd.f32 %v18390_v27, %v18389_v25  ;;  %v18392_v31 = vpop.f32.mrb[74].mxu0  ;;  %v18412_v34 = vpop.f32.mrb[73].mxu1  ;;  %18692 = vmatpush3.bf16.msra.mxu0 %v20359_v26  ;;  %v20398_v26 = vld [vmem:[#allocation6 + $0x1a78] sm:$0xff]  }
 0x36f   :  { %v18393_v36 = vpop.f32.mrb[75].mxu0  ;;  %v18413_v38 = vadd.f32 %v18412_v34, %v18411_v29  ;;  %v18414_v39 = vpop.f32.mrb[74].mxu1  ;;  %18693 = vmatprep.subr.bf16.mxu0 %v20361_v32  ;;  %18714 = vmatpush3.bf16.msra.mxu1 %v20360_v28  ;;  %v20399_v27 = vld [vmem:[#allocation6 + $0x1af8] sm:$0xff]   ;;  %v20402_v31 = vld [vmem:[#allocation6 + $0x1b40] sm:$0xff]  }
 0x370   :  { %v14096_v37 = vadd.f32 %v18391_v30, %v21298_v50  ;;  %v18415_v41 = vpop.f32.mrb[75].mxu1  ;;  %18715 = vmatprep.subr.bf16.mxu1 %v20362_v33  ;;  %v20371_v50 = vld [vmem:[#allocation6 + $0x1ac0] sm:$0xff]   ;;  %v20400_v28 = vld [vmem:[#allocation6 + $0x1a38] sm:$0xff]  }
 0x371   :  { %v71_v29 = vld [vmem:[#allocation3 + $0x68] sm:$0xff]  ;;  %v20404_v39 = vld [vmem:[#allocation6 + $0x1b00] sm:$0xff]  }
 0x372   :  { %v21310_v43 = vadd.f32 %v18413_v38, %v14096_v37  ;;  %18694 = vmatpush3.bf16.msra.mxu0 %v20363_v40  ;;  %v3563_v30 = vrot.slane %v71_v29, %v21113_v35  ;;  %v3556_v32 = vcombine.high %v71_v29, %v71_v29  ;;  %v20401_v33 = vld [vmem:[#allocation6 + $0x1ab8] sm:$0xff]   ;;  %v20403_v37 = vld [vmem:[#allocation6 + $0x1bc0] sm:$0xff]   ;;  %v20439_v29 = vld [vmem:[#allocation6 + $0x1c48] sm:$0xff]  }
 0x373   :  { %18695 = vmatprep.subr.bf16.mxu0 %v20365_v44  ;;  %18716 = vmatpush3.bf16.msra.mxu1 %v20364_v42  ;;  %v20405_v41 = vld [vmem:[#allocation6 + $0x1b80] sm:$0xff]   ;;  %v20406_v44 = vld [vmem:[#allocation6 + $0x1b48] sm:$0xff]  }
 0x374   :  { %18717 = vmatprep.subr.bf16.mxu1 %v20366_v45  ;;  %v3571_v34 = vcombine.high %v3563_v30, %v3563_v30  ;;  %v3579_v36 = vrot.slane %v3563_v30, %v21113_v35  ;;  %v21320_v38 = vrot.slane %v3556_v32, %v21113_v35  ;;  %v20440_v30 = vld [vmem:[#allocation6 + $0x1cc8] sm:$0xff]  }
 0x375   :  { %v20442_v32 = vld [vmem:[#allocation6 + $0x1c88] sm:$0xff]  }
 0x376   :  { %18696 = vmatpush3.bf16.msra.mxu0 %v20367_v46  ;;  %v3593_v40 = vrot.slane %v3571_v34, %v21113_v35  ;;  %v3572_v42 = vcombine.high %v21320_v38, %v21320_v38  ;;  %v20407_v46 = vld [vmem:[#allocation6 + $0x1bc8] sm:$0xff]   ;;  %v20444_v34 = vld [vmem:[#allocation6 + $0x1cd0] sm:$0xff]  }
 0x377   :  { %18725 = vmatprep.subr.bf16.mxu0 %v20370_v49  ;;  %18718 = vmatpush3.bf16.msra.mxu1 %v20368_v47  ;;  %v20409_v49 = vld [vmem:[#allocation6 + $0x1b88] sm:$0xff]  }
 0x378   :  { %18747 = vmatprep.subr.bf16.mxu1 %v20371_v50  ;;  %v3603_v45 = vcombine.high %v3593_v40, %v3593_v40  ;;  %v3600_v47 = vrot.slane %v3572_v42, %v21113_v35  ;;  %v20451_v42 = vld [vmem:[#allocation6 + $0x1c60] sm:$0xff]  }
 0x379   :  { %14654 = vmatmul.mubr.bf16.vlgmr.msra.gmra.mrb[100].mxu0 %v3537_v48  ;;  %v20408_v48 = vld [vmem:[#allocation6 + $0x1b08] sm:$0xff]  }
 0x37a   :  { %18726 = vmatpush3.bf16.msra.mxu0 %v20372_v51  ;;  %14694 = vmatmul.mubr.bf16.vlgmr.msra.gmra.mrb[100].mxu1 %v3553_v53  ;;  %v3604_v50 = vcombine.high %v3600_v47, %v3600_v47  ;;  %v20410_v51 = vld [vmem:[#allocation6 + $0x1b50] sm:$0xff]  }
 0x37b   :  { %18727 = vmatprep.subr.bf16.mxu0 %v20374_v54  ;;  %18748 = vmatpush3.bf16.msra.mxu1 %v20373_v52  ;;  %v20411_v52 = vld [vmem:[#allocation6 + $0x1bd0] sm:$0xff]  }
 0x37c   :  { %18749 = vmatprep.subr.bf16.mxu1 %v20375_v55  ;;  %14733 = vmatprep.mubr.bf16.mxu0 %v3593_v40  ;;  %v20412_v53 = vld [vmem:[#allocation6 + $0x1b10] sm:$0xff]   ;;  %v20414_v55 = vld [vmem:[#allocation6 + $0x1b58] sm:$0xff]  }
 0x37d   :  { %14773 = vmatprep.mubr.bf16.mxu1 %v3603_v45  ;;  %v20413_v54 = vld [vmem:[#allocation6 + $0x1b90] sm:$0xff]   ;;  %v20449_v40 = vld [vmem:[#allocation6 + $0x1c18] sm:$0xff]   ;;  %v20454_v45 = vld [vmem:[#allocation6 + $0x1ca0] sm:$0xff]  }
 0x37e   :  { %18728 = vmatpush3.bf16.msra.mxu0 %v20376_v56  ;;  %v20415_v56 = vld [vmem:[#allocation6 + $0x1bd8] sm:$0xff]  }
 0x37f   :  { %18729 = vmatprep.subr.bf16.mxu0 %v20378_v58  ;;  %18750 = vmatpush3.bf16.msra.mxu1 %v20377_v57  ;;  %v20416_v57 = vld [vmem:[#allocation6 + $0x1b18] sm:$0xff]  }
 0x380   :  { %18751 = vmatprep.subr.bf16.mxu1 %v20379_v59  ;;  %v20417_v58 = vld [vmem:[#allocation6 + $0x1b98] sm:$0xff]   ;;  %v20418_v59 = vld [vmem:[#allocation6 + $0x1b60] sm:$0xff]  }
 0x382   :  { %18730 = vmatpush3.bf16.msra.mxu0 %v20380_v60  ;;  %v20419_v60 = vld [vmem:[#allocation6 + $0x1be0] sm:$0xff]  }
 0x383   :  { %18731 = vmatprep.subr.bf16.mxu0 %v20382_v62  ;;  %18752 = vmatpush3.bf16.msra.mxu1 %v20381_v61  ;;  %v20420_v61 = vld [vmem:[#allocation6 + $0x1b20] sm:$0xff]  }
 0x384   :  { %18753 = vmatprep.subr.bf16.mxu1 %v20383_v63  ;;  %v20421_v62 = vld [vmem:[#allocation6 + $0x1ba0] sm:$0xff]   ;;  %v20422_v63 = vld [vmem:[#allocation6 + $0x1b68] sm:$0xff]  }
 0x386   :  { %18732 = vmatpush3.bf16.msra.mxu0 %v20384_v0  ;;  %v20423_v0 = vld [vmem:[#allocation6 + $0x1be8] sm:$0xff]  }
 0x387   :  { %18733 = vmatprep.subr.bf16.mxu0 %v20386_v2  ;;  %18754 = vmatpush3.bf16.msra.mxu1 %v20385_v1  ;;  %v20424_v2 = vld [vmem:[#allocation6 + $0x1b28] sm:$0xff]  }
 0x388   :  { %18755 = vmatprep.subr.bf16.mxu1 %v20387_v3 }
 0x38a   :  { %18734 = vmatpush3.bf16.msra.mxu0 %v20388_v4  ;;  %v20425_v4 = vld [vmem:[#allocation6 + $0x1ba8] sm:$0xff]  }
 0x38b   :  { %18735 = vmatprep.subr.bf16.mxu0 %v20390_v6  ;;  %18756 = vmatpush3.bf16.msra.mxu1 %v20389_v5 }
 0x38c   :  { %v18433_v8 = vpop.f32.mrb[76].mxu0  ;;  %18757 = vmatprep.subr.bf16.mxu1 %v20391_v7 }
 0x38d   :  { %v18434_v10 = vpop.f32.mrb[77].mxu0  ;;  %v18455_v12 = vpop.f32.mrb[76].mxu1 }
 0x38e   :  { %v18435_v13 = vadd.f32 %v18434_v10, %v18433_v8  ;;  %v18436_v14 = vpop.f32.mrb[78].mxu0  ;;  %v18456_v17 = vpop.f32.mrb[77].mxu1  ;;  %18736 = vmatpush3.bf16.msra.mxu0 %v20392_v9  ;;  %v20426_v8 = vld [vmem:[#allocation6 + $0x1b70] sm:$0xff]  }
 0x38f   :  { %v18437_v18 = vpop.f32.mrb[79].mxu0  ;;  %v18457_v20 = vadd.f32 %v18456_v17, %v18455_v12  ;;  %v18458_v21 = vpop.f32.mrb[78].mxu1  ;;  %18737 = vmatprep.subr.bf16.mxu0 %v20394_v15  ;;  %18758 = vmatpush3.bf16.msra.mxu1 %v20393_v11  ;;  %v20427_v9 = vld [vmem:[#allocation6 + $0x1bf0] sm:$0xff]  }
 0x390   :  { %v14176_v19 = vadd.f32 %v18435_v13, %v21310_v43  ;;  %v18459_v23 = vpop.f32.mrb[79].mxu1  ;;  %18759 = vmatprep.subr.bf16.mxu1 %v20395_v16  ;;  %v3601_v43 = vcombine.high %v3579_v36, %v3579_v36  ;;  %v20428_v15 = vld [vmem:[#allocation6 + $0x1b30] sm:$0xff]   ;;  %v20432_v21 = vld [vmem:[#allocation6 + $0x1b38] sm:$0xff]  }
 0x391   :  { %v20429_v17 = vld [vmem:[#allocation6 + $0x1bb0] sm:$0xff]   ;;  %v3586_v23 = vrot.slane %v21320_v38, %v21113_v35  ;;  %v20447_v38 = vld [vmem:[#allocation6 + $0x1c58] sm:$0xff]  }
 0x392   :  { %v21315_v25 = vadd.f32 %v18457_v20, %v14176_v19  ;;  %18738 = vmatpush3.bf16.msra.mxu0 %v20396_v22  ;;  %v20430_v19 = vld [vmem:[#allocation6 + $0x1b78] sm:$0xff]  }
 0x393   :  { %18739 = vmatprep.subr.bf16.mxu0 %v20398_v26  ;;  %18760 = vmatpush3.bf16.msra.mxu1 %v20397_v24  ;;  %v20431_v20 = vld [vmem:[#allocation6 + $0x1bf8] sm:$0xff]   ;;  %v20435_v24 = vld [vmem:[#allocation6 + $0x1c40] sm:$0xff]  }
 0x394   :  { %18761 = vmatprep.subr.bf16.mxu1 %v20399_v27  ;;  %v20433_v22 = vld [vmem:[#allocation6 + $0x1bb8] sm:$0xff]   ;;  %v20437_v26 = vld [vmem:[#allocation6 + $0x1c00] sm:$0xff]  }
 0x395   :  { %v20438_v27 = vld [vmem:[#allocation6 + $0x1c80] sm:$0xff]  }
 0x396   :  { %18740 = vmatpush3.bf16.msra.mxu0 %v20400_v28  ;;  %v3602_v28 = vcombine.high %v3586_v23, %v3586_v23 }
 0x397   :  { %18769 = vmatprep.subr.bf16.mxu0 %v20402_v31  ;;  %18762 = vmatpush3.bf16.msra.mxu1 %v20401_v33  ;;  %v20441_v31 = vld [vmem:[#allocation6 + $0x1c08] sm:$0xff]   ;;  %v20443_v33 = vld [vmem:[#allocation6 + $0x1c50] sm:$0xff]  }
 0x398   :  { %18791 = vmatprep.subr.bf16.mxu1 %v20403_v37  ;;  %v20446_v37 = vld [vmem:[#allocation6 + $0x1c90] sm:$0xff]  }
 0x399   :  { %14734 = vmatmul.mubr.bf16.vlgmr.msra.gmra.mrb[104].mxu0 %v3579_v36  ;;  %v20445_v36 = vld [vmem:[#allocation6 + $0x1c10] sm:$0xff]  }
 0x39a   :  { %18770 = vmatpush3.bf16.msra.mxu0 %v20404_v39  ;;  %14774 = vmatmul.mubr.bf16.vlgmr.msra.gmra.mrb[104].mxu1 %v3601_v43  ;;  %v20448_v39 = vld [vmem:[#allocation6 + $0x1cd8] sm:$0xff]   ;;  %v20452_v43 = vld [vmem:[#allocation6 + $0x1ce0] sm:$0xff]  }
 0x39b   :  { %18771 = vmatprep.subr.bf16.mxu0 %v20406_v44  ;;  %18792 = vmatpush3.bf16.msra.mxu1 %v20405_v41  ;;  %v20450_v41 = vld [vmem:[#allocation6 + $0x1c98] sm:$0xff]   ;;  %v20453_v44 = vld [vmem:[#allocation6 + $0x1c20] sm:$0xff]  }
 0x39c   :  { %14813 = vmatprep.mubr.bf16.mxu0 %v3600_v47  ;;  %18793 = vmatprep.subr.bf16.mxu1 %v20407_v46  ;;  %v20455_v46 = vld [vmem:[#allocation6 + $0x1c68] sm:$0xff]  }
 0x39d   :  { %14853 = vmatprep.mubr.bf16.mxu1 %v3604_v50  ;;  %v20456_v47 = vld [vmem:[#allocation6 + $0x1ce8] sm:$0xff]  }
 0x39e   :  { %18772 = vmatpush3.bf16.msra.mxu0 %v20408_v48 }
 0x39f   :  { %18773 = vmatprep.subr.bf16.mxu0 %v20410_v51  ;;  %18794 = vmatpush3.bf16.msra.mxu1 %v20409_v49  ;;  %v20457_v49 = vld [vmem:[#allocation6 + $0x1c28] sm:$0xff]  }
 0x3a0   :  { %18795 = vmatprep.subr.bf16.mxu1 %v20411_v52  ;;  %v20458_v51 = vld [vmem:[#allocation6 + $0x1ca8] sm:$0xff]  }
 0x3a2   :  { %18774 = vmatpush3.bf16.msra.mxu0 %v20412_v53 }
 0x3a3   :  { %18775 = vmatprep.subr.bf16.mxu0 %v20414_v55  ;;  %18796 = vmatpush3.bf16.msra.mxu1 %v20413_v54  ;;  %v20459_v55 = vld [vmem:[#allocation6 + $0x1c70] sm:$0xff]  }
 0x3a4   :  { %18797 = vmatprep.subr.bf16.mxu1 %v20415_v56  ;;  %v20460_v56 = vld [vmem:[#allocation6 + $0x1cf0] sm:$0xff]  }
 0x3a6   :  { %18776 = vmatpush3.bf16.msra.mxu0 %v20416_v57 }
 0x3a7   :  { %18777 = vmatprep.subr.bf16.mxu0 %v20418_v59  ;;  %18798 = vmatpush3.bf16.msra.mxu1 %v20417_v58 }
 0x3a8   :  { %18799 = vmatprep.subr.bf16.mxu1 %v20419_v60 }
 0x3aa   :  { %18778 = vmatpush3.bf16.msra.mxu0 %v20420_v61 }
 0x3ab   :  { %18779 = vmatprep.subr.bf16.mxu0 %v20422_v63  ;;  %18800 = vmatpush3.bf16.msra.mxu1 %v20421_v62  ;;  %v20461_v62 = vld [vmem:[#allocation6 + $0x1c30] sm:$0xff]  }
 0x3ac   :  { %v18477_v1 = vpop.f32.mrb[80].mxu0  ;;  %18801 = vmatprep.subr.bf16.mxu1 %v20423_v0  ;;  %v20462_v0 = vld [vmem:[#allocation6 + $0x1cb0] sm:$0xff]  }
 0x3ad   :  { %v18478_v3 = vpop.f32.mrb[81].mxu0  ;;  %v18499_v5 = vpop.f32.mrb[80].mxu1 }
 0x3ae   :  { %v18479_v6 = vadd.f32 %v18478_v3, %v18477_v1  ;;  %v18480_v7 = vpop.f32.mrb[82].mxu0  ;;  %v18500_v10 = vpop.f32.mrb[81].mxu1  ;;  %18780 = vmatpush3.bf16.msra.mxu0 %v20424_v2  ;;  %v20463_v2 = vld [vmem:[#allocation6 + $0x1c78] sm:$0xff]  }
 0x3af   :  { %v18481_v11 = vpop.f32.mrb[83].mxu0  ;;  %v18501_v13 = vadd.f32 %v18500_v10, %v18499_v5  ;;  %v18502_v14 = vpop.f32.mrb[82].mxu1  ;;  %18781 = vmatprep.subr.bf16.mxu0 %v20426_v8  ;;  %18802 = vmatpush3.bf16.msra.mxu1 %v20425_v4  ;;  %v20464_v3 = vld [vmem:[#allocation6 + $0x1cf8] sm:$0xff]   ;;  %v72_v5 = vld [vmem:[#allocation3 + $0x70] sm:$0xff] }
 0x3b0   :  { %v14256_v12 = vadd.f32 %v18479_v6, %v21315_v25  ;;  %v18503_v16 = vpop.f32.mrb[83].mxu1  ;;  %18803 = vmatprep.subr.bf16.mxu1 %v20427_v9  ;;  %v20436_v25 = vld [vmem:[#allocation6 + $0x1cc0] sm:$0xff]   ;;  %v20465_v4 = vld [vmem:[#allocation6 + $0x1c38] sm:$0xff]   ;;  %v3612_v6 = vrot.slane %v72_v5, %v21113_v35  ;;  %v3605_v8 = vcombine.high %v72_v5, %v72_v5  ;;  %v20504_v5 = vld [vmem:[#allocation6 + $0x1e48] sm:$0xff]  }
 0x3b1   :  { %v20467_v7 = vld [vmem:[#allocation6 + $0x1d40] sm:$0xff]   ;;  %v20466_v9 = vld [vmem:[#allocation6 + $0x1cb8] sm:$0xff]  }
 0x3b2   :  { %v21327_v18 = vadd.f32 %v18501_v13, %v14256_v12  ;;  %18782 = vmatpush3.bf16.msra.mxu0 %v20428_v15  ;;  %v3620_v10 = vcombine.high %v3612_v6, %v3612_v6  ;;  %v3628_v11 = vrot.slane %v3612_v6, %v21113_v35  ;;  %v20468_v12 = vld [vmem:[#allocation6 + $0x1dc0] sm:$0xff]   ;;  %v21337_v13 = vrot.slane %v3605_v8, %v21113_v35  ;;  %v20505_v6 = vld [vmem:[#allocation6 + $0x1ec8] sm:$0xff]  }
 0x3b3   :  { %18783 = vmatprep.subr.bf16.mxu0 %v20430_v19  ;;  %18804 = vmatpush3.bf16.msra.mxu1 %v20429_v17  ;;  %v20469_v14 = vld [vmem:[#allocation6 + $0x1d00] sm:$0xff]   ;;  %v20471_v19 = vld [vmem:[#allocation6 + $0x1d48] sm:$0xff]  }
 0x3b4   :  { %18805 = vmatprep.subr.bf16.mxu1 %v20431_v20  ;;  %v3642_v15 = vrot.slane %v3620_v10, %v21113_v35  ;;  %v20470_v16 = vld [vmem:[#allocation6 + $0x1d80] sm:$0xff]   ;;  %v3621_v17 = vcombine.high %v21337_v13, %v21337_v13  ;;  %v20507_v8 = vld [vmem:[#allocation6 + $0x1e88] sm:$0xff]   ;;  %v20509_v10 = vld [vmem:[#allocation6 + $0x1ed0] sm:$0xff]  }
 0x3b6   :  { %18784 = vmatpush3.bf16.msra.mxu0 %v20432_v21  ;;  %v3652_v20 = vcombine.high %v3642_v15, %v3642_v15  ;;  %v20472_v21 = vld [vmem:[#allocation6 + $0x1dc8] sm:$0xff]  }
 0x3b7   :  { %18813 = vmatprep.subr.bf16.mxu0 %v20435_v24  ;;  %18806 = vmatpush3.bf16.msra.mxu1 %v20433_v22  ;;  %v3649_v22 = vrot.slane %v3621_v17, %v21113_v35  ;;  %v20474_v24 = vld [vmem:[#allocation6 + $0x1d88] sm:$0xff]   ;;  %v20516_v17 = vld [vmem:[#allocation6 + $0x1e60] sm:$0xff]  }
 0x3b8   :  { %18835 = vmatprep.subr.bf16.mxu1 %v20436_v25 }
 0x3b9   :  { %14814 = vmatmul.mubr.bf16.vlgmr.msra.gmra.mrb[108].mxu0 %v3586_v23  ;;  %v20473_v23 = vld [vmem:[#allocation6 + $0x1d08] sm:$0xff]   ;;  %v3653_v25 = vcombine.high %v3649_v22, %v3649_v22 }
 0x3ba   :  { %18814 = vmatpush3.bf16.msra.mxu0 %v20437_v26  ;;  %14854 = vmatmul.mubr.bf16.vlgmr.msra.gmra.mrb[108].mxu1 %v3602_v28  ;;  %v20475_v26 = vld [vmem:[#allocation6 + $0x1d50] sm:$0xff]  }
 0x3bb   :  { %18815 = vmatprep.subr.bf16.mxu0 %v20439_v29  ;;  %18836 = vmatpush3.bf16.msra.mxu1 %v20438_v27  ;;  %v20476_v27 = vld [vmem:[#allocation6 + $0x1dd0] sm:$0xff]  }
 0x3bc   :  { %18837 = vmatprep.subr.bf16.mxu1 %v20440_v30  ;;  %14893 = vmatprep.mubr.bf16.mxu0 %v3642_v15  ;;  %v20477_v28 = vld [vmem:[#allocation6 + $0x1d10] sm:$0xff]   ;;  %v20479_v30 = vld [vmem:[#allocation6 + $0x1d58] sm:$0xff]  }
 0x3bd   :  { %14933 = vmatprep.mubr.bf16.mxu1 %v3652_v20  ;;  %v20478_v29 = vld [vmem:[#allocation6 + $0x1d90] sm:$0xff]   ;;  %v20514_v15 = vld [vmem:[#allocation6 + $0x1e18] sm:$0xff]   ;;  %v20519_v20 = vld [vmem:[#allocation6 + $0x1ea0] sm:$0xff]  }
 0x3be   :  { %18816 = vmatpush3.bf16.msra.mxu0 %v20441_v31  ;;  %v20480_v31 = vld [vmem:[#allocation6 + $0x1dd8] sm:$0xff]  }
 0x3bf   :  { %18817 = vmatprep.subr.bf16.mxu0 %v20443_v33  ;;  %18838 = vmatpush3.bf16.msra.mxu1 %v20442_v32  ;;  %v20481_v32 = vld [vmem:[#allocation6 + $0x1d18] sm:$0xff]  }
 0x3c0   :  { %18839 = vmatprep.subr.bf16.mxu1 %v20444_v34  ;;  %v20482_v33 = vld [vmem:[#allocation6 + $0x1d98] sm:$0xff]   ;;  %v20483_v34 = vld [vmem:[#allocation6 + $0x1d60] sm:$0xff]  }
 0x3c2   :  { %18818 = vmatpush3.bf16.msra.mxu0 %v20445_v36  ;;  %v20484_v36 = vld [vmem:[#allocation6 + $0x1de0] sm:$0xff]  }
 0x3c3   :  { %18819 = vmatprep.subr.bf16.mxu0 %v20447_v38  ;;  %18840 = vmatpush3.bf16.msra.mxu1 %v20446_v37  ;;  %v20485_v37 = vld [vmem:[#allocation6 + $0x1d20] sm:$0xff]  }
 0x3c4   :  { %18841 = vmatprep.subr.bf16.mxu1 %v20448_v39  ;;  %v20486_v38 = vld [vmem:[#allocation6 + $0x1da0] sm:$0xff]   ;;  %v20487_v39 = vld [vmem:[#allocation6 + $0x1d68] sm:$0xff]  }
 0x3c6   :  { %18820 = vmatpush3.bf16.msra.mxu0 %v20449_v40  ;;  %v20488_v40 = vld [vmem:[#allocation6 + $0x1de8] sm:$0xff]  }
 0x3c7   :  { %18821 = vmatprep.subr.bf16.mxu0 %v20451_v42  ;;  %18842 = vmatpush3.bf16.msra.mxu1 %v20450_v41  ;;  %v20489_v42 = vld [vmem:[#allocation6 + $0x1d28] sm:$0xff]  }
 0x3c8   :  { %18843 = vmatprep.subr.bf16.mxu1 %v20452_v43 }
 0x3ca   :  { %18822 = vmatpush3.bf16.msra.mxu0 %v20453_v44  ;;  %v20490_v44 = vld [vmem:[#allocation6 + $0x1da8] sm:$0xff]  }
 0x3cb   :  { %18823 = vmatprep.subr.bf16.mxu0 %v20455_v46  ;;  %18844 = vmatpush3.bf16.msra.mxu1 %v20454_v45 }
 0x3cc   :  { %v18521_v48 = vpop.f32.mrb[84].mxu0  ;;  %18845 = vmatprep.subr.bf16.mxu1 %v20456_v47 }
 0x3cd   :  { %v18522_v50 = vpop.f32.mrb[85].mxu0  ;;  %v18543_v52 = vpop.f32.mrb[84].mxu1 }
 0x3ce   :  { %v18523_v53 = vadd.f32 %v18522_v50, %v18521_v48  ;;  %v18524_v54 = vpop.f32.mrb[86].mxu0  ;;  %v18544_v57 = vpop.f32.mrb[85].mxu1  ;;  %18824 = vmatpush3.bf16.msra.mxu0 %v20457_v49  ;;  %v20491_v48 = vld [vmem:[#allocation6 + $0x1d70] sm:$0xff]  }
 0x3cf   :  { %v18525_v58 = vpop.f32.mrb[87].mxu0  ;;  %v18545_v60 = vadd.f32 %v18544_v57, %v18543_v52  ;;  %v18546_v61 = vpop.f32.mrb[86].mxu1  ;;  %18825 = vmatprep.subr.bf16.mxu0 %v20459_v55  ;;  %18846 = vmatpush3.bf16.msra.mxu1 %v20458_v51  ;;  %v20492_v49 = vld [vmem:[#allocation6 + $0x1df0] sm:$0xff]  }
 0x3d0   :  { %v14336_v59 = vadd.f32 %v18523_v53, %v21327_v18  ;;  %v18547_v63 = vpop.f32.mrb[87].mxu1  ;;  %18847 = vmatprep.subr.bf16.mxu1 %v20460_v56  ;;  %v3650_v18 = vcombine.high %v3628_v11, %v3628_v11  ;;  %v20493_v55 = vld [vmem:[#allocation6 + $0x1d30] sm:$0xff]   ;;  %v20497_v61 = vld [vmem:[#allocation6 + $0x1d38] sm:$0xff]  }
 0x3d1   :  { %v20494_v57 = vld [vmem:[#allocation6 + $0x1db0] sm:$0xff]   ;;  %v3635_v63 = vrot.slane %v21337_v13, %v21113_v35  ;;  %v20512_v13 = vld [vmem:[#allocation6 + $0x1e58] sm:$0xff]  }
 0x3d2   :  { %v21332_v1 = vadd.f32 %v18545_v60, %v14336_v59  ;;  %18826 = vmatpush3.bf16.msra.mxu0 %v20461_v62  ;;  %v20495_v59 = vld [vmem:[#allocation6 + $0x1d78] sm:$0xff]  }
 0x3d3   :  { %18827 = vmatprep.subr.bf16.mxu0 %v20463_v2  ;;  %18848 = vmatpush3.bf16.msra.mxu1 %v20462_v0  ;;  %v20496_v60 = vld [vmem:[#allocation6 + $0x1df8] sm:$0xff]   ;;  %v20500_v0 = vld [vmem:[#allocation6 + $0x1e40] sm:$0xff]  }
 0x3d4   :  { %18849 = vmatprep.subr.bf16.mxu1 %v20464_v3  ;;  %v20498_v62 = vld [vmem:[#allocation6 + $0x1db8] sm:$0xff]   ;;  %v20502_v2 = vld [vmem:[#allocation6 + $0x1e00] sm:$0xff]  }
 0x3d5   :  { %v20503_v3 = vld [vmem:[#allocation6 + $0x1e80] sm:$0xff]  }
 0x3d6   :  { %18828 = vmatpush3.bf16.msra.mxu0 %v20465_v4  ;;  %v3651_v4 = vcombine.high %v3635_v63, %v3635_v63 }
 0x3d7   :  { %18857 = vmatprep.subr.bf16.mxu0 %v20467_v7  ;;  %18850 = vmatpush3.bf16.msra.mxu1 %v20466_v9  ;;  %v20506_v7 = vld [vmem:[#allocation6 + $0x1e08] sm:$0xff]   ;;  %v20508_v9 = vld [vmem:[#allocation6 + $0x1e50] sm:$0xff]  }
 0x3d8   :  { %18879 = vmatprep.subr.bf16.mxu1 %v20468_v12  ;;  %v20511_v12 = vld [vmem:[#allocation6 + $0x1e90] sm:$0xff]  }
 0x3d9   :  { %14894 = vmatmul.mubr.bf16.vlgmr.msra.gmra.mrb[112].mxu0 %v3628_v11  ;;  %v20510_v11 = vld [vmem:[#allocation6 + $0x1e10] sm:$0xff]  }
 0x3da   :  { %18858 = vmatpush3.bf16.msra.mxu0 %v20469_v14  ;;  %14934 = vmatmul.mubr.bf16.vlgmr.msra.gmra.mrb[112].mxu1 %v3650_v18  ;;  %v20513_v14 = vld [vmem:[#allocation6 + $0x1ed8] sm:$0xff]   ;;  %v20517_v18 = vld [vmem:[#allocation6 + $0x1ee0] sm:$0xff]  }
 0x3db   :  { %18859 = vmatprep.subr.bf16.mxu0 %v20471_v19  ;;  %18880 = vmatpush3.bf16.msra.mxu1 %v20470_v16  ;;  %v20515_v16 = vld [vmem:[#allocation6 + $0x1e98] sm:$0xff]   ;;  %v20518_v19 = vld [vmem:[#allocation6 + $0x1e20] sm:$0xff]  }
 0x3dc   :  { %14973 = vmatprep.mubr.bf16.mxu0 %v3649_v22  ;;  %18881 = vmatprep.subr.bf16.mxu1 %v20472_v21  ;;  %v20520_v21 = vld [vmem:[#allocation6 + $0x1e68] sm:$0xff]  }
 0x3dd   :  { %15013 = vmatprep.mubr.bf16.mxu1 %v3653_v25  ;;  %v20521_v22 = vld [vmem:[#allocation6 + $0x1ee8] sm:$0xff]  }
 0x3de   :  { %18860 = vmatpush3.bf16.msra.mxu0 %v20473_v23 }
 0x3df   :  { %18861 = vmatprep.subr.bf16.mxu0 %v20475_v26  ;;  %18882 = vmatpush3.bf16.msra.mxu1 %v20474_v24  ;;  %v20522_v24 = vld [vmem:[#allocation6 + $0x1e28] sm:$0xff]  }
 0x3e0   :  { %18883 = vmatprep.subr.bf16.mxu1 %v20476_v27  ;;  %v20523_v26 = vld [vmem:[#allocation6 + $0x1ea8] sm:$0xff]  }
 0x3e2   :  { %18862 = vmatpush3.bf16.msra.mxu0 %v20477_v28 }
 0x3e3   :  { %18863 = vmatprep.subr.bf16.mxu0 %v20479_v30  ;;  %18884 = vmatpush3.bf16.msra.mxu1 %v20478_v29  ;;  %v20524_v30 = vld [vmem:[#allocation6 + $0x1e70] sm:$0xff]  }
 0x3e4   :  { %18885 = vmatprep.subr.bf16.mxu1 %v20480_v31  ;;  %v20525_v31 = vld [vmem:[#allocation6 + $0x1ef0] sm:$0xff]  }
 0x3e6   :  { %18864 = vmatpush3.bf16.msra.mxu0 %v20481_v32 }
 0x3e7   :  { %18865 = vmatprep.subr.bf16.mxu0 %v20483_v34  ;;  %18886 = vmatpush3.bf16.msra.mxu1 %v20482_v33 }
 0x3e8   :  { %18887 = vmatprep.subr.bf16.mxu1 %v20484_v36 }
 0x3ea   :  { %18866 = vmatpush3.bf16.msra.mxu0 %v20485_v37 }
 0x3eb   :  { %18867 = vmatprep.subr.bf16.mxu0 %v20487_v39  ;;  %18888 = vmatpush3.bf16.msra.mxu1 %v20486_v38  ;;  %v20526_v38 = vld [vmem:[#allocation6 + $0x1e30] sm:$0xff]  }
 0x3ec   :  { %v18565_v41 = vpop.f32.mrb[88].mxu0  ;;  %18889 = vmatprep.subr.bf16.mxu1 %v20488_v40  ;;  %v20527_v40 = vld [vmem:[#allocation6 + $0x1eb0] sm:$0xff]  }
 0x3ed   :  { %v18566_v43 = vpop.f32.mrb[89].mxu0  ;;  %v18587_v45 = vpop.f32.mrb[88].mxu1 }
 0x3ee   :  { %v18567_v46 = vadd.f32 %v18566_v43, %v18565_v41  ;;  %v18568_v47 = vpop.f32.mrb[90].mxu0  ;;  %v18588_v50 = vpop.f32.mrb[89].mxu1  ;;  %18868 = vmatpush3.bf16.msra.mxu0 %v20489_v42  ;;  %v20528_v42 = vld [vmem:[#allocation6 + $0x1e78] sm:$0xff]  }
 0x3ef   :  { %v18569_v51 = vpop.f32.mrb[91].mxu0  ;;  %v18589_v53 = vadd.f32 %v18588_v50, %v18587_v45  ;;  %v18590_v54 = vpop.f32.mrb[90].mxu1  ;;  %18869 = vmatprep.subr.bf16.mxu0 %v20491_v48  ;;  %18890 = vmatpush3.bf16.msra.mxu1 %v20490_v44  ;;  %v20529_v43 = vld [vmem:[#allocation6 + $0x1ef8] sm:$0xff]   ;;  %v73_v45 = vld [vmem:[#allocation3 + $0x78] sm:$0xff]  ;;  %v20532_v47 = vld [vmem:[#allocation6 + $0x1f40] sm:$0xff]  }
 0x3f0   :  { %v14416_v52 = vadd.f32 %v18567_v46, %v21332_v1  ;;  %v18591_v56 = vpop.f32.mrb[91].mxu1  ;;  %18891 = vmatprep.subr.bf16.mxu1 %v20492_v49  ;;  %v20501_v1 = vld [vmem:[#allocation6 + $0x1ec0] sm:$0xff]   ;;  %v20530_v44 = vld [vmem:[#allocation6 + $0x1e38] sm:$0xff]   ;;  %v3661_v46 = vrot.slane %v73_v45, %v21113_v35  ;;  %v3654_v48 = vcombine.high %v73_v45, %v73_v45  ;;  %v20569_v45 = vld [vmem:[#allocation6 + $0x2048] sm:$0xff]  }
 0x3f1   :  { %v20531_v49 = vld [vmem:[#allocation6 + $0x1eb8] sm:$0xff]   ;;  %v20534_v54 = vld [vmem:[#allocation6 + $0x1f00] sm:$0xff]  }
 0x3f2   :  { %v21344_v58 = vadd.f32 %v18589_v53, %v14416_v52  ;;  %18870 = vmatpush3.bf16.msra.mxu0 %v20493_v55  ;;  %v3669_v50 = vcombine.high %v3661_v46, %v3661_v46  ;;  %v3677_v51 = vrot.slane %v3661_v46, %v21113_v35  ;;  %v20533_v52 = vld [vmem:[#allocation6 + $0x1fc0] sm:$0xff]   ;;  %v21354_v53 = vrot.slane %v3654_v48, %v21113_v35  ;;  %v20570_v46 = vld [vmem:[#allocation6 + $0x20c8] sm:$0xff]  }
 0x3f3   :  { %18871 = vmatprep.subr.bf16.mxu0 %v20495_v59  ;;  %18892 = vmatpush3.bf16.msra.mxu1 %v20494_v57  ;;  %v20535_v56 = vld [vmem:[#allocation6 + $0x1f80] sm:$0xff]   ;;  %v20536_v59 = vld [vmem:[#allocation6 + $0x1f48] sm:$0xff]  }
 0x3f4   :  { %18893 = vmatprep.subr.bf16.mxu1 %v20496_v60  ;;  %v3691_v55 = vrot.slane %v3669_v50, %v21113_v35  ;;  %v3670_v57 = vcombine.high %v21354_v53, %v21354_v53  ;;  %v20572_v48 = vld [vmem:[#allocation6 + $0x2088] sm:$0xff]   ;;  %v20574_v50 = vld [vmem:[#allocation6 + $0x20d0] sm:$0xff]  }
 0x3f6   :  { %18872 = vmatpush3.bf16.msra.mxu0 %v20497_v61  ;;  %v3701_v60 = vcombine.high %v3691_v55, %v3691_v55  ;;  %v20537_v61 = vld [vmem:[#allocation6 + $0x1fc8] sm:$0xff]  }
 0x3f7   :  { %18901 = vmatprep.subr.bf16.mxu0 %v20500_v0  ;;  %18894 = vmatpush3.bf16.msra.mxu1 %v20498_v62  ;;  %v3698_v62 = vrot.slane %v3670_v57, %v21113_v35  ;;  %v20539_v0 = vld [vmem:[#allocation6 + $0x1f88] sm:$0xff]   ;;  %v20581_v57 = vld [vmem:[#allocation6 + $0x2060] sm:$0xff]  }
 0x3f8   :  { %18923 = vmatprep.subr.bf16.mxu1 %v20501_v1 }
 0x3f9   :  { %14974 = vmatmul.mubr.bf16.vlgmr.msra.gmra.mrb[116].mxu0 %v3635_v63  ;;  %v20538_v63 = vld [vmem:[#allocation6 + $0x1f08] sm:$0xff]   ;;  %v3702_v1 = vcombine.high %v3698_v62, %v3698_v62 }
 0x3fa   :  { %18902 = vmatpush3.bf16.msra.mxu0 %v20502_v2  ;;  %15014 = vmatmul.mubr.bf16.vlgmr.msra.gmra.mrb[116].mxu1 %v3651_v4  ;;  %v20540_v2 = vld [vmem:[#allocation6 + $0x1f50] sm:$0xff]  }
 0x3fb   :  { %18903 = vmatprep.subr.bf16.mxu0 %v20504_v5  ;;  %18924 = vmatpush3.bf16.msra.mxu1 %v20503_v3  ;;  %v20541_v3 = vld [vmem:[#allocation6 + $0x1fd0] sm:$0xff]  }
 0x3fc   :  { %18925 = vmatprep.subr.bf16.mxu1 %v20505_v6  ;;  %15053 = vmatprep.mubr.bf16.mxu0 %v3691_v55  ;;  %v20542_v4 = vld [vmem:[#allocation6 + $0x1f10] sm:$0xff]   ;;  %v20544_v6 = vld [vmem:[#allocation6 + $0x1f58] sm:$0xff]  }
 0x3fd   :  { %15093 = vmatprep.mubr.bf16.mxu1 %v3701_v60  ;;  %v20543_v5 = vld [vmem:[#allocation6 + $0x1f90] sm:$0xff]   ;;  %v20579_v55 = vld [vmem:[#allocation6 + $0x2018] sm:$0xff]   ;;  %v20584_v60 = vld [vmem:[#allocation6 + $0x20a0] sm:$0xff]  }
 0x3fe   :  { %18904 = vmatpush3.bf16.msra.mxu0 %v20506_v7  ;;  %v20545_v7 = vld [vmem:[#allocation6 + $0x1fd8] sm:$0xff]  }
 0x3ff   :  { %18905 = vmatprep.subr.bf16.mxu0 %v20508_v9  ;;  %18926 = vmatpush3.bf16.msra.mxu1 %v20507_v8  ;;  %v20546_v8 = vld [vmem:[#allocation6 + $0x1f18] sm:$0xff]  }
 0x400   :  { %18927 = vmatprep.subr.bf16.mxu1 %v20509_v10  ;;  %v20547_v9 = vld [vmem:[#allocation6 + $0x1f98] sm:$0xff]   ;;  %v20548_v10 = vld [vmem:[#allocation6 + $0x1f60] sm:$0xff]  }
 0x402   :  { %18906 = vmatpush3.bf16.msra.mxu0 %v20510_v11  ;;  %v20549_v11 = vld [vmem:[#allocation6 + $0x1fe0] sm:$0xff]  }
 0x403   :  { %18907 = vmatprep.subr.bf16.mxu0 %v20512_v13  ;;  %18928 = vmatpush3.bf16.msra.mxu1 %v20511_v12  ;;  %v20550_v12 = vld [vmem:[#allocation6 + $0x1f20] sm:$0xff]  }
 0x404   :  { %18929 = vmatprep.subr.bf16.mxu1 %v20513_v14  ;;  %v20551_v13 = vld [vmem:[#allocation6 + $0x1fa0] sm:$0xff]   ;;  %v20552_v14 = vld [vmem:[#allocation6 + $0x1f68] sm:$0xff]  }
 0x406   :  { %18908 = vmatpush3.bf16.msra.mxu0 %v20514_v15  ;;  %v20553_v15 = vld [vmem:[#allocation6 + $0x1fe8] sm:$0xff]  }
 0x407   :  { %18909 = vmatprep.subr.bf16.mxu0 %v20516_v17  ;;  %18930 = vmatpush3.bf16.msra.mxu1 %v20515_v16  ;;  %v20554_v17 = vld [vmem:[#allocation6 + $0x1f28] sm:$0xff]  }
 0x408   :  { %18931 = vmatprep.subr.bf16.mxu1 %v20517_v18 }
 0x40a   :  { %18910 = vmatpush3.bf16.msra.mxu0 %v20518_v19  ;;  %v20555_v19 = vld [vmem:[#allocation6 + $0x1fa8] sm:$0xff]  }
 0x40b   :  { %18911 = vmatprep.subr.bf16.mxu0 %v20520_v21  ;;  %18932 = vmatpush3.bf16.msra.mxu1 %v20519_v20 }
 0x40c   :  { %v18609_v23 = vpop.f32.mrb[92].mxu0  ;;  %18933 = vmatprep.subr.bf16.mxu1 %v20521_v22 }
 0x40d   :  { %v18610_v25 = vpop.f32.mrb[93].mxu0  ;;  %v18631_v27 = vpop.f32.mrb[92].mxu1 }
 0x40e   :  { %v18611_v28 = vadd.f32 %v18610_v25, %v18609_v23  ;;  %v18612_v29 = vpop.f32.mrb[94].mxu0  ;;  %v18632_v32 = vpop.f32.mrb[93].mxu1  ;;  %18912 = vmatpush3.bf16.msra.mxu0 %v20522_v24  ;;  %v20556_v23 = vld [vmem:[#allocation6 + $0x1f70] sm:$0xff]  }
 0x40f   :  { %v18613_v33 = vpop.f32.mrb[95].mxu0  ;;  %v18633_v36 = vadd.f32 %v18632_v32, %v18631_v27  ;;  %v18634_v37 = vpop.f32.mrb[94].mxu1  ;;  %18913 = vmatprep.subr.bf16.mxu0 %v20524_v30  ;;  %18934 = vmatpush3.bf16.msra.mxu1 %v20523_v26  ;;  %v20557_v24 = vld [vmem:[#allocation6 + $0x1ff0] sm:$0xff]  }
 0x410   :  { %v14496_v34 = vadd.f32 %v18611_v28, %v21344_v58  ;;  %v18635_v39 = vpop.f32.mrb[95].mxu1  ;;  %18935 = vmatprep.subr.bf16.mxu1 %v20525_v31  ;;  %v3699_v58 = vcombine.high %v3677_v51, %v3677_v51  ;;  %v20558_v30 = vld [vmem:[#allocation6 + $0x1f30] sm:$0xff]   ;;  %v20562_v37 = vld [vmem:[#allocation6 + $0x1f38] sm:$0xff]  }
 0x411   :  { %v20559_v32 = vld [vmem:[#allocation6 + $0x1fb0] sm:$0xff]   ;;  %v3684_v39 = vrot.slane %v21354_v53, %v21113_v35  ;;  %v20577_v53 = vld [vmem:[#allocation6 + $0x2058] sm:$0xff]  }
 0x412   :  { %v21349_v41 = vadd.f32 %v18633_v36, %v14496_v34  ;;  %18914 = vmatpush3.bf16.msra.mxu0 %v20526_v38  ;;  %v20560_v34 = vld [vmem:[#allocation6 + $0x1f78] sm:$0xff]  }
 0x413   :  { %18915 = vmatprep.subr.bf16.mxu0 %v20528_v42  ;;  %18936 = vmatpush3.bf16.msra.mxu1 %v20527_v40  ;;  %v20561_v36 = vld [vmem:[#allocation6 + $0x1ff8] sm:$0xff]   ;;  %v20565_v40 = vld [vmem:[#allocation6 + $0x2040] sm:$0xff]  }
 0x414   :  { %18937 = vmatprep.subr.bf16.mxu1 %v20529_v43  ;;  %v20563_v38 = vld [vmem:[#allocation6 + $0x1fb8] sm:$0xff]   ;;  %v20567_v42 = vld [vmem:[#allocation6 + $0x2000] sm:$0xff]  }
 0x415   :  { %v20568_v43 = vld [vmem:[#allocation6 + $0x2080] sm:$0xff]  }
 0x416   :  { %18916 = vmatpush3.bf16.msra.mxu0 %v20530_v44  ;;  %v3700_v44 = vcombine.high %v3684_v39, %v3684_v39 }
 0x417   :  { %18945 = vmatprep.subr.bf16.mxu0 %v20532_v47  ;;  %18938 = vmatpush3.bf16.msra.mxu1 %v20531_v49  ;;  %v20571_v47 = vld [vmem:[#allocation6 + $0x2008] sm:$0xff]   ;;  %v20573_v49 = vld [vmem:[#allocation6 + $0x2050] sm:$0xff]  }
 0x418   :  { %18967 = vmatprep.subr.bf16.mxu1 %v20533_v52  ;;  %v20576_v52 = vld [vmem:[#allocation6 + $0x2090] sm:$0xff]  }
 0x419   :  { %15054 = vmatmul.mubr.bf16.vlgmr.msra.gmra.mrb[120].mxu0 %v3677_v51  ;;  %v20575_v51 = vld [vmem:[#allocation6 + $0x2010] sm:$0xff]  }
 0x41a   :  { %18946 = vmatpush3.bf16.msra.mxu0 %v20534_v54  ;;  %15094 = vmatmul.mubr.bf16.vlgmr.msra.gmra.mrb[120].mxu1 %v3699_v58  ;;  %v20578_v54 = vld [vmem:[#allocation6 + $0x20d8] sm:$0xff]   ;;  %v20582_v58 = vld [vmem:[#allocation6 + $0x20e0] sm:$0xff]  }
 0x41b   :  { %18947 = vmatprep.subr.bf16.mxu0 %v20536_v59  ;;  %18968 = vmatpush3.bf16.msra.mxu1 %v20535_v56  ;;  %v20580_v56 = vld [vmem:[#allocation6 + $0x2098] sm:$0xff]   ;;  %v20583_v59 = vld [vmem:[#allocation6 + $0x2020] sm:$0xff]  }
 0x41c   :  { %15133 = vmatprep.mubr.bf16.mxu0 %v3698_v62  ;;  %18969 = vmatprep.subr.bf16.mxu1 %v20537_v61  ;;  %v20585_v61 = vld [vmem:[#allocation6 + $0x2068] sm:$0xff]  }
 0x41d   :  { %15173 = vmatprep.mubr.bf16.mxu1 %v3702_v1  ;;  %v20586_v62 = vld [vmem:[#allocation6 + $0x20e8] sm:$0xff]  }
 0x41e   :  { %18948 = vmatpush3.bf16.msra.mxu0 %v20538_v63 }
 0x41f   :  { %18949 = vmatprep.subr.bf16.mxu0 %v20540_v2  ;;  %18970 = vmatpush3.bf16.msra.mxu1 %v20539_v0  ;;  %v20587_v0 = vld [vmem:[#allocation6 + $0x2028] sm:$0xff]  }
 0x420   :  { %18971 = vmatprep.subr.bf16.mxu1 %v20541_v3  ;;  %v20588_v2 = vld [vmem:[#allocation6 + $0x20a8] sm:$0xff]  }
 0x422   :  { %18950 = vmatpush3.bf16.msra.mxu0 %v20542_v4 }
 0x423   :  { %18951 = vmatprep.subr.bf16.mxu0 %v20544_v6  ;;  %18972 = vmatpush3.bf16.msra.mxu1 %v20543_v5  ;;  %v20589_v6 = vld [vmem:[#allocation6 + $0x2070] sm:$0xff]  }
 0x424   :  { %18973 = vmatprep.subr.bf16.mxu1 %v20545_v7  ;;  %v20590_v7 = vld [vmem:[#allocation6 + $0x20f0] sm:$0xff]  }
 0x426   :  { %18952 = vmatpush3.bf16.msra.mxu0 %v20546_v8 }
 0x427   :  { %18953 = vmatprep.subr.bf16.mxu0 %v20548_v10  ;;  %18974 = vmatpush3.bf16.msra.mxu1 %v20547_v9 }
 0x428   :  { %18975 = vmatprep.subr.bf16.mxu1 %v20549_v11 }
 0x42a   :  { %18954 = vmatpush3.bf16.msra.mxu0 %v20550_v12 }
 0x42b   :  { %18955 = vmatprep.subr.bf16.mxu0 %v20552_v14  ;;  %18976 = vmatpush3.bf16.msra.mxu1 %v20551_v13  ;;  %v20591_v13 = vld [vmem:[#allocation6 + $0x2030] sm:$0xff]  }
 0x42c   :  { %v18653_v16 = vpop.f32.mrb[96].mxu0  ;;  %18977 = vmatprep.subr.bf16.mxu1 %v20553_v15  ;;  %v20592_v15 = vld [vmem:[#allocation6 + $0x20b0] sm:$0xff]  }
 0x42d   :  { %v18654_v18 = vpop.f32.mrb[97].mxu0  ;;  %v18675_v20 = vpop.f32.mrb[96].mxu1 }
 0x42e   :  { %v18655_v21 = vadd.f32 %v18654_v18, %v18653_v16  ;;  %v18656_v22 = vpop.f32.mrb[98].mxu0  ;;  %v18676_v25 = vpop.f32.mrb[97].mxu1  ;;  %18956 = vmatpush3.bf16.msra.mxu0 %v20554_v17  ;;  %v20593_v17 = vld [vmem:[#allocation6 + $0x2078] sm:$0xff]  }
 0x42f   :  { %v18657_v26 = vpop.f32.mrb[99].mxu0  ;;  %v18677_v28 = vadd.f32 %v18676_v25, %v18675_v20  ;;  %v18678_v29 = vpop.f32.mrb[98].mxu1  ;;  %18957 = vmatprep.subr.bf16.mxu0 %v20556_v23  ;;  %18978 = vmatpush3.bf16.msra.mxu1 %v20555_v19  ;;  %v20594_v18 = vld [vmem:[#allocation6 + $0x20f8] sm:$0xff]   ;;  %v74_v20 = vld [vmem:[#allocation3 + $0x80] sm:$0xff]  ;;  %v20597_v22 = vld [vmem:[#allocation6 + $0x2140] sm:$0xff]  }
 0x430   :  { %v14576_v27 = vadd.f32 %v18655_v21, %v21349_v41  ;;  %v18679_v31 = vpop.f32.mrb[99].mxu1  ;;  %18979 = vmatprep.subr.bf16.mxu1 %v20557_v24  ;;  %v20566_v41 = vld [vmem:[#allocation6 + $0x20c0] sm:$0xff]   ;;  %v20595_v19 = vld [vmem:[#allocation6 + $0x2038] sm:$0xff]   ;;  %v3710_v21 = vrot.slane %v74_v20, %v21113_v35  ;;  %v3703_v23 = vcombine.high %v74_v20, %v74_v20  ;;  %v20634_v20 = vld [vmem:[#allocation6 + $0x2248] sm:$0xff]  }
 0x431   :  { %v20596_v24 = vld [vmem:[#allocation6 + $0x20b8] sm:$0xff]   ;;  %v20599_v29 = vld [vmem:[#allocation6 + $0x2100] sm:$0xff]  }
 0x432   :  { %v21361_v33 = vadd.f32 %v18677_v28, %v14576_v27  ;;  %18958 = vmatpush3.bf16.msra.mxu0 %v20558_v30  ;;  %v3718_v25 = vcombine.high %v3710_v21, %v3710_v21  ;;  %v3726_v26 = vrot.slane %v3710_v21, %v21113_v35  ;;  %v20598_v27 = vld [vmem:[#allocation6 + $0x21c0] sm:$0xff]   ;;  %v21371_v28 = vrot.slane %v3703_v23, %v21113_v35  ;;  %v20635_v21 = vld [vmem:[#allocation6 + $0x22c8] sm:$0xff]  }
 0x433   :  { %18959 = vmatprep.subr.bf16.mxu0 %v20560_v34  ;;  %18980 = vmatpush3.bf16.msra.mxu1 %v20559_v32  ;;  %v20600_v31 = vld [vmem:[#allocation6 + $0x2180] sm:$0xff]   ;;  %v20601_v34 = vld [vmem:[#allocation6 + $0x2148] sm:$0xff]  }
 0x434   :  { %18981 = vmatprep.subr.bf16.mxu1 %v20561_v36  ;;  %v3740_v30 = vrot.slane %v3718_v25, %v21113_v35  ;;  %v3719_v32 = vcombine.high %v21371_v28, %v21371_v28  ;;  %v20637_v23 = vld [vmem:[#allocation6 + $0x2288] sm:$0xff]   ;;  %v20639_v25 = vld [vmem:[#allocation6 + $0x22d0] sm:$0xff]  }
 0x436   :  { %18960 = vmatpush3.bf16.msra.mxu0 %v20562_v37  ;;  %v3750_v36 = vcombine.high %v3740_v30, %v3740_v30  ;;  %v20602_v37 = vld [vmem:[#allocation6 + $0x21c8] sm:$0xff]  }
 0x437   :  { %18989 = vmatprep.subr.bf16.mxu0 %v20565_v40  ;;  %18982 = vmatpush3.bf16.msra.mxu1 %v20563_v38  ;;  %v3747_v38 = vrot.slane %v3719_v32, %v21113_v35  ;;  %v20604_v40 = vld [vmem:[#allocation6 + $0x2188] sm:$0xff]   ;;  %v20646_v32 = vld [vmem:[#allocation6 + $0x2260] sm:$0xff]  }
 0x438   :  { %19011 = vmatprep.subr.bf16.mxu1 %v20566_v41 }
 0x439   :  { %15134 = vmatmul.mubr.bf16.vlgmr.msra.gmra.mrb[124].mxu0 %v3684_v39  ;;  %v20603_v39 = vld [vmem:[#allocation6 + $0x2108] sm:$0xff]   ;;  %v3751_v41 = vcombine.high %v3747_v38, %v3747_v38 }
 0x43a   :  { %18990 = vmatpush3.bf16.msra.mxu0 %v20567_v42  ;;  %15174 = vmatmul.mubr.bf16.vlgmr.msra.gmra.mrb[124].mxu1 %v3700_v44  ;;  %v20605_v42 = vld [vmem:[#allocation6 + $0x2150] sm:$0xff]  }
 0x43b   :  { %18991 = vmatprep.subr.bf16.mxu0 %v20569_v45  ;;  %19012 = vmatpush3.bf16.msra.mxu1 %v20568_v43  ;;  %v20606_v43 = vld [vmem:[#allocation6 + $0x21d0] sm:$0xff]  }
 0x43c   :  { %19013 = vmatprep.subr.bf16.mxu1 %v20570_v46  ;;  %15213 = vmatprep.mubr.bf16.mxu0 %v3740_v30  ;;  %v20607_v44 = vld [vmem:[#allocation6 + $0x2110] sm:$0xff]   ;;  %v20609_v46 = vld [vmem:[#allocation6 + $0x2158] sm:$0xff]  }
 0x43d   :  { %15253 = vmatprep.mubr.bf16.mxu1 %v3750_v36  ;;  %v20608_v45 = vld [vmem:[#allocation6 + $0x2190] sm:$0xff]   ;;  %v20644_v30 = vld [vmem:[#allocation6 + $0x2218] sm:$0xff]   ;;  %v20649_v36 = vld [vmem:[#allocation6 + $0x22a0] sm:$0xff]  }
 0x43e   :  { %18992 = vmatpush3.bf16.msra.mxu0 %v20571_v47  ;;  %v20610_v47 = vld [vmem:[#allocation6 + $0x21d8] sm:$0xff]  }
 0x43f   :  { %18993 = vmatprep.subr.bf16.mxu0 %v20573_v49  ;;  %19014 = vmatpush3.bf16.msra.mxu1 %v20572_v48  ;;  %v20611_v48 = vld [vmem:[#allocation6 + $0x2118] sm:$0xff]  }
 0x440   :  { %19015 = vmatprep.subr.bf16.mxu1 %v20574_v50  ;;  %v20612_v49 = vld [vmem:[#allocation6 + $0x2198] sm:$0xff]   ;;  %v20613_v50 = vld [vmem:[#allocation6 + $0x2160] sm:$0xff]  }
 0x442   :  { %18994 = vmatpush3.bf16.msra.mxu0 %v20575_v51  ;;  %v20614_v51 = vld [vmem:[#allocation6 + $0x21e0] sm:$0xff]  }
 0x443   :  { %18995 = vmatprep.subr.bf16.mxu0 %v20577_v53  ;;  %19016 = vmatpush3.bf16.msra.mxu1 %v20576_v52  ;;  %v20615_v52 = vld [vmem:[#allocation6 + $0x2120] sm:$0xff]  }
 0x444   :  { %19017 = vmatprep.subr.bf16.mxu1 %v20578_v54  ;;  %v20616_v53 = vld [vmem:[#allocation6 + $0x21a0] sm:$0xff]   ;;  %v20617_v54 = vld [vmem:[#allocation6 + $0x2168] sm:$0xff]  }
 0x446   :  { %18996 = vmatpush3.bf16.msra.mxu0 %v20579_v55  ;;  %v20618_v55 = vld [vmem:[#allocation6 + $0x21e8] sm:$0xff]  }
 0x447   :  { %18997 = vmatprep.subr.bf16.mxu0 %v20581_v57  ;;  %19018 = vmatpush3.bf16.msra.mxu1 %v20580_v56  ;;  %v20619_v57 = vld [vmem:[#allocation6 + $0x2128] sm:$0xff]  }
 0x448   :  { %19019 = vmatprep.subr.bf16.mxu1 %v20582_v58 }
 0x44a   :  { %18998 = vmatpush3.bf16.msra.mxu0 %v20583_v59  ;;  %v20620_v59 = vld [vmem:[#allocation6 + $0x21a8] sm:$0xff]  }
 0x44b   :  { %18999 = vmatprep.subr.bf16.mxu0 %v20585_v61  ;;  %19020 = vmatpush3.bf16.msra.mxu1 %v20584_v60 }
 0x44c   :  { %v18697_v63 = vpop.f32.mrb[100].mxu0  ;;  %19021 = vmatprep.subr.bf16.mxu1 %v20586_v62 }
 0x44d   :  { %v18698_v1 = vpop.f32.mrb[101].mxu0  ;;  %v18719_v3 = vpop.f32.mrb[100].mxu1 }
 0x44e   :  { %v18699_v4 = vadd.f32 %v18698_v1, %v18697_v63  ;;  %v18700_v5 = vpop.f32.mrb[102].mxu0  ;;  %v18720_v8 = vpop.f32.mrb[101].mxu1  ;;  %19000 = vmatpush3.bf16.msra.mxu0 %v20587_v0  ;;  %v20621_v63 = vld [vmem:[#allocation6 + $0x2170] sm:$0xff]  }
 0x44f   :  { %v18701_v9 = vpop.f32.mrb[103].mxu0  ;;  %v18721_v11 = vadd.f32 %v18720_v8, %v18719_v3  ;;  %v18722_v12 = vpop.f32.mrb[102].mxu1  ;;  %19001 = vmatprep.subr.bf16.mxu0 %v20589_v6  ;;  %19022 = vmatpush3.bf16.msra.mxu1 %v20588_v2  ;;  %v20622_v0 = vld [vmem:[#allocation6 + $0x21f0] sm:$0xff]  }
 0x450   :  { %v14656_v10 = vadd.f32 %v18699_v4, %v21361_v33  ;;  %v18723_v14 = vpop.f32.mrb[103].mxu1  ;;  %19023 = vmatprep.subr.bf16.mxu1 %v20590_v7  ;;  %v3748_v33 = vcombine.high %v3726_v26, %v3726_v26  ;;  %v20623_v6 = vld [vmem:[#allocation6 + $0x2130] sm:$0xff]   ;;  %v20627_v12 = vld [vmem:[#allocation6 + $0x2138] sm:$0xff]  }
 0x451   :  { %v20624_v8 = vld [vmem:[#allocation6 + $0x21b0] sm:$0xff]   ;;  %v3733_v14 = vrot.slane %v21371_v28, %v21113_v35  ;;  %v20642_v28 = vld [vmem:[#allocation6 + $0x2258] sm:$0xff]  }
 0x452   :  { %v21366_v16 = vadd.f32 %v18721_v11, %v14656_v10  ;;  %19002 = vmatpush3.bf16.msra.mxu0 %v20591_v13  ;;  %v20625_v10 = vld [vmem:[#allocation6 + $0x2178] sm:$0xff]  }
 0x453   :  { %19003 = vmatprep.subr.bf16.mxu0 %v20593_v17  ;;  %19024 = vmatpush3.bf16.msra.mxu1 %v20592_v15  ;;  %v20626_v11 = vld [vmem:[#allocation6 + $0x21f8] sm:$0xff]   ;;  %v20630_v15 = vld [vmem:[#allocation6 + $0x2240] sm:$0xff]  }
 0x454   :  { %19025 = vmatprep.subr.bf16.mxu1 %v20594_v18  ;;  %v20628_v13 = vld [vmem:[#allocation6 + $0x21b8] sm:$0xff]   ;;  %v20632_v17 = vld [vmem:[#allocation6 + $0x2200] sm:$0xff]  }
 0x455   :  { %v20633_v18 = vld [vmem:[#allocation6 + $0x2280] sm:$0xff]  }
 0x456   :  { %19004 = vmatpush3.bf16.msra.mxu0 %v20595_v19  ;;  %v3749_v19 = vcombine.high %v3733_v14, %v3733_v14 }
 0x457   :  { %19033 = vmatprep.subr.bf16.mxu0 %v20597_v22  ;;  %19026 = vmatpush3.bf16.msra.mxu1 %v20596_v24  ;;  %v20636_v22 = vld [vmem:[#allocation6 + $0x2208] sm:$0xff]   ;;  %v20638_v24 = vld [vmem:[#allocation6 + $0x2250] sm:$0xff]  }
 0x458   :  { %19055 = vmatprep.subr.bf16.mxu1 %v20598_v27  ;;  %v20641_v27 = vld [vmem:[#allocation6 + $0x2290] sm:$0xff]  }
 0x459   :  { %15214 = vmatmul.mubr.bf16.vlgmr.msra.gmra.mrb[128].mxu0 %v3726_v26  ;;  %v20640_v26 = vld [vmem:[#allocation6 + $0x2210] sm:$0xff]  }
 0x45a   :  { %19034 = vmatpush3.bf16.msra.mxu0 %v20599_v29  ;;  %15254 = vmatmul.mubr.bf16.vlgmr.msra.gmra.mrb[128].mxu1 %v3748_v33  ;;  %v20643_v29 = vld [vmem:[#allocation6 + $0x22d8] sm:$0xff]   ;;  %v20647_v33 = vld [vmem:[#allocation6 + $0x22e0] sm:$0xff]  }
 0x45b   :  { %19035 = vmatprep.subr.bf16.mxu0 %v20601_v34  ;;  %19056 = vmatpush3.bf16.msra.mxu1 %v20600_v31  ;;  %v20645_v31 = vld [vmem:[#allocation6 + $0x2298] sm:$0xff]   ;;  %v20648_v34 = vld [vmem:[#allocation6 + $0x2220] sm:$0xff]  }
 0x45c   :  { %15293 = vmatprep.mubr.bf16.mxu0 %v3747_v38  ;;  %19057 = vmatprep.subr.bf16.mxu1 %v20602_v37  ;;  %v20650_v37 = vld [vmem:[#allocation6 + $0x2268] sm:$0xff]  }
 0x45d   :  { %15333 = vmatprep.mubr.bf16.mxu1 %v3751_v41  ;;  %v20651_v38 = vld [vmem:[#allocation6 + $0x22e8] sm:$0xff]  }
 0x45e   :  { %19036 = vmatpush3.bf16.msra.mxu0 %v20603_v39 }
 0x45f   :  { %19037 = vmatprep.subr.bf16.mxu0 %v20605_v42  ;;  %19058 = vmatpush3.bf16.msra.mxu1 %v20604_v40  ;;  %v20652_v40 = vld [vmem:[#allocation6 + $0x2228] sm:$0xff]  }
 0x460   :  { %19059 = vmatprep.subr.bf16.mxu1 %v20606_v43  ;;  %v20653_v42 = vld [vmem:[#allocation6 + $0x22a8] sm:$0xff]  }
 0x462   :  { %19038 = vmatpush3.bf16.msra.mxu0 %v20607_v44 }
 0x463   :  { %19039 = vmatprep.subr.bf16.mxu0 %v20609_v46  ;;  %19060 = vmatpush3.bf16.msra.mxu1 %v20608_v45  ;;  %v20654_v46 = vld [vmem:[#allocation6 + $0x2270] sm:$0xff]  }
 0x464   :  { %19061 = vmatprep.subr.bf16.mxu1 %v20610_v47  ;;  %v20655_v47 = vld [vmem:[#allocation6 + $0x22f0] sm:$0xff]  }
 0x466   :  { %19040 = vmatpush3.bf16.msra.mxu0 %v20611_v48 }
 0x467   :  { %19041 = vmatprep.subr.bf16.mxu0 %v20613_v50  ;;  %19062 = vmatpush3.bf16.msra.mxu1 %v20612_v49 }
 0x468   :  { %19063 = vmatprep.subr.bf16.mxu1 %v20614_v51 }
 0x46a   :  { %19042 = vmatpush3.bf16.msra.mxu0 %v20615_v52 }
 0x46b   :  { %19043 = vmatprep.subr.bf16.mxu0 %v20617_v54  ;;  %19064 = vmatpush3.bf16.msra.mxu1 %v20616_v53  ;;  %v20656_v53 = vld [vmem:[#allocation6 + $0x2230] sm:$0xff]  }
 0x46c   :  { %v18741_v56 = vpop.f32.mrb[104].mxu0  ;;  %19065 = vmatprep.subr.bf16.mxu1 %v20618_v55  ;;  %v20657_v55 = vld [vmem:[#allocation6 + $0x22b0] sm:$0xff]  }
 0x46d   :  { %v18742_v58 = vpop.f32.mrb[105].mxu0  ;;  %v18763_v60 = vpop.f32.mrb[104].mxu1 }
 0x46e   :  { %v18743_v61 = vadd.f32 %v18742_v58, %v18741_v56  ;;  %v18744_v62 = vpop.f32.mrb[106].mxu0  ;;  %v18764_v1 = vpop.f32.mrb[105].mxu1  ;;  %19044 = vmatpush3.bf16.msra.mxu0 %v20619_v57  ;;  %v20658_v57 = vld [vmem:[#allocation6 + $0x2278] sm:$0xff]  }
 0x46f   :  { %v18745_v2 = vpop.f32.mrb[107].mxu0  ;;  %v18765_v4 = vadd.f32 %v18764_v1, %v18763_v60  ;;  %v18766_v5 = vpop.f32.mrb[106].mxu1  ;;  %19045 = vmatprep.subr.bf16.mxu0 %v20621_v63  ;;  %19066 = vmatpush3.bf16.msra.mxu1 %v20620_v59  ;;  %v20659_v58 = vld [vmem:[#allocation6 + $0x22f8] sm:$0xff]   ;;  %v20662_v62 = vld [vmem:[#allocation6 + $0x2340] sm:$0xff]  }
 0x470   :  { %v14736_v3 = vadd.f32 %v18743_v61, %v21366_v16  ;;  %v18767_v7 = vpop.f32.mrb[107].mxu1  ;;  %19067 = vmatprep.subr.bf16.mxu1 %v20622_v0  ;;  %v20631_v16 = vld [vmem:[#allocation6 + $0x22c0] sm:$0xff]   ;;  %v20660_v59 = vld [vmem:[#allocation6 + $0x2238] sm:$0xff]  }
 0x471   :  { %v75_v60 = vld [vmem:[#allocation3 + $0x88] sm:$0xff]  ;;  %v20664_v5 = vld [vmem:[#allocation6 + $0x2300] sm:$0xff]  }
 0x472   :  { %v21378_v9 = vadd.f32 %v18765_v4, %v14736_v3  ;;  %19046 = vmatpush3.bf16.msra.mxu0 %v20623_v6  ;;  %v3759_v61 = vrot.slane %v75_v60, %v21113_v35  ;;  %v3752_v63 = vcombine.high %v75_v60, %v75_v60  ;;  %v20661_v0 = vld [vmem:[#allocation6 + $0x22b8] sm:$0xff]   ;;  %v20663_v3 = vld [vmem:[#allocation6 + $0x23c0] sm:$0xff]   ;;  %v20699_v60 = vld [vmem:[#allocation6 + $0x2448] sm:$0xff]  }
 0x473   :  { %19047 = vmatprep.subr.bf16.mxu0 %v20625_v10  ;;  %19068 = vmatpush3.bf16.msra.mxu1 %v20624_v8  ;;  %v20665_v7 = vld [vmem:[#allocation6 + $0x2380] sm:$0xff]   ;;  %v20666_v10 = vld [vmem:[#allocation6 + $0x2348] sm:$0xff]  }
 0x474   :  { %19069 = vmatprep.subr.bf16.mxu1 %v20626_v11  ;;  %v3767_v1 = vcombine.high %v3759_v61, %v3759_v61  ;;  %v3775_v2 = vrot.slane %v3759_v61, %v21113_v35  ;;  %v21388_v4 = vrot.slane %v3752_v63, %v21113_v35  ;;  %v20700_v61 = vld [vmem:[#allocation6 + $0x24c8] sm:$0xff]  }
 0x475   :  { %v20702_v63 = vld [vmem:[#allocation6 + $0x2488] sm:$0xff]  }
 0x476   :  { %19048 = vmatpush3.bf16.msra.mxu0 %v20627_v12  ;;  %v3789_v6 = vrot.slane %v3767_v1, %v21113_v35  ;;  %v3768_v8 = vcombine.high %v21388_v4, %v21388_v4  ;;  %v20667_v12 = vld [vmem:[#allocation6 + $0x23c8] sm:$0xff]   ;;  %v20704_v1 = vld [vmem:[#allocation6 + $0x24d0] sm:$0xff]  }
 0x477   :  { %19077 = vmatprep.subr.bf16.mxu0 %v20630_v15  ;;  %19070 = vmatpush3.bf16.msra.mxu1 %v20628_v13  ;;  %v20669_v15 = vld [vmem:[#allocation6 + $0x2388] sm:$0xff]  }
 0x478   :  { %19099 = vmatprep.subr.bf16.mxu1 %v20631_v16  ;;  %v3799_v11 = vcombine.high %v3789_v6, %v3789_v6  ;;  %v3796_v13 = vrot.slane %v3768_v8, %v21113_v35  ;;  %v20711_v8 = vld [vmem:[#allocation6 + $0x2460] sm:$0xff]  }
 0x479   :  { %15294 = vmatmul.mubr.bf16.vlgmr.msra.gmra.mrb[132].mxu0 %v3733_v14  ;;  %v20668_v14 = vld [vmem:[#allocation6 + $0x2308] sm:$0xff]  }
 0x47a   :  { %19078 = vmatpush3.bf16.msra.mxu0 %v20632_v17  ;;  %15334 = vmatmul.mubr.bf16.vlgmr.msra.gmra.mrb[132].mxu1 %v3749_v19  ;;  %v3800_v16 = vcombine.high %v3796_v13, %v3796_v13  ;;  %v20670_v17 = vld [vmem:[#allocation6 + $0x2350] sm:$0xff]  }
 0x47b   :  { %19079 = vmatprep.subr.bf16.mxu0 %v20634_v20  ;;  %19100 = vmatpush3.bf16.msra.mxu1 %v20633_v18  ;;  %v20671_v18 = vld [vmem:[#allocation6 + $0x23d0] sm:$0xff]  }
 0x47c   :  { %19101 = vmatprep.subr.bf16.mxu1 %v20635_v21  ;;  %15373 = vmatprep.mubr.bf16.mxu0 %v3789_v6  ;;  %v20672_v19 = vld [vmem:[#allocation6 + $0x2310] sm:$0xff]   ;;  %v20674_v21 = vld [vmem:[#allocation6 + $0x2358] sm:$0xff]  }
 0x47d   :  { %15413 = vmatprep.mubr.bf16.mxu1 %v3799_v11  ;;  %v20673_v20 = vld [vmem:[#allocation6 + $0x2390] sm:$0xff]   ;;  %v20709_v6 = vld [vmem:[#allocation6 + $0x2418] sm:$0xff]   ;;  %v20714_v11 = vld [vmem:[#allocation6 + $0x24a0] sm:$0xff]  }
 0x47e   :  { %19080 = vmatpush3.bf16.msra.mxu0 %v20636_v22  ;;  %v20675_v22 = vld [vmem:[#allocation6 + $0x23d8] sm:$0xff]  }
 0x47f   :  { %19081 = vmatprep.subr.bf16.mxu0 %v20638_v24  ;;  %19102 = vmatpush3.bf16.msra.mxu1 %v20637_v23  ;;  %v20676_v23 = vld [vmem:[#allocation6 + $0x2318] sm:$0xff]  }
 0x480   :  { %19103 = vmatprep.subr.bf16.mxu1 %v20639_v25  ;;  %v20677_v24 = vld [vmem:[#allocation6 + $0x2398] sm:$0xff]   ;;  %v20678_v25 = vld [vmem:[#allocation6 + $0x2360] sm:$0xff]  }
 0x482   :  { %19082 = vmatpush3.bf16.msra.mxu0 %v20640_v26  ;;  %v20679_v26 = vld [vmem:[#allocation6 + $0x23e0] sm:$0xff]  }
 0x483   :  { %19083 = vmatprep.subr.bf16.mxu0 %v20642_v28  ;;  %19104 = vmatpush3.bf16.msra.mxu1 %v20641_v27  ;;  %v20680_v27 = vld [vmem:[#allocation6 + $0x2320] sm:$0xff]  }
 0x484   :  { %19105 = vmatprep.subr.bf16.mxu1 %v20643_v29  ;;  %v20681_v28 = vld [vmem:[#allocation6 + $0x23a0] sm:$0xff]   ;;  %v20682_v29 = vld [vmem:[#allocation6 + $0x2368] sm:$0xff]  }
 0x486   :  { %19084 = vmatpush3.bf16.msra.mxu0 %v20644_v30  ;;  %v20683_v30 = vld [vmem:[#allocation6 + $0x23e8] sm:$0xff]  }
 0x487   :  { %19085 = vmatprep.subr.bf16.mxu0 %v20646_v32  ;;  %19106 = vmatpush3.bf16.msra.mxu1 %v20645_v31  ;;  %v20684_v32 = vld [vmem:[#allocation6 + $0x2328] sm:$0xff]  }
 0x488   :  { %19107 = vmatprep.subr.bf16.mxu1 %v20647_v33 }
 0x48a   :  { %19086 = vmatpush3.bf16.msra.mxu0 %v20648_v34  ;;  %v20685_v34 = vld [vmem:[#allocation6 + $0x23a8] sm:$0xff]  }
 0x48b   :  { %19087 = vmatprep.subr.bf16.mxu0 %v20650_v37  ;;  %19108 = vmatpush3.bf16.msra.mxu1 %v20649_v36 }
 0x48c   :  { %v18785_v39 = vpop.f32.mrb[108].mxu0  ;;  %19109 = vmatprep.subr.bf16.mxu1 %v20651_v38 }
 0x48d   :  { %v18786_v41 = vpop.f32.mrb[109].mxu0  ;;  %v18807_v43 = vpop.f32.mrb[108].mxu1 }
 0x48e   :  { %v18787_v44 = vadd.f32 %v18786_v41, %v18785_v39  ;;  %v18788_v45 = vpop.f32.mrb[110].mxu0  ;;  %v18808_v48 = vpop.f32.mrb[109].mxu1  ;;  %19088 = vmatpush3.bf16.msra.mxu0 %v20652_v40  ;;  %v20686_v39 = vld [vmem:[#allocation6 + $0x2370] sm:$0xff]  }
 0x48f   :  { %v18789_v49 = vpop.f32.mrb[111].mxu0  ;;  %v18809_v51 = vadd.f32 %v18808_v48, %v18807_v43  ;;  %v18810_v52 = vpop.f32.mrb[110].mxu1  ;;  %19089 = vmatprep.subr.bf16.mxu0 %v20654_v46  ;;  %19110 = vmatpush3.bf16.msra.mxu1 %v20653_v42  ;;  %v20687_v40 = vld [vmem:[#allocation6 + $0x23f0] sm:$0xff]  }
 0x490   :  { %v14816_v50 = vadd.f32 %v18787_v44, %v21378_v9  ;;  %v18811_v54 = vpop.f32.mrb[111].mxu1  ;;  %19111 = vmatprep.subr.bf16.mxu1 %v20655_v47  ;;  %v3797_v9 = vcombine.high %v3775_v2, %v3775_v2  ;;  %v20688_v46 = vld [vmem:[#allocation6 + $0x2330] sm:$0xff]   ;;  %v20692_v52 = vld [vmem:[#allocation6 + $0x2338] sm:$0xff]  }
 0x491   :  { %v20689_v48 = vld [vmem:[#allocation6 + $0x23b0] sm:$0xff]   ;;  %v3782_v54 = vrot.slane %v21388_v4, %v21113_v35  ;;  %v20707_v4 = vld [vmem:[#allocation6 + $0x2458] sm:$0xff]  }
 0x492   :  { %v21383_v56 = vadd.f32 %v18809_v51, %v14816_v50  ;;  %19090 = vmatpush3.bf16.msra.mxu0 %v20656_v53  ;;  %v20690_v50 = vld [vmem:[#allocation6 + $0x2378] sm:$0xff]  }
 0x493   :  { %19091 = vmatprep.subr.bf16.mxu0 %v20658_v57  ;;  %19112 = vmatpush3.bf16.msra.mxu1 %v20657_v55  ;;  %v20691_v51 = vld [vmem:[#allocation6 + $0x23f8] sm:$0xff]   ;;  %v20695_v55 = vld [vmem:[#allocation6 + $0x2440] sm:$0xff]  }
 0x494   :  { %19113 = vmatprep.subr.bf16.mxu1 %v20659_v58  ;;  %v20693_v53 = vld [vmem:[#allocation6 + $0x23b8] sm:$0xff]   ;;  %v20697_v57 = vld [vmem:[#allocation6 + $0x2400] sm:$0xff]  }
 0x495   :  { %v20698_v58 = vld [vmem:[#allocation6 + $0x2480] sm:$0xff]  }
 0x496   :  { %19092 = vmatpush3.bf16.msra.mxu0 %v20660_v59  ;;  %v3798_v59 = vcombine.high %v3782_v54, %v3782_v54 }
 0x497   :  { %19121 = vmatprep.subr.bf16.mxu0 %v20662_v62  ;;  %19114 = vmatpush3.bf16.msra.mxu1 %v20661_v0  ;;  %v20701_v62 = vld [vmem:[#allocation6 + $0x2408] sm:$0xff]   ;;  %v20703_v0 = vld [vmem:[#allocation6 + $0x2450] sm:$0xff]  }
 0x498   :  { %19143 = vmatprep.subr.bf16.mxu1 %v20663_v3  ;;  %v20706_v3 = vld [vmem:[#allocation6 + $0x2490] sm:$0xff]  }
 0x499   :  { %15374 = vmatmul.mubr.bf16.vlgmr.msra.gmra.mrb[136].mxu0 %v3775_v2  ;;  %v20705_v2 = vld [vmem:[#allocation6 + $0x2410] sm:$0xff]  }
 0x49a   :  { %19122 = vmatpush3.bf16.msra.mxu0 %v20664_v5  ;;  %15414 = vmatmul.mubr.bf16.vlgmr.msra.gmra.mrb[136].mxu1 %v3797_v9  ;;  %v20708_v5 = vld [vmem:[#allocation6 + $0x24d8] sm:$0xff]   ;;  %v20712_v9 = vld [vmem:[#allocation6 + $0x24e0] sm:$0xff]  }
 0x49b   :  { %19123 = vmatprep.subr.bf16.mxu0 %v20666_v10  ;;  %19144 = vmatpush3.bf16.msra.mxu1 %v20665_v7  ;;  %v20710_v7 = vld [vmem:[#allocation6 + $0x2498] sm:$0xff]   ;;  %v20713_v10 = vld [vmem:[#allocation6 + $0x2420] sm:$0xff]  }
 0x49c   :  { %15453 = vmatprep.mubr.bf16.mxu0 %v3796_v13  ;;  %19145 = vmatprep.subr.bf16.mxu1 %v20667_v12  ;;  %v20715_v12 = vld [vmem:[#allocation6 + $0x2468] sm:$0xff]  }
 0x49d   :  { %15493 = vmatprep.mubr.bf16.mxu1 %v3800_v16  ;;  %v20716_v13 = vld [vmem:[#allocation6 + $0x24e8] sm:$0xff]  }
 0x49e   :  { %19124 = vmatpush3.bf16.msra.mxu0 %v20668_v14 }
 0x49f   :  { %19125 = vmatprep.subr.bf16.mxu0 %v20670_v17  ;;  %19146 = vmatpush3.bf16.msra.mxu1 %v20669_v15  ;;  %v20717_v15 = vld [vmem:[#allocation6 + $0x2428] sm:$0xff]  }
 0x4a0   :  { %19147 = vmatprep.subr.bf16.mxu1 %v20671_v18  ;;  %v20718_v17 = vld [vmem:[#allocation6 + $0x24a8] sm:$0xff]  }
 0x4a2   :  { %19126 = vmatpush3.bf16.msra.mxu0 %v20672_v19 }
 0x4a3   :  { %19127 = vmatprep.subr.bf16.mxu0 %v20674_v21  ;;  %19148 = vmatpush3.bf16.msra.mxu1 %v20673_v20  ;;  %v20719_v21 = vld [vmem:[#allocation6 + $0x2470] sm:$0xff]  }
 0x4a4   :  { %19149 = vmatprep.subr.bf16.mxu1 %v20675_v22  ;;  %v20720_v22 = vld [vmem:[#allocation6 + $0x24f0] sm:$0xff]  }
 0x4a6   :  { %19128 = vmatpush3.bf16.msra.mxu0 %v20676_v23 }
 0x4a7   :  { %19129 = vmatprep.subr.bf16.mxu0 %v20678_v25  ;;  %19150 = vmatpush3.bf16.msra.mxu1 %v20677_v24 }
 0x4a8   :  { %19151 = vmatprep.subr.bf16.mxu1 %v20679_v26 }
 0x4aa   :  { %19130 = vmatpush3.bf16.msra.mxu0 %v20680_v27 }
 0x4ab   :  { %19131 = vmatprep.subr.bf16.mxu0 %v20682_v29  ;;  %19152 = vmatpush3.bf16.msra.mxu1 %v20681_v28  ;;  %v20721_v28 = vld [vmem:[#allocation6 + $0x2430] sm:$0xff]  }
 0x4ac   :  { %v18829_v31 = vpop.f32.mrb[112].mxu0  ;;  %19153 = vmatprep.subr.bf16.mxu1 %v20683_v30  ;;  %v20722_v30 = vld [vmem:[#allocation6 + $0x24b0] sm:$0xff]  }
 0x4ad   :  { %v18830_v33 = vpop.f32.mrb[113].mxu0  ;;  %v18851_v36 = vpop.f32.mrb[112].mxu1 }
 0x4ae   :  { %v18831_v37 = vadd.f32 %v18830_v33, %v18829_v31  ;;  %v18832_v38 = vpop.f32.mrb[114].mxu0  ;;  %v18852_v41 = vpop.f32.mrb[113].mxu1  ;;  %19132 = vmatpush3.bf16.msra.mxu0 %v20684_v32  ;;  %v20723_v32 = vld [vmem:[#allocation6 + $0x2478] sm:$0xff]  }
 0x4af   :  { %v18833_v42 = vpop.f32.mrb[115].mxu0  ;;  %v18853_v44 = vadd.f32 %v18852_v41, %v18851_v36  ;;  %v18854_v45 = vpop.f32.mrb[114].mxu1  ;;  %19133 = vmatprep.subr.bf16.mxu0 %v20686_v39  ;;  %19154 = vmatpush3.bf16.msra.mxu1 %v20685_v34  ;;  %v20724_v33 = vld [vmem:[#allocation6 + $0x24f8] sm:$0xff]   ;;  %v76_v36 = vld [vmem:[#allocation3 + $0x90] sm:$0xff] }
 0x4b0   :  { %v14896_v43 = vadd.f32 %v18831_v37, %v21383_v56  ;;  %v18855_v47 = vpop.f32.mrb[115].mxu1  ;;  %19155 = vmatprep.subr.bf16.mxu1 %v20687_v40  ;;  %v20696_v56 = vld [vmem:[#allocation6 + $0x24c0] sm:$0xff]   ;;  %v20725_v34 = vld [vmem:[#allocation6 + $0x2438] sm:$0xff]   ;;  %v3808_v37 = vrot.slane %v76_v36, %v21113_v35  ;;  %v3801_v39 = vcombine.high %v76_v36, %v76_v36  ;;  %v20764_v36 = vld [vmem:[#allocation6 + $0x2648] sm:$0xff]  }
 0x4b1   :  { %v20727_v38 = vld [vmem:[#allocation6 + $0x2540] sm:$0xff]   ;;  %v20726_v40 = vld [vmem:[#allocation6 + $0x24b8] sm:$0xff]  }
 0x4b2   :  { %v21395_v49 = vadd.f32 %v18853_v44, %v14896_v43  ;;  %19134 = vmatpush3.bf16.msra.mxu0 %v20688_v46  ;;  %v3816_v41 = vcombine.high %v3808_v37, %v3808_v37  ;;  %v3824_v42 = vrot.slane %v3808_v37, %v21113_v35  ;;  %v20728_v43 = vld [vmem:[#allocation6 + $0x25c0] sm:$0xff]   ;;  %v21405_v44 = vrot.slane %v3801_v39, %v21113_v35  ;;  %v20765_v37 = vld [vmem:[#allocation6 + $0x26c8] sm:$0xff]  }
 0x4b3   :  { %19135 = vmatprep.subr.bf16.mxu0 %v20690_v50  ;;  %19156 = vmatpush3.bf16.msra.mxu1 %v20689_v48  ;;  %v20729_v45 = vld [vmem:[#allocation6 + $0x2500] sm:$0xff]   ;;  %v20731_v50 = vld [vmem:[#allocation6 + $0x2548] sm:$0xff]  }
 0x4b4   :  { %19157 = vmatprep.subr.bf16.mxu1 %v20691_v51  ;;  %v3838_v46 = vrot.slane %v3816_v41, %v21113_v35  ;;  %v20730_v47 = vld [vmem:[#allocation6 + $0x2580] sm:$0xff]   ;;  %v3817_v48 = vcombine.high %v21405_v44, %v21405_v44  ;;  %v20767_v39 = vld [vmem:[#allocation6 + $0x2688] sm:$0xff]   ;;  %v20769_v41 = vld [vmem:[#allocation6 + $0x26d0] sm:$0xff]  }
 0x4b6   :  { %19136 = vmatpush3.bf16.msra.mxu0 %v20692_v52  ;;  %v3848_v51 = vcombine.high %v3838_v46, %v3838_v46  ;;  %v20732_v52 = vld [vmem:[#allocation6 + $0x25c8] sm:$0xff]  }
 0x4b7   :  { %19165 = vmatprep.subr.bf16.mxu0 %v20695_v55  ;;  %19158 = vmatpush3.bf16.msra.mxu1 %v20693_v53  ;;  %v3845_v53 = vrot.slane %v3817_v48, %v21113_v35  ;;  %v20734_v55 = vld [vmem:[#allocation6 + $0x2588] sm:$0xff]   ;;  %v20776_v48 = vld [vmem:[#allocation6 + $0x2660] sm:$0xff]  }
 0x4b8   :  { %19187 = vmatprep.subr.bf16.mxu1 %v20696_v56 }
 0x4b9   :  { %15454 = vmatmul.mubr.bf16.vlgmr.msra.gmra.mrb[140].mxu0 %v3782_v54  ;;  %v20733_v54 = vld [vmem:[#allocation6 + $0x2508] sm:$0xff]   ;;  %v3849_v56 = vcombine.high %v3845_v53, %v3845_v53 }
 0x4ba   :  { %19166 = vmatpush3.bf16.msra.mxu0 %v20697_v57  ;;  %15494 = vmatmul.mubr.bf16.vlgmr.msra.gmra.mrb[140].mxu1 %v3798_v59  ;;  %v20735_v57 = vld [vmem:[#allocation6 + $0x2550] sm:$0xff]  }
 0x4bb   :  { %19167 = vmatprep.subr.bf16.mxu0 %v20699_v60  ;;  %19188 = vmatpush3.bf16.msra.mxu1 %v20698_v58  ;;  %v20736_v58 = vld [vmem:[#allocation6 + $0x25d0] sm:$0xff]  }
 0x4bc   :  { %19189 = vmatprep.subr.bf16.mxu1 %v20700_v61  ;;  %15533 = vmatprep.mubr.bf16.mxu0 %v3838_v46  ;;  %v20737_v59 = vld [vmem:[#allocation6 + $0x2510] sm:$0xff]   ;;  %v20739_v61 = vld [vmem:[#allocation6 + $0x2558] sm:$0xff]  }
 0x4bd   :  { %15573 = vmatprep.mubr.bf16.mxu1 %v3848_v51  ;;  %v20738_v60 = vld [vmem:[#allocation6 + $0x2590] sm:$0xff]   ;;  %v20774_v46 = vld [vmem:[#allocation6 + $0x2618] sm:$0xff]   ;;  %v20779_v51 = vld [vmem:[#allocation6 + $0x26a0] sm:$0xff]  }
 0x4be   :  { %19168 = vmatpush3.bf16.msra.mxu0 %v20701_v62  ;;  %v20740_v62 = vld [vmem:[#allocation6 + $0x25d8] sm:$0xff]  }
 0x4bf   :  { %19169 = vmatprep.subr.bf16.mxu0 %v20703_v0  ;;  %19190 = vmatpush3.bf16.msra.mxu1 %v20702_v63  ;;  %v20741_v63 = vld [vmem:[#allocation6 + $0x2518] sm:$0xff]  }
 0x4c0   :  { %19191 = vmatprep.subr.bf16.mxu1 %v20704_v1  ;;  %v20742_v0 = vld [vmem:[#allocation6 + $0x2598] sm:$0xff]   ;;  %v20743_v1 = vld [vmem:[#allocation6 + $0x2560] sm:$0xff]  }
 0x4c2   :  { %19170 = vmatpush3.bf16.msra.mxu0 %v20705_v2  ;;  %v20744_v2 = vld [vmem:[#allocation6 + $0x25e0] sm:$0xff]  }
 0x4c3   :  { %19171 = vmatprep.subr.bf16.mxu0 %v20707_v4  ;;  %19192 = vmatpush3.bf16.msra.mxu1 %v20706_v3  ;;  %v20745_v3 = vld [vmem:[#allocation6 + $0x2520] sm:$0xff]  }
 0x4c4   :  { %19193 = vmatprep.subr.bf16.mxu1 %v20708_v5  ;;  %v20746_v4 = vld [vmem:[#allocation6 + $0x25a0] sm:$0xff]   ;;  %v20747_v5 = vld [vmem:[#allocation6 + $0x2568] sm:$0xff]  }
 0x4c6   :  { %19172 = vmatpush3.bf16.msra.mxu0 %v20709_v6  ;;  %v20748_v6 = vld [vmem:[#allocation6 + $0x25e8] sm:$0xff]  }
 0x4c7   :  { %19173 = vmatprep.subr.bf16.mxu0 %v20711_v8  ;;  %19194 = vmatpush3.bf16.msra.mxu1 %v20710_v7  ;;  %v20749_v8 = vld [vmem:[#allocation6 + $0x2528] sm:$0xff]  }
 0x4c8   :  { %19195 = vmatprep.subr.bf16.mxu1 %v20712_v9 }
 0x4ca   :  { %19174 = vmatpush3.bf16.msra.mxu0 %v20713_v10  ;;  %v20750_v10 = vld [vmem:[#allocation6 + $0x25a8] sm:$0xff]  }
 0x4cb   :  { %19175 = vmatprep.subr.bf16.mxu0 %v20715_v12  ;;  %19196 = vmatpush3.bf16.msra.mxu1 %v20714_v11 }
 0x4cc   :  { %v18873_v14 = vpop.f32.mrb[116].mxu0  ;;  %19197 = vmatprep.subr.bf16.mxu1 %v20716_v13 }
 0x4cd   :  { %v18874_v16 = vpop.f32.mrb[117].mxu0  ;;  %v18895_v18 = vpop.f32.mrb[116].mxu1 }
 0x4ce   :  { %v18875_v19 = vadd.f32 %v18874_v16, %v18873_v14  ;;  %v18876_v20 = vpop.f32.mrb[118].mxu0  ;;  %v18896_v23 = vpop.f32.mrb[117].mxu1  ;;  %19176 = vmatpush3.bf16.msra.mxu0 %v20717_v15  ;;  %v20751_v14 = vld [vmem:[#allocation6 + $0x2570] sm:$0xff]  }
 0x4cf   :  { %v18877_v24 = vpop.f32.mrb[119].mxu0  ;;  %v18897_v26 = vadd.f32 %v18896_v23, %v18895_v18  ;;  %v18898_v27 = vpop.f32.mrb[118].mxu1  ;;  %19177 = vmatprep.subr.bf16.mxu0 %v20719_v21  ;;  %19198 = vmatpush3.bf16.msra.mxu1 %v20718_v17  ;;  %v20752_v15 = vld [vmem:[#allocation6 + $0x25f0] sm:$0xff]  }
 0x4d0   :  { %v14976_v25 = vadd.f32 %v18875_v19, %v21395_v49  ;;  %v18899_v29 = vpop.f32.mrb[119].mxu1  ;;  %19199 = vmatprep.subr.bf16.mxu1 %v20720_v22  ;;  %v3846_v49 = vcombine.high %v3824_v42, %v3824_v42  ;;  %v20753_v21 = vld [vmem:[#allocation6 + $0x2530] sm:$0xff]   ;;  %v20757_v27 = vld [vmem:[#allocation6 + $0x2538] sm:$0xff]  }
 0x4d1   :  { %v20754_v23 = vld [vmem:[#allocation6 + $0x25b0] sm:$0xff]   ;;  %v3831_v29 = vrot.slane %v21405_v44, %v21113_v35  ;;  %v20772_v44 = vld [vmem:[#allocation6 + $0x2658] sm:$0xff]  }
 0x4d2   :  { %v21400_v31 = vadd.f32 %v18897_v26, %v14976_v25  ;;  %19178 = vmatpush3.bf16.msra.mxu0 %v20721_v28  ;;  %v20755_v25 = vld [vmem:[#allocation6 + $0x2578] sm:$0xff]  }
 0x4d3   :  { %19179 = vmatprep.subr.bf16.mxu0 %v20723_v32  ;;  %19200 = vmatpush3.bf16.msra.mxu1 %v20722_v30  ;;  %v20756_v26 = vld [vmem:[#allocation6 + $0x25f8] sm:$0xff]   ;;  %v20760_v30 = vld [vmem:[#allocation6 + $0x2640] sm:$0xff]  }
 0x4d4   :  { %19201 = vmatprep.subr.bf16.mxu1 %v20724_v33  ;;  %v20758_v28 = vld [vmem:[#allocation6 + $0x25b8] sm:$0xff]   ;;  %v20762_v32 = vld [vmem:[#allocation6 + $0x2600] sm:$0xff]  }
 0x4d5   :  { %v20763_v33 = vld [vmem:[#allocation6 + $0x2680] sm:$0xff]  }
 0x4d6   :  { %19180 = vmatpush3.bf16.msra.mxu0 %v20725_v34  ;;  %v3847_v34 = vcombine.high %v3831_v29, %v3831_v29 }
 0x4d7   :  { %19209 = vmatprep.subr.bf16.mxu0 %v20727_v38  ;;  %19202 = vmatpush3.bf16.msra.mxu1 %v20726_v40  ;;  %v20766_v38 = vld [vmem:[#allocation6 + $0x2608] sm:$0xff]   ;;  %v20768_v40 = vld [vmem:[#allocation6 + $0x2650] sm:$0xff]  }
 0x4d8   :  { %19231 = vmatprep.subr.bf16.mxu1 %v20728_v43  ;;  %v20771_v43 = vld [vmem:[#allocation6 + $0x2690] sm:$0xff]  }
 0x4d9   :  { %15534 = vmatmul.mubr.bf16.vlgmr.msra.gmra.mrb[144].mxu0 %v3824_v42  ;;  %v20770_v42 = vld [vmem:[#allocation6 + $0x2610] sm:$0xff]  }
 0x4da   :  { %19210 = vmatpush3.bf16.msra.mxu0 %v20729_v45  ;;  %15574 = vmatmul.mubr.bf16.vlgmr.msra.gmra.mrb[144].mxu1 %v3846_v49  ;;  %v20773_v45 = vld [vmem:[#allocation6 + $0x26d8] sm:$0xff]   ;;  %v20777_v49 = vld [vmem:[#allocation6 + $0x26e0] sm:$0xff]  }
 0x4db   :  { %19211 = vmatprep.subr.bf16.mxu0 %v20731_v50  ;;  %19232 = vmatpush3.bf16.msra.mxu1 %v20730_v47  ;;  %v20775_v47 = vld [vmem:[#allocation6 + $0x2698] sm:$0xff]   ;;  %v20778_v50 = vld [vmem:[#allocation6 + $0x2620] sm:$0xff]  }
 0x4dc   :  { %15613 = vmatprep.mubr.bf16.mxu0 %v3845_v53  ;;  %19233 = vmatprep.subr.bf16.mxu1 %v20732_v52  ;;  %v20780_v52 = vld [vmem:[#allocation6 + $0x2668] sm:$0xff]  }
 0x4dd   :  { %15653 = vmatprep.mubr.bf16.mxu1 %v3849_v56  ;;  %v20781_v53 = vld [vmem:[#allocation6 + $0x26e8] sm:$0xff]  }
 0x4de   :  { %19212 = vmatpush3.bf16.msra.mxu0 %v20733_v54 }
 0x4df   :  { %19213 = vmatprep.subr.bf16.mxu0 %v20735_v57  ;;  %19234 = vmatpush3.bf16.msra.mxu1 %v20734_v55  ;;  %v20782_v55 = vld [vmem:[#allocation6 + $0x2628] sm:$0xff]  }
 0x4e0   :  { %19235 = vmatprep.subr.bf16.mxu1 %v20736_v58  ;;  %v20783_v57 = vld [vmem:[#allocation6 + $0x26a8] sm:$0xff]  }
 0x4e2   :  { %19214 = vmatpush3.bf16.msra.mxu0 %v20737_v59 }
 0x4e3   :  { %19215 = vmatprep.subr.bf16.mxu0 %v20739_v61  ;;  %19236 = vmatpush3.bf16.msra.mxu1 %v20738_v60  ;;  %v20784_v61 = vld [vmem:[#allocation6 + $0x2670] sm:$0xff]  }
 0x4e4   :  { %19237 = vmatprep.subr.bf16.mxu1 %v20740_v62  ;;  %v20785_v62 = vld [vmem:[#allocation6 + $0x26f0] sm:$0xff]  }
 0x4e6   :  { %19216 = vmatpush3.bf16.msra.mxu0 %v20741_v63 }
 0x4e7   :  { %19217 = vmatprep.subr.bf16.mxu0 %v20743_v1  ;;  %19238 = vmatpush3.bf16.msra.mxu1 %v20742_v0 }
 0x4e8   :  { %19239 = vmatprep.subr.bf16.mxu1 %v20744_v2 }
 0x4ea   :  { %19218 = vmatpush3.bf16.msra.mxu0 %v20745_v3 }
 0x4eb   :  { %19219 = vmatprep.subr.bf16.mxu0 %v20747_v5  ;;  %19240 = vmatpush3.bf16.msra.mxu1 %v20746_v4  ;;  %v20786_v4 = vld [vmem:[#allocation6 + $0x2630] sm:$0xff]  }
 0x4ec   :  { %v18917_v7 = vpop.f32.mrb[120].mxu0  ;;  %19241 = vmatprep.subr.bf16.mxu1 %v20748_v6  ;;  %v20787_v6 = vld [vmem:[#allocation6 + $0x26b0] sm:$0xff]  }
 0x4ed   :  { %v18918_v9 = vpop.f32.mrb[121].mxu0  ;;  %v18939_v11 = vpop.f32.mrb[120].mxu1 }
 0x4ee   :  { %v18919_v12 = vadd.f32 %v18918_v9, %v18917_v7  ;;  %v18920_v13 = vpop.f32.mrb[122].mxu0  ;;  %v18940_v16 = vpop.f32.mrb[121].mxu1  ;;  %19220 = vmatpush3.bf16.msra.mxu0 %v20749_v8  ;;  %v20788_v8 = vld [vmem:[#allocation6 + $0x2678] sm:$0xff]  }
 0x4ef   :  { %v18921_v17 = vpop.f32.mrb[123].mxu0  ;;  %v18941_v19 = vadd.f32 %v18940_v16, %v18939_v11  ;;  %v18942_v20 = vpop.f32.mrb[122].mxu1  ;;  %19221 = vmatprep.subr.bf16.mxu0 %v20751_v14  ;;  %19242 = vmatpush3.bf16.msra.mxu1 %v20750_v10  ;;  %v20789_v9 = vld [vmem:[#allocation6 + $0x26f8] sm:$0xff]   ;;  %v77_v11 = vld [vmem:[#allocation3 + $0x98] sm:$0xff]  ;;  %v20792_v13 = vld [vmem:[#allocation6 + $0x2740] sm:$0xff]  }
 0x4f0   :  { %v15056_v18 = vadd.f32 %v18919_v12, %v21400_v31  ;;  %v18943_v22 = vpop.f32.mrb[123].mxu1  ;;  %19243 = vmatprep.subr.bf16.mxu1 %v20752_v15  ;;  %v20761_v31 = vld [vmem:[#allocation6 + $0x26c0] sm:$0xff]   ;;  %v20790_v10 = vld [vmem:[#allocation6 + $0x2638] sm:$0xff]   ;;  %v3857_v12 = vrot.slane %v77_v11, %v21113_v35  ;;  %v3850_v14 = vcombine.high %v77_v11, %v77_v11  ;;  %v20829_v11 = vld [vmem:[#allocation6 + $0x2848] sm:$0xff]  }
 0x4f1   :  { %v20791_v15 = vld [vmem:[#allocation6 + $0x26b8] sm:$0xff]   ;;  %v20794_v20 = vld [vmem:[#allocation6 + $0x2700] sm:$0xff]  }
 0x4f2   :  { %v21412_v24 = vadd.f32 %v18941_v19, %v15056_v18  ;;  %19222 = vmatpush3.bf16.msra.mxu0 %v20753_v21  ;;  %v3865_v16 = vcombine.high %v3857_v12, %v3857_v12  ;;  %v3873_v17 = vrot.slane %v3857_v12, %v21113_v35  ;;  %v20793_v18 = vld [vmem:[#allocation6 + $0x27c0] sm:$0xff]   ;;  %v21422_v19 = vrot.slane %v3850_v14, %v21113_v35  ;;  %v20830_v12 = vld [vmem:[#allocation6 + $0x28c8] sm:$0xff]  }
 0x4f3   :  { %19223 = vmatprep.subr.bf16.mxu0 %v20755_v25  ;;  %19244 = vmatpush3.bf16.msra.mxu1 %v20754_v23  ;;  %v20795_v22 = vld [vmem:[#allocation6 + $0x2780] sm:$0xff]   ;;  %v20796_v25 = vld [vmem:[#allocation6 + $0x2748] sm:$0xff]  }
 0x4f4   :  { %19245 = vmatprep.subr.bf16.mxu1 %v20756_v26  ;;  %v3887_v21 = vrot.slane %v3865_v16, %v21113_v35  ;;  %v3866_v23 = vcombine.high %v21422_v19, %v21422_v19  ;;  %v20832_v14 = vld [vmem:[#allocation6 + $0x2888] sm:$0xff]   ;;  %v20834_v16 = vld [vmem:[#allocation6 + $0x28d0] sm:$0xff]  }
 0x4f6   :  { %19224 = vmatpush3.bf16.msra.mxu0 %v20757_v27  ;;  %v3897_v26 = vcombine.high %v3887_v21, %v3887_v21  ;;  %v20797_v27 = vld [vmem:[#allocation6 + $0x27c8] sm:$0xff]  }
 0x4f7   :  { %19253 = vmatprep.subr.bf16.mxu0 %v20760_v30  ;;  %19246 = vmatpush3.bf16.msra.mxu1 %v20758_v28  ;;  %v3894_v28 = vrot.slane %v3866_v23, %v21113_v35  ;;  %v20799_v30 = vld [vmem:[#allocation6 + $0x2788] sm:$0xff]   ;;  %v20841_v23 = vld [vmem:[#allocation6 + $0x2860] sm:$0xff]  }
 0x4f8   :  { %19275 = vmatprep.subr.bf16.mxu1 %v20761_v31 }
 0x4f9   :  { %15614 = vmatmul.mubr.bf16.vlgmr.msra.gmra.mrb[148].mxu0 %v3831_v29  ;;  %v20798_v29 = vld [vmem:[#allocation6 + $0x2708] sm:$0xff]   ;;  %v3898_v31 = vcombine.high %v3894_v28, %v3894_v28 }
 0x4fa   :  { %19254 = vmatpush3.bf16.msra.mxu0 %v20762_v32  ;;  %15654 = vmatmul.mubr.bf16.vlgmr.msra.gmra.mrb[148].mxu1 %v3847_v34  ;;  %v20800_v32 = vld [vmem:[#allocation6 + $0x2750] sm:$0xff]  }
 0x4fb   :  { %19255 = vmatprep.subr.bf16.mxu0 %v20764_v36  ;;  %19276 = vmatpush3.bf16.msra.mxu1 %v20763_v33  ;;  %v20801_v33 = vld [vmem:[#allocation6 + $0x27d0] sm:$0xff]  }
 0x4fc   :  { %19277 = vmatprep.subr.bf16.mxu1 %v20765_v37  ;;  %15693 = vmatprep.mubr.bf16.mxu0 %v3887_v21  ;;  %v20802_v34 = vld [vmem:[#allocation6 + $0x2710] sm:$0xff]   ;;  %v20804_v37 = vld [vmem:[#allocation6 + $0x2758] sm:$0xff]  }
 0x4fd   :  { %15733 = vmatprep.mubr.bf16.mxu1 %v3897_v26  ;;  %v20803_v36 = vld [vmem:[#allocation6 + $0x2790] sm:$0xff]   ;;  %v20839_v21 = vld [vmem:[#allocation6 + $0x2818] sm:$0xff]   ;;  %v20844_v26 = vld [vmem:[#allocation6 + $0x28a0] sm:$0xff]  }
 0x4fe   :  { %19256 = vmatpush3.bf16.msra.mxu0 %v20766_v38  ;;  %v20805_v38 = vld [vmem:[#allocation6 + $0x27d8] sm:$0xff]  }
 0x4ff   :  { %19257 = vmatprep.subr.bf16.mxu0 %v20768_v40  ;;  %19278 = vmatpush3.bf16.msra.mxu1 %v20767_v39  ;;  %v20806_v39 = vld [vmem:[#allocation6 + $0x2718] sm:$0xff]  }
 0x500   :  { %19279 = vmatprep.subr.bf16.mxu1 %v20769_v41  ;;  %v20807_v40 = vld [vmem:[#allocation6 + $0x2798] sm:$0xff]   ;;  %v20808_v41 = vld [vmem:[#allocation6 + $0x2760] sm:$0xff]  }
 0x502   :  { %19258 = vmatpush3.bf16.msra.mxu0 %v20770_v42  ;;  %v20809_v42 = vld [vmem:[#allocation6 + $0x27e0] sm:$0xff]  }
 0x503   :  { %19259 = vmatprep.subr.bf16.mxu0 %v20772_v44  ;;  %19280 = vmatpush3.bf16.msra.mxu1 %v20771_v43  ;;  %v20810_v43 = vld [vmem:[#allocation6 + $0x2720] sm:$0xff]  }
 0x504   :  { %19281 = vmatprep.subr.bf16.mxu1 %v20773_v45  ;;  %v20811_v44 = vld [vmem:[#allocation6 + $0x27a0] sm:$0xff]   ;;  %v20812_v45 = vld [vmem:[#allocation6 + $0x2768] sm:$0xff]  }
 0x506   :  { %19260 = vmatpush3.bf16.msra.mxu0 %v20774_v46  ;;  %v20813_v46 = vld [vmem:[#allocation6 + $0x27e8] sm:$0xff]  }
 0x507   :  { %19261 = vmatprep.subr.bf16.mxu0 %v20776_v48  ;;  %19282 = vmatpush3.bf16.msra.mxu1 %v20775_v47  ;;  %v20814_v48 = vld [vmem:[#allocation6 + $0x2728] sm:$0xff]  }
 0x508   :  { %19283 = vmatprep.subr.bf16.mxu1 %v20777_v49 }
 0x50a   :  { %19262 = vmatpush3.bf16.msra.mxu0 %v20778_v50  ;;  %v20815_v50 = vld [vmem:[#allocation6 + $0x27a8] sm:$0xff]  }
 0x50b   :  { %19263 = vmatprep.subr.bf16.mxu0 %v20780_v52  ;;  %19284 = vmatpush3.bf16.msra.mxu1 %v20779_v51 }
 0x50c   :  { %v18961_v54 = vpop.f32.mrb[124].mxu0  ;;  %19285 = vmatprep.subr.bf16.mxu1 %v20781_v53 }
 0x50d   :  { %v18962_v56 = vpop.f32.mrb[125].mxu0  ;;  %v18983_v58 = vpop.f32.mrb[124].mxu1 }
 0x50e   :  { %v18963_v59 = vadd.f32 %v18962_v56, %v18961_v54  ;;  %v18964_v60 = vpop.f32.mrb[126].mxu0  ;;  %v18984_v63 = vpop.f32.mrb[125].mxu1  ;;  %19264 = vmatpush3.bf16.msra.mxu0 %v20782_v55  ;;  %v20816_v54 = vld [vmem:[#allocation6 + $0x2770] sm:$0xff]  }
 0x50f   :  { %v18965_v0 = vpop.f32.mrb[127].mxu0  ;;  %v18985_v2 = vadd.f32 %v18984_v63, %v18983_v58  ;;  %v18986_v3 = vpop.f32.mrb[126].mxu1  ;;  %19265 = vmatprep.subr.bf16.mxu0 %v20784_v61  ;;  %19286 = vmatpush3.bf16.msra.mxu1 %v20783_v57  ;;  %v20817_v55 = vld [vmem:[#allocation6 + $0x27f0] sm:$0xff]  }
 0x510   :  { %v15136_v1 = vadd.f32 %v18963_v59, %v21412_v24  ;;  %v18987_v5 = vpop.f32.mrb[127].mxu1  ;;  %19287 = vmatprep.subr.bf16.mxu1 %v20785_v62  ;;  %v3895_v24 = vcombine.high %v3873_v17, %v3873_v17  ;;  %v20818_v61 = vld [vmem:[#allocation6 + $0x2730] sm:$0xff]   ;;  %v20822_v3 = vld [vmem:[#allocation6 + $0x2738] sm:$0xff]  }
 0x511   :  { %v20819_v63 = vld [vmem:[#allocation6 + $0x27b0] sm:$0xff]   ;;  %v3880_v5 = vrot.slane %v21422_v19, %v21113_v35  ;;  %v20837_v19 = vld [vmem:[#allocation6 + $0x2858] sm:$0xff]  }
 0x512   :  { %v21417_v7 = vadd.f32 %v18985_v2, %v15136_v1  ;;  %19266 = vmatpush3.bf16.msra.mxu0 %v20786_v4  ;;  %v20820_v1 = vld [vmem:[#allocation6 + $0x2778] sm:$0xff]  }
 0x513   :  { %19267 = vmatprep.subr.bf16.mxu0 %v20788_v8  ;;  %19288 = vmatpush3.bf16.msra.mxu1 %v20787_v6  ;;  %v20821_v2 = vld [vmem:[#allocation6 + $0x27f8] sm:$0xff]   ;;  %v20825_v6 = vld [vmem:[#allocation6 + $0x2840] sm:$0xff]  }
 0x514   :  { %19289 = vmatprep.subr.bf16.mxu1 %v20789_v9  ;;  %v20823_v4 = vld [vmem:[#allocation6 + $0x27b8] sm:$0xff]   ;;  %v20827_v8 = vld [vmem:[#allocation6 + $0x2800] sm:$0xff]  }
 0x515   :  { %v20828_v9 = vld [vmem:[#allocation6 + $0x2880] sm:$0xff]  }
 0x516   :  { %19268 = vmatpush3.bf16.msra.mxu0 %v20790_v10  ;;  %v3896_v10 = vcombine.high %v3880_v5, %v3880_v5 }
 0x517   :  { %19297 = vmatprep.subr.bf16.mxu0 %v20792_v13  ;;  %19290 = vmatpush3.bf16.msra.mxu1 %v20791_v15  ;;  %v20831_v13 = vld [vmem:[#allocation6 + $0x2808] sm:$0xff]   ;;  %v20833_v15 = vld [vmem:[#allocation6 + $0x2850] sm:$0xff]  }
 0x518   :  { %19319 = vmatprep.subr.bf16.mxu1 %v20793_v18  ;;  %v20836_v18 = vld [vmem:[#allocation6 + $0x2890] sm:$0xff]  }
 0x519   :  { %15694 = vmatmul.mubr.bf16.vlgmr.msra.gmra.mrb[152].mxu0 %v3873_v17  ;;  %v20835_v17 = vld [vmem:[#allocation6 + $0x2810] sm:$0xff]  }
 0x51a   :  { %19298 = vmatpush3.bf16.msra.mxu0 %v20794_v20  ;;  %15734 = vmatmul.mubr.bf16.vlgmr.msra.gmra.mrb[152].mxu1 %v3895_v24  ;;  %v20838_v20 = vld [vmem:[#allocation6 + $0x28d8] sm:$0xff]   ;;  %v20842_v24 = vld [vmem:[#allocation6 + $0x28e0] sm:$0xff]  }
 0x51b   :  { %19299 = vmatprep.subr.bf16.mxu0 %v20796_v25  ;;  %19320 = vmatpush3.bf16.msra.mxu1 %v20795_v22  ;;  %v20840_v22 = vld [vmem:[#allocation6 + $0x2898] sm:$0xff]   ;;  %v20843_v25 = vld [vmem:[#allocation6 + $0x2820] sm:$0xff]  }
 0x51c   :  { %15773 = vmatprep.mubr.bf16.mxu0 %v3894_v28  ;;  %19321 = vmatprep.subr.bf16.mxu1 %v20797_v27  ;;  %v20845_v27 = vld [vmem:[#allocation6 + $0x2868] sm:$0xff]  }
 0x51d   :  { %15813 = vmatprep.mubr.bf16.mxu1 %v3898_v31  ;;  %v20846_v28 = vld [vmem:[#allocation6 + $0x28e8] sm:$0xff]  }
 0x51e   :  { %19300 = vmatpush3.bf16.msra.mxu0 %v20798_v29 }
 0x51f   :  { %19301 = vmatprep.subr.bf16.mxu0 %v20800_v32  ;;  %19322 = vmatpush3.bf16.msra.mxu1 %v20799_v30  ;;  %v20847_v30 = vld [vmem:[#allocation6 + $0x2828] sm:$0xff]  }
 0x520   :  { %19323 = vmatprep.subr.bf16.mxu1 %v20801_v33  ;;  %v20848_v32 = vld [vmem:[#allocation6 + $0x28a8] sm:$0xff]  }
 0x522   :  { %19302 = vmatpush3.bf16.msra.mxu0 %v20802_v34 }
 0x523   :  { %19303 = vmatprep.subr.bf16.mxu0 %v20804_v37  ;;  %19324 = vmatpush3.bf16.msra.mxu1 %v20803_v36  ;;  %v20849_v37 = vld [vmem:[#allocation6 + $0x2870] sm:$0xff]  }
 0x524   :  { %19325 = vmatprep.subr.bf16.mxu1 %v20805_v38  ;;  %v20850_v38 = vld [vmem:[#allocation6 + $0x28f0] sm:$0xff]  }
 0x526   :  { %19304 = vmatpush3.bf16.msra.mxu0 %v20806_v39 }
 0x527   :  { %19305 = vmatprep.subr.bf16.mxu0 %v20808_v41  ;;  %19326 = vmatpush3.bf16.msra.mxu1 %v20807_v40 }
 0x528   :  { %19327 = vmatprep.subr.bf16.mxu1 %v20809_v42 }
 0x52a   :  { %19306 = vmatpush3.bf16.msra.mxu0 %v20810_v43 }
 0x52b   :  { %19307 = vmatprep.subr.bf16.mxu0 %v20812_v45  ;;  %19328 = vmatpush3.bf16.msra.mxu1 %v20811_v44  ;;  %v20851_v44 = vld [vmem:[#allocation6 + $0x2830] sm:$0xff]  }
 0x52c   :  { %v19005_v47 = vpop.f32.mrb[128].mxu0  ;;  %19329 = vmatprep.subr.bf16.mxu1 %v20813_v46  ;;  %v20852_v46 = vld [vmem:[#allocation6 + $0x28b0] sm:$0xff]  }
 0x52d   :  { %v19006_v49 = vpop.f32.mrb[129].mxu0  ;;  %v19027_v51 = vpop.f32.mrb[128].mxu1 }
 0x52e   :  { %v19007_v52 = vadd.f32 %v19006_v49, %v19005_v47  ;;  %v19008_v53 = vpop.f32.mrb[130].mxu0  ;;  %v19028_v56 = vpop.f32.mrb[129].mxu1  ;;  %19308 = vmatpush3.bf16.msra.mxu0 %v20814_v48  ;;  %v20853_v48 = vld [vmem:[#allocation6 + $0x2878] sm:$0xff]  }
 0x52f   :  { %v19009_v57 = vpop.f32.mrb[131].mxu0  ;;  %v19029_v59 = vadd.f32 %v19028_v56, %v19027_v51  ;;  %v19030_v60 = vpop.f32.mrb[130].mxu1  ;;  %19309 = vmatprep.subr.bf16.mxu0 %v20816_v54  ;;  %19330 = vmatpush3.bf16.msra.mxu1 %v20815_v50  ;;  %v20854_v49 = vld [vmem:[#allocation6 + $0x28f8] sm:$0xff]   ;;  %v78_v51 = vld [vmem:[#allocation3 + $0xa0] sm:$0xff]  ;;  %v20857_v53 = vld [vmem:[#allocation6 + $0x2940] sm:$0xff]  }
 0x530   :  { %v15216_v58 = vadd.f32 %v19007_v52, %v21417_v7  ;;  %v19031_v62 = vpop.f32.mrb[131].mxu1  ;;  %19331 = vmatprep.subr.bf16.mxu1 %v20817_v55  ;;  %v20826_v7 = vld [vmem:[#allocation6 + $0x28c0] sm:$0xff]   ;;  %v20855_v50 = vld [vmem:[#allocation6 + $0x2838] sm:$0xff]   ;;  %v3906_v52 = vrot.slane %v78_v51, %v21113_v35  ;;  %v3899_v54 = vcombine.high %v78_v51, %v78_v51  ;;  %v20894_v51 = vld [vmem:[#allocation6 + $0x2a48] sm:$0xff]  }
 0x531   :  { %v20856_v55 = vld [vmem:[#allocation6 + $0x28b8] sm:$0xff]   ;;  %v20859_v60 = vld [vmem:[#allocation6 + $0x2900] sm:$0xff]  }
 0x532   :  { %v21429_v0 = vadd.f32 %v19029_v59, %v15216_v58  ;;  %19310 = vmatpush3.bf16.msra.mxu0 %v20818_v61  ;;  %v3914_v56 = vcombine.high %v3906_v52, %v3906_v52  ;;  %v3922_v57 = vrot.slane %v3906_v52, %v21113_v35  ;;  %v20858_v58 = vld [vmem:[#allocation6 + $0x29c0] sm:$0xff]   ;;  %v21439_v59 = vrot.slane %v3899_v54, %v21113_v35  ;;  %v20895_v52 = vld [vmem:[#allocation6 + $0x2ac8] sm:$0xff]  }
 0x533   :  { %19311 = vmatprep.subr.bf16.mxu0 %v20820_v1  ;;  %19332 = vmatpush3.bf16.msra.mxu1 %v20819_v63  ;;  %v20860_v62 = vld [vmem:[#allocation6 + $0x2980] sm:$0xff]   ;;  %v20861_v1 = vld [vmem:[#allocation6 + $0x2948] sm:$0xff]  }
 0x534   :  { %19333 = vmatprep.subr.bf16.mxu1 %v20821_v2  ;;  %v3936_v61 = vrot.slane %v3914_v56, %v21113_v35  ;;  %v3915_v63 = vcombine.high %v21439_v59, %v21439_v59  ;;  %v20897_v54 = vld [vmem:[#allocation6 + $0x2a88] sm:$0xff]   ;;  %v20899_v56 = vld [vmem:[#allocation6 + $0x2ad0] sm:$0xff]  }
 0x536   :  { %19312 = vmatpush3.bf16.msra.mxu0 %v20822_v3  ;;  %v3946_v2 = vcombine.high %v3936_v61, %v3936_v61  ;;  %v20862_v3 = vld [vmem:[#allocation6 + $0x29c8] sm:$0xff]  }
 0x537   :  { %19341 = vmatprep.subr.bf16.mxu0 %v20825_v6  ;;  %19334 = vmatpush3.bf16.msra.mxu1 %v20823_v4  ;;  %v3943_v4 = vrot.slane %v3915_v63, %v21113_v35  ;;  %v20864_v6 = vld [vmem:[#allocation6 + $0x2988] sm:$0xff]   ;;  %v20906_v63 = vld [vmem:[#allocation6 + $0x2a60] sm:$0xff]  }
 0x538   :  { %19363 = vmatprep.subr.bf16.mxu1 %v20826_v7 }
 0x539   :  { %15774 = vmatmul.mubr.bf16.vlgmr.msra.gmra.mrb[156].mxu0 %v3880_v5  ;;  %v20863_v5 = vld [vmem:[#allocation6 + $0x2908] sm:$0xff]   ;;  %v3947_v7 = vcombine.high %v3943_v4, %v3943_v4 }
 0x53a   :  { %19342 = vmatpush3.bf16.msra.mxu0 %v20827_v8  ;;  %15814 = vmatmul.mubr.bf16.vlgmr.msra.gmra.mrb[156].mxu1 %v3896_v10  ;;  %v20865_v8 = vld [vmem:[#allocation6 + $0x2950] sm:$0xff]  }
 0x53b   :  { %19343 = vmatprep.subr.bf16.mxu0 %v20829_v11  ;;  %19364 = vmatpush3.bf16.msra.mxu1 %v20828_v9  ;;  %v20866_v9 = vld [vmem:[#allocation6 + $0x29d0] sm:$0xff]  }
 0x53c   :  { %19365 = vmatprep.subr.bf16.mxu1 %v20830_v12  ;;  %15853 = vmatprep.mubr.bf16.mxu0 %v3936_v61  ;;  %v20867_v10 = vld [vmem:[#allocation6 + $0x2910] sm:$0xff]   ;;  %v20869_v12 = vld [vmem:[#allocation6 + $0x2958] sm:$0xff]  }
 0x53d   :  { %15893 = vmatprep.mubr.bf16.mxu1 %v3946_v2  ;;  %v20868_v11 = vld [vmem:[#allocation6 + $0x2990] sm:$0xff]   ;;  %v20904_v61 = vld [vmem:[#allocation6 + $0x2a18] sm:$0xff]   ;;  %v20909_v2 = vld [vmem:[#allocation6 + $0x2aa0] sm:$0xff]  }
 0x53e   :  { %19344 = vmatpush3.bf16.msra.mxu0 %v20831_v13  ;;  %v20870_v13 = vld [vmem:[#allocation6 + $0x29d8] sm:$0xff]  }
 0x53f   :  { %19345 = vmatprep.subr.bf16.mxu0 %v20833_v15  ;;  %19366 = vmatpush3.bf16.msra.mxu1 %v20832_v14  ;;  %v20871_v14 = vld [vmem:[#allocation6 + $0x2918] sm:$0xff]  }
 0x540   :  { %19367 = vmatprep.subr.bf16.mxu1 %v20834_v16  ;;  %v20872_v15 = vld [vmem:[#allocation6 + $0x2998] sm:$0xff]   ;;  %v20873_v16 = vld [vmem:[#allocation6 + $0x2960] sm:$0xff]  }
 0x542   :  { %19346 = vmatpush3.bf16.msra.mxu0 %v20835_v17  ;;  %v20874_v17 = vld [vmem:[#allocation6 + $0x29e0] sm:$0xff]  }
 0x543   :  { %19347 = vmatprep.subr.bf16.mxu0 %v20837_v19  ;;  %19368 = vmatpush3.bf16.msra.mxu1 %v20836_v18  ;;  %v20875_v18 = vld [vmem:[#allocation6 + $0x2920] sm:$0xff]  }
 0x544   :  { %19369 = vmatprep.subr.bf16.mxu1 %v20838_v20  ;;  %v20876_v19 = vld [vmem:[#allocation6 + $0x29a0] sm:$0xff]   ;;  %v20877_v20 = vld [vmem:[#allocation6 + $0x2968] sm:$0xff]  }
 0x546   :  { %19348 = vmatpush3.bf16.msra.mxu0 %v20839_v21  ;;  %v20878_v21 = vld [vmem:[#allocation6 + $0x29e8] sm:$0xff]  }
 0x547   :  { %19349 = vmatprep.subr.bf16.mxu0 %v20841_v23  ;;  %19370 = vmatpush3.bf16.msra.mxu1 %v20840_v22  ;;  %v20879_v23 = vld [vmem:[#allocation6 + $0x2928] sm:$0xff]  }
 0x548   :  { %19371 = vmatprep.subr.bf16.mxu1 %v20842_v24 }
 0x54a   :  { %19350 = vmatpush3.bf16.msra.mxu0 %v20843_v25  ;;  %v20880_v25 = vld [vmem:[#allocation6 + $0x29a8] sm:$0xff]  }
 0x54b   :  { %19351 = vmatprep.subr.bf16.mxu0 %v20845_v27  ;;  %19372 = vmatpush3.bf16.msra.mxu1 %v20844_v26 }
 0x54c   :  { %v19049_v29 = vpop.f32.mrb[132].mxu0  ;;  %19373 = vmatprep.subr.bf16.mxu1 %v20846_v28 }
 0x54d   :  { %v19050_v31 = vpop.f32.mrb[133].mxu0  ;;  %v19071_v33 = vpop.f32.mrb[132].mxu1 }
 0x54e   :  { %v19051_v34 = vadd.f32 %v19050_v31, %v19049_v29  ;;  %v19052_v36 = vpop.f32.mrb[134].mxu0  ;;  %v19072_v39 = vpop.f32.mrb[133].mxu1  ;;  %19352 = vmatpush3.bf16.msra.mxu0 %v20847_v30  ;;  %v20881_v29 = vld [vmem:[#allocation6 + $0x2970] sm:$0xff]  }
 0x54f   :  { %v19053_v40 = vpop.f32.mrb[135].mxu0  ;;  %v19073_v42 = vadd.f32 %v19072_v39, %v19071_v33  ;;  %v19074_v43 = vpop.f32.mrb[134].mxu1  ;;  %19353 = vmatprep.subr.bf16.mxu0 %v20849_v37  ;;  %19374 = vmatpush3.bf16.msra.mxu1 %v20848_v32  ;;  %v20882_v30 = vld [vmem:[#allocation6 + $0x29f0] sm:$0xff]  }
 0x550   :  { %v15296_v41 = vadd.f32 %v19051_v34, %v21429_v0  ;;  %v19075_v45 = vpop.f32.mrb[135].mxu1  ;;  %19375 = vmatprep.subr.bf16.mxu1 %v20850_v38  ;;  %v3944_v0 = vcombine.high %v3922_v57, %v3922_v57  ;;  %v20883_v37 = vld [vmem:[#allocation6 + $0x2930] sm:$0xff]   ;;  %v20887_v43 = vld [vmem:[#allocation6 + $0x2938] sm:$0xff]  }
 0x551   :  { %v20884_v39 = vld [vmem:[#allocation6 + $0x29b0] sm:$0xff]   ;;  %v3929_v45 = vrot.slane %v21439_v59, %v21113_v35  ;;  %v20902_v59 = vld [vmem:[#allocation6 + $0x2a58] sm:$0xff]  }
 0x552   :  { %v21434_v47 = vadd.f32 %v19073_v42, %v15296_v41  ;;  %19354 = vmatpush3.bf16.msra.mxu0 %v20851_v44  ;;  %v20885_v41 = vld [vmem:[#allocation6 + $0x2978] sm:$0xff]  }
 0x553   :  { %19355 = vmatprep.subr.bf16.mxu0 %v20853_v48  ;;  %19376 = vmatpush3.bf16.msra.mxu1 %v20852_v46  ;;  %v20886_v42 = vld [vmem:[#allocation6 + $0x29f8] sm:$0xff]   ;;  %v20890_v46 = vld [vmem:[#allocation6 + $0x2a40] sm:$0xff]  }
 0x554   :  { %19377 = vmatprep.subr.bf16.mxu1 %v20854_v49  ;;  %v20888_v44 = vld [vmem:[#allocation6 + $0x29b8] sm:$0xff]   ;;  %v20892_v48 = vld [vmem:[#allocation6 + $0x2a00] sm:$0xff]  }
 0x555   :  { %v20893_v49 = vld [vmem:[#allocation6 + $0x2a80] sm:$0xff]  }
 0x556   :  { %19356 = vmatpush3.bf16.msra.mxu0 %v20855_v50  ;;  %v3945_v50 = vcombine.high %v3929_v45, %v3929_v45 }
 0x557   :  { %19385 = vmatprep.subr.bf16.mxu0 %v20857_v53  ;;  %19378 = vmatpush3.bf16.msra.mxu1 %v20856_v55  ;;  %v20896_v53 = vld [vmem:[#allocation6 + $0x2a08] sm:$0xff]   ;;  %v20898_v55 = vld [vmem:[#allocation6 + $0x2a50] sm:$0xff]  }
 0x558   :  { %19407 = vmatprep.subr.bf16.mxu1 %v20858_v58  ;;  %v20901_v58 = vld [vmem:[#allocation6 + $0x2a90] sm:$0xff]  }
 0x559   :  { %15854 = vmatmul.mubr.bf16.vlgmr.msra.gmra.mrb[160].mxu0 %v3922_v57  ;;  %v20900_v57 = vld [vmem:[#allocation6 + $0x2a10] sm:$0xff]  }
 0x55a   :  { %19386 = vmatpush3.bf16.msra.mxu0 %v20859_v60  ;;  %15894 = vmatmul.mubr.bf16.vlgmr.msra.gmra.mrb[160].mxu1 %v3944_v0  ;;  %v20903_v60 = vld [vmem:[#allocation6 + $0x2ad8] sm:$0xff]   ;;  %v20907_v0 = vld [vmem:[#allocation6 + $0x2ae0] sm:$0xff]  }
 0x55b   :  { %19387 = vmatprep.subr.bf16.mxu0 %v20861_v1  ;;  %19408 = vmatpush3.bf16.msra.mxu1 %v20860_v62  ;;  %v20905_v62 = vld [vmem:[#allocation6 + $0x2a98] sm:$0xff]   ;;  %v20908_v1 = vld [vmem:[#allocation6 + $0x2a20] sm:$0xff]  }
 0x55c   :  { %15933 = vmatprep.mubr.bf16.mxu0 %v3943_v4  ;;  %19409 = vmatprep.subr.bf16.mxu1 %v20862_v3  ;;  %v20910_v3 = vld [vmem:[#allocation6 + $0x2a68] sm:$0xff]  }
 0x55d   :  { %15973 = vmatprep.mubr.bf16.mxu1 %v3947_v7  ;;  %v20911_v4 = vld [vmem:[#allocation6 + $0x2ae8] sm:$0xff]  }
 0x55e   :  { %19388 = vmatpush3.bf16.msra.mxu0 %v20863_v5 }
 0x55f   :  { %19389 = vmatprep.subr.bf16.mxu0 %v20865_v8  ;;  %19410 = vmatpush3.bf16.msra.mxu1 %v20864_v6  ;;  %v20912_v6 = vld [vmem:[#allocation6 + $0x2a28] sm:$0xff]  }
 0x560   :  { %19411 = vmatprep.subr.bf16.mxu1 %v20866_v9  ;;  %v20913_v8 = vld [vmem:[#allocation6 + $0x2aa8] sm:$0xff]  }
 0x562   :  { %19390 = vmatpush3.bf16.msra.mxu0 %v20867_v10 }
 0x563   :  { %19391 = vmatprep.subr.bf16.mxu0 %v20869_v12  ;;  %19412 = vmatpush3.bf16.msra.mxu1 %v20868_v11  ;;  %v20914_v12 = vld [vmem:[#allocation6 + $0x2a70] sm:$0xff]  }
 0x564   :  { %19413 = vmatprep.subr.bf16.mxu1 %v20870_v13  ;;  %v20915_v13 = vld [vmem:[#allocation6 + $0x2af0] sm:$0xff]  }
 0x566   :  { %19392 = vmatpush3.bf16.msra.mxu0 %v20871_v14 }
 0x567   :  { %19393 = vmatprep.subr.bf16.mxu0 %v20873_v16  ;;  %19414 = vmatpush3.bf16.msra.mxu1 %v20872_v15 }
 0x568   :  { %19415 = vmatprep.subr.bf16.mxu1 %v20874_v17 }
 0x56a   :  { %19394 = vmatpush3.bf16.msra.mxu0 %v20875_v18 }
 0x56b   :  { %19395 = vmatprep.subr.bf16.mxu0 %v20877_v20  ;;  %19416 = vmatpush3.bf16.msra.mxu1 %v20876_v19  ;;  %v20916_v19 = vld [vmem:[#allocation6 + $0x2a30] sm:$0xff]  }
 0x56c   :  { %v19093_v22 = vpop.f32.mrb[136].mxu0  ;;  %19417 = vmatprep.subr.bf16.mxu1 %v20878_v21  ;;  %v20917_v21 = vld [vmem:[#allocation6 + $0x2ab0] sm:$0xff]  }
 0x56d   :  { %v19094_v24 = vpop.f32.mrb[137].mxu0  ;;  %v19115_v26 = vpop.f32.mrb[136].mxu1 }
 0x56e   :  { %v19095_v27 = vadd.f32 %v19094_v24, %v19093_v22  ;;  %v19096_v28 = vpop.f32.mrb[138].mxu0  ;;  %v19116_v31 = vpop.f32.mrb[137].mxu1  ;;  %19396 = vmatpush3.bf16.msra.mxu0 %v20879_v23  ;;  %v20918_v23 = vld [vmem:[#allocation6 + $0x2a78] sm:$0xff]  }
 0x56f   :  { %v19097_v32 = vpop.f32.mrb[139].mxu0  ;;  %v19117_v34 = vadd.f32 %v19116_v31, %v19115_v26  ;;  %v19118_v36 = vpop.f32.mrb[138].mxu1  ;;  %19397 = vmatprep.subr.bf16.mxu0 %v20881_v29  ;;  %19418 = vmatpush3.bf16.msra.mxu1 %v20880_v25  ;;  %v20919_v24 = vld [vmem:[#allocation6 + $0x2af8] sm:$0xff]   ;;  %v20922_v28 = vld [vmem:[#allocation6 + $0x2b40] sm:$0xff]  }
 0x570   :  { %v15376_v33 = vadd.f32 %v19095_v27, %v21434_v47  ;;  %v19119_v38 = vpop.f32.mrb[139].mxu1  ;;  %19419 = vmatprep.subr.bf16.mxu1 %v20882_v30  ;;  %v20891_v47 = vld [vmem:[#allocation6 + $0x2ac0] sm:$0xff]   ;;  %v20920_v25 = vld [vmem:[#allocation6 + $0x2a38] sm:$0xff]  }
 0x571   :  { %v79_v26 = vld [vmem:[#allocation3 + $0xa8] sm:$0xff] }
 0x572   :  { %v21446_v40 = vadd.f32 %v19117_v34, %v15376_v33  ;;  %19398 = vmatpush3.bf16.msra.mxu0 %v20883_v37  ;;  %v3955_v27 = vrot.slane %v79_v26, %v21113_v35  ;;  %v3948_v29 = vcombine.high %v79_v26, %v79_v26  ;;  %v20921_v30 = vld [vmem:[#allocation6 + $0x2ab8] sm:$0xff]   ;;  %v20923_v33 = vld [vmem:[#allocation6 + $0x2bc0] sm:$0xff]  }
 0x573   :  { %19399 = vmatprep.subr.bf16.mxu0 %v20885_v41  ;;  %19420 = vmatpush3.bf16.msra.mxu1 %v20884_v39  ;;  %v20924_v37 = vld [vmem:[#allocation6 + $0x2b00] sm:$0xff]  }
 0x574   :  { %19421 = vmatprep.subr.bf16.mxu1 %v20886_v42  ;;  %v3963_v31 = vcombine.high %v3955_v27, %v3955_v27  ;;  %v3971_v32 = vrot.slane %v3955_v27, %v21113_v35  ;;  %v21456_v34 = vrot.slane %v3948_v29, %v21113_v35  ;;  %v20925_v42 = vld [vmem:[#allocation6 + $0x2b80] sm:$0xff]  }
 0x576   :  { %19400 = vmatpush3.bf16.msra.mxu0 %v20887_v43  ;;  %v3985_v36 = vrot.slane %v3963_v31, %v21113_v35  ;;  %v3964_v38 = vcombine.high %v21456_v34, %v21456_v34  ;;  %v3993_v39 = vcombine.high %v3971_v32, %v3971_v32 }
 0x577   :  { %19429 = vmatprep.subr.bf16.mxu0 %v20890_v46  ;;  %19422 = vmatpush3.bf16.msra.mxu1 %v20888_v44  ;;  %v20927_v44 = vld [vmem:[#allocation6 + $0x2bc8] sm:$0xff]  }
 0x578   :  { %19451 = vmatprep.subr.bf16.mxu1 %v20891_v47  ;;  %v3995_v41 = vcombine.high %v3985_v36, %v3985_v36  ;;  %v3992_v43 = vrot.slane %v3964_v38, %v21113_v35  ;;  %v20930_v47 = vld [vmem:[#allocation6 + $0x2b50] sm:$0xff]  }
 0x579   :  { %15934 = vmatmul.mubr.bf16.vlgmr.msra.gmra.mrb[164].mxu0 %v3929_v45  ;;  %v20928_v45 = vld [vmem:[#allocation6 + $0x2b08] sm:$0xff]  }
 0x57a   :  { %19430 = vmatpush3.bf16.msra.mxu0 %v20892_v48  ;;  %15974 = vmatmul.mubr.bf16.vlgmr.msra.gmra.mrb[164].mxu1 %v3945_v50  ;;  %v3996_v46 = vcombine.high %v3992_v43, %v3992_v43  ;;  %v20929_v48 = vld [vmem:[#allocation6 + $0x2b88] sm:$0xff]   ;;  %v20932_v50 = vld [vmem:[#allocation6 + $0x2b10] sm:$0xff]  }
 0x57b   :  { %19431 = vmatprep.subr.bf16.mxu0 %v20894_v51  ;;  %19452 = vmatpush3.bf16.msra.mxu1 %v20893_v49  ;;  %v20931_v49 = vld [vmem:[#allocation6 + $0x2bd0] sm:$0xff]   ;;  %v20934_v51 = vld [vmem:[#allocation6 + $0x2b58] sm:$0xff]  }
 0x57c   :  { %19453 = vmatprep.subr.bf16.mxu1 %v20895_v52  ;;  %16013 = vmatprep.mubr.bf16.mxu0 %v3985_v36  ;;  %v20933_v52 = vld [vmem:[#allocation6 + $0x2b90] sm:$0xff]  }
 0x57d   :  { %16053 = vmatprep.mubr.bf16.mxu1 %v3995_v41 }
 0x57e   :  { %19432 = vmatpush3.bf16.msra.mxu0 %v20896_v53  ;;  %v20935_v53 = vld [vmem:[#allocation6 + $0x2bd8] sm:$0xff]  }
 0x57f   :  { %19433 = vmatprep.subr.bf16.mxu0 %v20898_v55  ;;  %19454 = vmatpush3.bf16.msra.mxu1 %v20897_v54  ;;  %v20936_v54 = vld [vmem:[#allocation6 + $0x2b18] sm:$0xff]   ;;  %v20938_v55 = vld [vmem:[#allocation6 + $0x2b60] sm:$0xff]  }
 0x580   :  { %19455 = vmatprep.subr.bf16.mxu1 %v20899_v56  ;;  %v20937_v56 = vld [vmem:[#allocation6 + $0x2b98] sm:$0xff]  }
 0x582   :  { %19434 = vmatpush3.bf16.msra.mxu0 %v20900_v57  ;;  %v20939_v57 = vld [vmem:[#allocation6 + $0x2be0] sm:$0xff]  }
 0x583   :  { %19435 = vmatprep.subr.bf16.mxu0 %v20902_v59  ;;  %19456 = vmatpush3.bf16.msra.mxu1 %v20901_v58  ;;  %v20940_v58 = vld [vmem:[#allocation6 + $0x2b20] sm:$0xff]   ;;  %v20942_v59 = vld [vmem:[#allocation6 + $0x2b68] sm:$0xff]  }
 0x584   :  { %19457 = vmatprep.subr.bf16.mxu1 %v20903_v60  ;;  %v20941_v60 = vld [vmem:[#allocation6 + $0x2ba0] sm:$0xff]  }
 0x586   :  { %19436 = vmatpush3.bf16.msra.mxu0 %v20904_v61 }
 0x587   :  { %19437 = vmatprep.subr.bf16.mxu0 %v20906_v63  ;;  %19458 = vmatpush3.bf16.msra.mxu1 %v20905_v62  ;;  %v20943_v62 = vld [vmem:[#allocation6 + $0x2be8] sm:$0xff]  }
 0x588   :  { %19459 = vmatprep.subr.bf16.mxu1 %v20907_v0  ;;  %v20944_v0 = vld [vmem:[#allocation6 + $0x2b28] sm:$0xff]  }
 0x58a   :  { %19438 = vmatpush3.bf16.msra.mxu0 %v20908_v1 }
 0x58b   :  { %19439 = vmatprep.subr.bf16.mxu0 %v20910_v3  ;;  %19460 = vmatpush3.bf16.msra.mxu1 %v20909_v2 }
 0x58c   :  { %v19137_v5 = vpop.f32.mrb[140].mxu0  ;;  %19461 = vmatprep.subr.bf16.mxu1 %v20911_v4  ;;  %v20945_v4 = vld [vmem:[#allocation6 + $0x2ba8] sm:$0xff]  }
 0x58d   :  { %v19138_v7 = vpop.f32.mrb[141].mxu0  ;;  %v19159_v9 = vpop.f32.mrb[140].mxu1 }
 0x58e   :  { %v19139_v10 = vadd.f32 %v19138_v7, %v19137_v5  ;;  %v19140_v11 = vpop.f32.mrb[142].mxu0  ;;  %v19160_v14 = vpop.f32.mrb[141].mxu1  ;;  %19440 = vmatpush3.bf16.msra.mxu0 %v20912_v6  ;;  %v20946_v5 = vld [vmem:[#allocation6 + $0x2b70] sm:$0xff]  }
 0x58f   :  { %v19141_v15 = vpop.f32.mrb[143].mxu0  ;;  %v19161_v17 = vadd.f32 %v19160_v14, %v19159_v9  ;;  %v19162_v18 = vpop.f32.mrb[142].mxu1  ;;  %19441 = vmatprep.subr.bf16.mxu0 %v20914_v12  ;;  %19462 = vmatpush3.bf16.msra.mxu1 %v20913_v8  ;;  %v20947_v11 = vld [vmem:[#allocation6 + $0x2bf0] sm:$0xff]  }
 0x590   :  { %v15456_v16 = vadd.f32 %v19139_v10, %v21446_v40  ;;  %v19163_v20 = vpop.f32.mrb[143].mxu1  ;;  %19463 = vmatprep.subr.bf16.mxu1 %v20915_v13  ;;  %v20926_v40 = vld [vmem:[#allocation6 + $0x2b48] sm:$0xff]   ;;  %v20948_v13 = vld [vmem:[#allocation6 + $0x2b30] sm:$0xff]   ;;  %v20950_v15 = vld [vmem:[#allocation6 + $0x2b78] sm:$0xff]  }
 0x591   :  { %v20952_v18 = vld [vmem:[#allocation6 + $0x2b38] sm:$0xff]  }
 0x592   :  { %v21451_v22 = vadd.f32 %v19161_v17, %v15456_v16  ;;  %19442 = vmatpush3.bf16.msra.mxu0 %v20916_v19  ;;  %v20949_v16 = vld [vmem:[#allocation6 + $0x2bb0] sm:$0xff]   ;;  %v20951_v17 = vld [vmem:[#allocation6 + $0x2bf8] sm:$0xff]   ;;  %v3978_v19 = vrot.slane %v21456_v34, %v21113_v35 }
 0x593   :  { %19443 = vmatprep.subr.bf16.mxu0 %v20918_v23  ;;  %19464 = vmatpush3.bf16.msra.mxu1 %v20917_v21  ;;  %v20953_v20 = vld [vmem:[#allocation6 + $0x2bb8] sm:$0xff]  }
 0x594   :  { %19465 = vmatprep.subr.bf16.mxu1 %v20919_v24  ;;  %v3994_v21 = vcombine.high %v3978_v19, %v3978_v19 }
 0x596   :  { %19444 = vmatpush3.bf16.msra.mxu0 %v20920_v25 }
 0x597   :  { %19473 = vmatprep.subr.bf16.mxu0 %v20922_v28  ;;  %19466 = vmatpush3.bf16.msra.mxu1 %v20921_v30 }
 0x598   :  { %19495 = vmatprep.subr.bf16.mxu1 %v20923_v33 }
 0x599   :  { %16014 = vmatmul.mubr.bf16.vlgmr.msra.gmra.mrb[168].mxu0 %v3971_v32 }
 0x59a   :  { %19474 = vmatpush3.bf16.msra.mxu0 %v20924_v37  ;;  %16054 = vmatmul.mubr.bf16.vlgmr.msra.gmra.mrb[168].mxu1 %v3993_v39 }
 0x59b   :  { %19475 = vmatprep.subr.bf16.mxu0 %v20926_v40  ;;  %19496 = vmatpush3.bf16.msra.mxu1 %v20925_v42 }
 0x59c   :  { %16093 = vmatprep.mubr.bf16.mxu0 %v3992_v43  ;;  %19497 = vmatprep.subr.bf16.mxu1 %v20927_v44 }
 0x59d   :  { %16133 = vmatprep.mubr.bf16.mxu1 %v3996_v46 }
 0x59e   :  { %19476 = vmatpush3.bf16.msra.mxu0 %v20928_v45 }
 0x59f   :  { %19477 = vmatprep.subr.bf16.mxu0 %v20930_v47  ;;  %19498 = vmatpush3.bf16.msra.mxu1 %v20929_v48 }
 0x5a0   :  { %19499 = vmatprep.subr.bf16.mxu1 %v20931_v49 }
 0x5a2   :  { %19478 = vmatpush3.bf16.msra.mxu0 %v20932_v50 }
 0x5a3   :  { %19479 = vmatprep.subr.bf16.mxu0 %v20934_v51  ;;  %19500 = vmatpush3.bf16.msra.mxu1 %v20933_v52 }
 0x5a4   :  { %19501 = vmatprep.subr.bf16.mxu1 %v20935_v53 }
 0x5a6   :  { %19480 = vmatpush3.bf16.msra.mxu0 %v20936_v54 }
 0x5a7   :  { %19481 = vmatprep.subr.bf16.mxu0 %v20938_v55  ;;  %19502 = vmatpush3.bf16.msra.mxu1 %v20937_v56  ;;  %v21055_v56 = vmov 0.0  }
 0x5a8   :  { %19503 = vmatprep.subr.bf16.mxu1 %v20939_v57  ;;  %57 = vst [vmem:[#allocation2] sm:$0x3] %v21055_v56 }
 0x5aa   :  { %19482 = vmatpush3.bf16.msra.mxu0 %v20940_v58 }
 0x5ab   :  { %19483 = vmatprep.subr.bf16.mxu0 %v20942_v59  ;;  %19504 = vmatpush3.bf16.msra.mxu1 %v20941_v60 }
 0x5ac   :  { %v19181_v61 = vpop.f32.mrb[144].mxu0  ;;  %19505 = vmatprep.subr.bf16.mxu1 %v20943_v62 }
 0x5ad   :  { %v19182_v63 = vpop.f32.mrb[145].mxu0  ;;  %v19203_v1 = vpop.f32.mrb[144].mxu1 }
 0x5ae   :  { %v19183_v2 = vadd.f32 %v19182_v63, %v19181_v61  ;;  %v19184_v3 = vpop.f32.mrb[146].mxu0  ;;  %v19204_v6 = vpop.f32.mrb[145].mxu1  ;;  %19484 = vmatpush3.bf16.msra.mxu0 %v20944_v0 }
 0x5af   :  { %v19185_v7 = vpop.f32.mrb[147].mxu0  ;;  %v19205_v9 = vadd.f32 %v19204_v6, %v19203_v1  ;;  %v19206_v10 = vpop.f32.mrb[146].mxu1  ;;  %19485 = vmatprep.subr.bf16.mxu0 %v20946_v5  ;;  %19506 = vmatpush3.bf16.msra.mxu1 %v20945_v4 }
 0x5b0   :  { %v15536_v8 = vadd.f32 %v19183_v2, %v21451_v22  ;;  %v19207_v12 = vpop.f32.mrb[147].mxu1  ;;  %19507 = vmatprep.subr.bf16.mxu1 %v20947_v11 }
 0x5b2   :  { %v15576_v14 = vadd.f32 %v19205_v9, %v15536_v8  ;;  %19486 = vmatpush3.bf16.msra.mxu0 %v20948_v13 }
 0x5b3   :  { %19487 = vmatprep.subr.bf16.mxu0 %v20950_v15  ;;  %19508 = vmatpush3.bf16.msra.mxu1 %v20949_v16 }
 0x5b4   :  { %19509 = vmatprep.subr.bf16.mxu1 %v20951_v17 }
 0x5b6   :  { %19488 = vmatpush3.bf16.msra.mxu0 %v20952_v18 }
 0x5b7   :  { %19510 = vmatpush3.bf16.msra.mxu1 %v20953_v20 }
 0x5b9   :  { %16094 = vmatmul.mubr.bf16.vlgmr.msra.gmra.mrb[172].mxu0 %v3978_v19 }
 0x5ba   :  { %16134 = vmatmul.mubr.bf16.vlgmr.msra.gmra.mrb[172].mxu1 %v3994_v21 }
 0x5cc   :  { %v19225_v22 = vpop.f32.mrb[148].mxu0 }
 0x5cd   :  { %v19226_v23 = vpop.f32.mrb[149].mxu0  ;;  %v19247_v24 = vpop.f32.mrb[148].mxu1 }
 0x5ce   :  { %v19227_v25 = vadd.f32 %v19226_v23, %v19225_v22  ;;  %v19228_v26 = vpop.f32.mrb[150].mxu0  ;;  %v19248_v27 = vpop.f32.mrb[149].mxu1 }
 0x5cf   :  { %v19229_v28 = vpop.f32.mrb[151].mxu0  ;;  %v19249_v30 = vadd.f32 %v19248_v27, %v19247_v24  ;;  %v19250_v31 = vpop.f32.mrb[150].mxu1 }
 0x5d0   :  { %v15616_v29 = vadd.f32 %v19227_v25, %v15576_v14  ;;  %v19251_v32 = vpop.f32.mrb[151].mxu1 }
 0x5d2   :  { %v15656_v35 = vadd.f32 %v19249_v30, %v15616_v29 }
 0x5ec   :  { %v19269_v33 = vpop.f32.mrb[152].mxu0 }
 0x5ed   :  { %v19270_v34 = vpop.f32.mrb[153].mxu0  ;;  %v19291_v36 = vpop.f32.mrb[152].mxu1 }
 0x5ee   :  { %v19271_v37 = vadd.f32 %v19270_v34, %v19269_v33  ;;  %v19272_v38 = vpop.f32.mrb[154].mxu0  ;;  %v19292_v39 = vpop.f32.mrb[153].mxu1 }
 0x5ef   :  { %v19273_v40 = vpop.f32.mrb[155].mxu0  ;;  %v19293_v42 = vadd.f32 %v19292_v39, %v19291_v36  ;;  %v19294_v43 = vpop.f32.mrb[154].mxu1 }
 0x5f0   :  { %v15696_v41 = vadd.f32 %v19271_v37, %v15656_v35  ;;  %v19295_v44 = vpop.f32.mrb[155].mxu1 }
 0x5f2   :  { %v15736_v45 = vadd.f32 %v19293_v42, %v15696_v41  ;;  %v2896_v41 = vld [vmem:[#allocation2] sm:$0x3] }
 0x60c   :  { %v19313_v46 = vpop.f32.mrb[156].mxu0 }
 0x60d   :  { %v19314_v47 = vpop.f32.mrb[157].mxu0  ;;  %v19335_v48 = vpop.f32.mrb[156].mxu1 }
 0x60e   :  { %v19315_v49 = vadd.f32 %v19314_v47, %v19313_v46  ;;  %v19316_v50 = vpop.f32.mrb[158].mxu0  ;;  %v19336_v51 = vpop.f32.mrb[157].mxu1 }
 0x60f   :  { %v19317_v52 = vpop.f32.mrb[159].mxu0  ;;  %v19337_v54 = vadd.f32 %v19336_v51, %v19335_v48  ;;  %v19338_v55 = vpop.f32.mrb[158].mxu1 }
 0x610   :  { %v15776_v53 = vadd.f32 %v19315_v49, %v15736_v45  ;;  %v19339_v57 = vpop.f32.mrb[159].mxu1  ;;  %v17580_v45 = vld [vmem:[#allocation8] ss:$0 sm:$0xff] }
 0x612   :  { %v15816_v58 = vadd.f32 %v19337_v54, %v15776_v53 }
 0x62c   :  { %v19357_v59 = vpop.f32.mrb[160].mxu0 }
 0x62d   :  { %v19358_v60 = vpop.f32.mrb[161].mxu0  ;;  %v19379_v61 = vpop.f32.mrb[160].mxu1 }
 0x62e   :  { %v19359_v62 = vadd.f32 %v19358_v60, %v19357_v59  ;;  %v19360_v63 = vpop.f32.mrb[162].mxu0  ;;  %v19380_v0 = vpop.f32.mrb[161].mxu1 }
 0x62f   :  { %v19361_v1 = vpop.f32.mrb[163].mxu0  ;;  %v19381_v3 = vadd.f32 %v19380_v0, %v19379_v61  ;;  %v19382_v4 = vpop.f32.mrb[162].mxu1 }
 0x630   :  { %v15856_v2 = vadd.f32 %v19359_v62, %v15816_v58  ;;  %v19383_v5 = vpop.f32.mrb[163].mxu1 }
 0x632   :  { %v15896_v6 = vadd.f32 %v19381_v3, %v15856_v2 }
 0x64c   :  { %v19401_v7 = vpop.f32.mrb[164].mxu0 }
 0x64d   :  { %v19402_v8 = vpop.f32.mrb[165].mxu0  ;;  %v19423_v9 = vpop.f32.mrb[164].mxu1 }
 0x64e   :  { %v19403_v10 = vadd.f32 %v19402_v8, %v19401_v7  ;;  %v19404_v11 = vpop.f32.mrb[166].mxu0  ;;  %v19424_v12 = vpop.f32.mrb[165].mxu1 }
 0x64f   :  { %v19405_v13 = vpop.f32.mrb[167].mxu0  ;;  %v19425_v15 = vadd.f32 %v19424_v12, %v19423_v9  ;;  %v19426_v16 = vpop.f32.mrb[166].mxu1 }
 0x650   :  { %v15936_v14 = vadd.f32 %v19403_v10, %v15896_v6  ;;  %v19427_v17 = vpop.f32.mrb[167].mxu1 }
 0x652   :  { %v15976_v18 = vadd.f32 %v19425_v15, %v15936_v14 }
 0x66c   :  { %v19445_v19 = vpop.f32.mrb[168].mxu0 }
 0x66d   :  { %v19446_v20 = vpop.f32.mrb[169].mxu0  ;;  %v19467_v21 = vpop.f32.mrb[168].mxu1 }
 0x66e   :  { %v19447_v22 = vadd.f32 %v19446_v20, %v19445_v19  ;;  %v19448_v23 = vpop.f32.mrb[170].mxu0  ;;  %v19468_v24 = vpop.f32.mrb[169].mxu1 }
 0x66f   :  { %v19449_v25 = vpop.f32.mrb[171].mxu0  ;;  %v19469_v27 = vadd.f32 %v19468_v24, %v19467_v21  ;;  %v19470_v28 = vpop.f32.mrb[170].mxu1 }
 0x670   :  { %v16016_v26 = vadd.f32 %v19447_v22, %v15976_v18  ;;  %v19471_v29 = vpop.f32.mrb[171].mxu1 }
 0x672   :  { %v16056_v30 = vadd.f32 %v19469_v27, %v16016_v26 }
 0x68c   :  { %v19489_v31 = vpop.f32.mrb[172].mxu0 }
 0x68d   :  { %v19490_v32 = vpop.f32.mrb[173].mxu0  ;;  %v19511_v35 = vpop.f32.mrb[172].mxu1 }
 0x68e   :  { %v19491_v33 = vadd.f32 %v19490_v32, %v19489_v31  ;;  %v19492_v34 = vpop.f32.mrb[174].mxu0  ;;  %v19512_v36 = vpop.f32.mrb[173].mxu1 }
 0x68f   :  { %v19493_v37 = vpop.f32.mrb[175].mxu0  ;;  %v19513_v39 = vadd.f32 %v19512_v36, %v19511_v35  ;;  %v19514_v40 = vpop.f32.mrb[174].mxu1 }
 0x690   :  { %v16096_v38 = vadd.f32 %v19491_v33, %v16056_v30  ;;  %v19515_v42 = vpop.f32.mrb[175].mxu1 }
 0x692   :  { %v16136_v43 = vadd.f32 %v19513_v39, %v16096_v38 }
 0x694   :  { %v16141_v44 = vadd.f32 %v16136_v43, %v2896_v41 }
 0x696   :  { %16142 = vst [vmem:[#allocation2] sm:$0x3] %v16141_v44 }
 0x69d   :  { %v16146_v46 = vld [vmem:[#allocation2] sm:$0x3] }
 0x69e   :  { %v16154_v47 = vadd.f32 %v17580_v45, %v16146_v46 }
 0x6a0   :  { %16155 = vst [vmem:[#allocation9] sm:$0x3] %v16154_v47 }
 0x6a1   :  { %21032 = shalt.err (!%p21029_p0)
}
 0x6a2   :  { %s21033_s26 = scalar_lea.hbm %s21480_s3, 32 }
 0x6a3   :  { %p21034_p1 = scmp.ne.s32.totalorder %s21480_s3, %s21033_s26  ;;  %p21037_p2 = scmp.lt.u32.totalorder %s21033_s26, %s21480_s3 }
 0x6a5   :  { %p21039_p3 = pnand %p21037_p2, %p21034_p1 }
 0x6a7   :  { %21042 = shalt.err (!%p21039_p3)
}
 0x6a8   :  { %16165 = dma.vmem_to_hbm [thread:$0]  %s16163_s22, 32, %s21480_s3, [#allocation5]  }
 0x6a9   :  { %21047 = dma.done.wait [#allocation5], 32  }
 0x6aa   :  { %21048 = vsyncadd [#allocation5], 4294967264 }
 0x6ab   :  { %16169 = vsyncpa [#allocation4], 1 }
 0x6ac   :  { %16170 = vsyncpa [#allocation7], 1 }
 0x6ad   :  { %16171 = vsyncpa [#allocation5], 1 }

</bundles_post_ra>
